<compile_context>
chip_gen: v5e
topology: v5e:2x2
jax: 0.10.0
libtpu: 0.0.40
codegen_flags: <defaults>
</compile_context>

<pallas_src>
import math

import jax
import jax.numpy as jnp
from jax.experimental import pallas as pl
from jax.experimental.pallas import tpu as pltpu


# ----------------------------------------------------------------------------
# Fused kernel builder: num_layers GRU layers + last-valid-step gather + L2 norm.
# ----------------------------------------------------------------------------
def _make_encoder_kernel(num_layers, T, B_TILE, H, use_abs, time_unroll):
    H2 = 2 * H

    def kernel(*refs):
        x_ref = refs[0]                        # (T, B_TILE, D0) f32
        lens_ref = refs[1]                     # (B_TILE, 1)     int32
        layer_refs = []
        idx = 2
        for _ in range(num_layers):
            layer_refs.append(tuple(refs[idx:idx + 4]))   # wih, whh, bx, bhn
            idx += 4
        out_ref = refs[idx]                    # (B_TILE, H) f32
        gx_scr = refs[idx + 1]                 # (T, B_TILE, 3H) f32
        seq_scr = refs[idx + 2] if num_layers > 1 else None   # (T, B_TILE, H)

        lens_v = lens_ref[...]                 # loaded exactly once
        zero_h = jnp.zeros((B_TILE, H), jnp.float32)

        for layer in range(num_layers):
            wih_ref, whh_ref, bx_ref, bhn_ref = layer_refs[layer]

            # ---- hoisted, gate-fused input projection (off the serial path) --
            # One (B_TILE, D_in) @ (D_in, 3H) bf16 matmul per time step into a
            # lane-dense (.., 3H) f32 scratch.  b_ir+b_hr / b_iz+b_hz / b_in are
            # pre-folded into bx; only b_hn stays separate (it lives inside the
            # r * (.) term of the n gate).
            def proj(t, carry):
                xin = x_ref[t] if layer == 0 else seq_scr[t]
                gx_scr[t] = (jnp.dot(xin.astype(jnp.bfloat16), wih_ref[...],
                                     preferred_element_type=jnp.float32)
                             + bx_ref[...])
                return carry

            if T <= 32:
                for t in range(T):
                    proj(t, 0)
            else:
                jax.lax.fori_loop(0, T, proj, 0, unroll=4)

            # ---- serial recurrence: ONE fused h @ W_hh (H, 3H) per step ------
            def cell(t, h):
                gh = jnp.dot(h.astype(jnp.bfloat16), whh_ref[...],
                             preferred_element_type=jnp.float32)   # (B, 3H)
                gx = gx_scr[t]                                     # one wide vld
                rz = jax.nn.sigmoid(gx[:, :H2] + gh[:, :H2])
                r = rz[:, :H]
                z = rz[:, H:]
                # (1, H) bias broadcasts in the add -- no explicit broadcast_to.
                n = jnp.tanh(gx[:, H2:] + r * (gh[:, H2:] + bhn_ref[...]))
                return n + z * (h - n)          # == (1 - z) * n + z * h

            if layer < num_layers - 1:
                # Intermediate layer: hidden sequence stays in VMEM scratch.
                def step(t, h):
                    h_new = cell(t, h)
                    seq_scr[t] = h_new
                    return h_new

                jax.lax.fori_loop(0, T, step, zero_h, unroll=time_unroll)
            else:
                # Last layer: gather at t == len - 1 via a per-step select in
                # registers; no (T, B, H) output sequence is ever written.
                def step(t, carry):
                    h, last = carry
                    h_new = cell(t, h)
                    last = jnp.where(lens_v == t + 1, h_new, last)
                    return h_new, last

                _, last_h = jax.lax.fori_loop(0, T, step, (zero_h, zero_h),
                                              unroll=time_unroll)

                # Fused L2-norm epilogue (EUP rsqrt; no eps, matching reference).
                ss = jnp.sum(last_h * last_h, axis=1, keepdims=True)
                res = last_h * jax.lax.rsqrt(ss)
                if use_abs:
                    res = jnp.abs(res)
                out_ref[...] = res.astype(out_ref.dtype)

    return kernel


# ----------------------------------------------------------------------------
# Generation-aware planner: (B_TILE, B_pad, vmem_limit_bytes, time_unroll).
# ----------------------------------------------------------------------------
def _plan(B, T, D0, H, num_layers):
    try:
        phys = int(pltpu.get_tpu_info().vmem_capacity_bytes)   # 128MiB v5e/v6e, 64MiB v7x
    except Exception:
        phys = 64 * 1024 * 1024            # conservative (v7x-sized) fallback
    budget = (phys // 4) * 3               # headroom for compiler scratch / sems

    # VMEM-resident weights (pipeline double-buffers them): bf16 W + f32 biases.
    wbytes = 0
    for layer in range(num_layers):
        d_in = D0 if layer == 0 else H
        wbytes += 2 * (2 * 3 * H * (d_in + H) + 4 * 4 * H)

    # Per batch row: double-buffered f32 x block, f32 gx scratch,
    # optional f32 inter-layer sequence scratch, lens/out.
    per_row = 4 * (2 * T * D0 + 3 * T * H
                   + (T * H if num_layers > 1 else 0) + H + 2)
    avail = max(0, budget - wbytes)
    tile_vmem = max(8, (avail // per_row) // 8 * 8)
    # Keep the recurrent carry (h, last) + gate temps inside the 64x4KiB vregs.
    tile_vreg = max(8, (8192 // max(H, 1)) // 8 * 8)
    tile = int(min(256, tile_vmem, tile_vreg))

    b8 = max(8, -(-B // 8) * 8)
    if b8 <= tile:
        # Small batch: minimal padding, but still 2 "parallel" grid tiles so the
        # second TensorCore (v7x) / megacore always has work.
        b_pad = max(16, -(-B // 16) * 16)
        tile = b_pad // 2
    else:
        # Pad the batch up to a multiple of the chosen tile instead of only 8;
        # padded rows are cheap compared with repeating the serial T-step chain.
        b_pad = -(-b8 // tile) * tile

    time_unroll = True if (T <= 32 and tile * H <= 2048) else min(4, T)
    vmem_limit = min(phys - (8 << 20), budget + (8 << 20))
    return tile, b_pad, int(vmem_limit), time_unroll


# ----------------------------------------------------------------------------
# Pallas wrapper: batch-tiled "parallel" grid, VMEM-resident weights.
# ----------------------------------------------------------------------------
def gru_text_encoder(x_tbd, lens_b1, layer_params, use_abs,
                     b_tile, vmem_limit, time_unroll):
    """x_tbd: (T, B_pad, D0) f32; lens_b1: (B_pad, 1) int32;
    layer_params: [(wih (D_in,3H) bf16, whh (H,3H) bf16, bx (1,3H), bhn (1,H))]."""
    T, B_pad, D0 = x_tbd.shape
    H = layer_params[0][1].shape[0]
    num_layers = len(layer_params)
    nb = B_pad // b_tile

    in_specs = [
        pl.BlockSpec((T, b_tile, D0), lambda b: (0, b, 0)),   # strided batch-tile DMA
        pl.BlockSpec((b_tile, 1), lambda b: (b, 0)),
    ]
    inputs = [x_tbd, lens_b1]
    for wih, whh, bx, bhn in layer_params:
        d_in = wih.shape[0]
        # Constant index_map -> blocks stay VMEM-resident across grid steps.
        # (pl.Buffered(1) would halve their residency; left at the default since
        #  the gate-fused bf16 weights are tiny at these shapes.)
        in_specs += [
            pl.BlockSpec((d_in, 3 * H), lambda b: (0, 0)),
            pl.BlockSpec((H, 3 * H), lambda b: (0, 0)),
            pl.BlockSpec((1, 3 * H), lambda b: (0, 0)),
            pl.BlockSpec((1, H), lambda b: (0, 0)),
        ]
        inputs += [wih, whh, bx, bhn]

    scratch_shapes = [pltpu.VMEM((T, b_tile, 3 * H), jnp.float32)]
    if num_layers > 1:
        scratch_shapes.append(pltpu.VMEM((T, b_tile, H), jnp.float32))

    kernel = _make_encoder_kernel(num_layers, T, b_tile, H, use_abs, time_unroll)

    return pl.pallas_call(
        kernel,
        out_shape=jax.ShapeDtypeStruct((B_pad, H), jnp.float32),
        grid_spec=pltpu.PrefetchScalarGridSpec(
            num_scalar_prefetch=0,
            grid=(nb,),
            in_specs=in_specs,
            out_specs=pl.BlockSpec((b_tile, H), lambda b: (b, 0)),
            scratch_shapes=scratch_shapes,
        ),
        compiler_params=pltpu.CompilerParams(
            dimension_semantics=("parallel",),   # batch tiles are independent
            vmem_limit_bytes=vmem_limit,
        ),
    )(*inputs)


# ----------------------------------------------------------------------------
# Parameter init (mirrors the PyTorch module):
#   embed.weight ~ U(-0.1, 0.1); GRU weights/biases ~ U(-1/sqrt(H), 1/sqrt(H)).
# PyTorch stores (3H, D) gate-stacked [r|z|n]; we keep that gate order but lay
# the weights out transposed and gate-fused: (D_in, 3H) / (H, 3H) in bf16, with
# b_ih + b_hh pre-folded for the r / z gates (b_in kept, b_hn separate).
# ----------------------------------------------------------------------------
def init_params(key, vocab_size, word_dim, embed_size, num_layers):
    H = embed_size
    keys = jax.random.split(key, 1 + 4 * num_layers)
    params = {"embed": jax.random.uniform(
        keys[0], (vocab_size, word_dim), jnp.float32, -0.1, 0.1)}
    k = 1.0 / math.sqrt(H)
    for layer in range(num_layers):
        d_in = word_dim if layer == 0 else H
        base = 1 + 4 * layer
        wih = jax.random.uniform(keys[base + 0], (3 * H, d_in), jnp.float32, -k, k)
        whh = jax.random.uniform(keys[base + 1], (3 * H, H), jnp.float32, -k, k)
        bih = jax.random.uniform(keys[base + 2], (3 * H,), jnp.float32, -k, k)
        bhh = jax.random.uniform(keys[base + 3], (3 * H,), jnp.float32, -k, k)
        params[f"wih_{layer}"] = jnp.transpose(wih).astype(jnp.bfloat16)  # (d_in, 3H)
        params[f"whh_{layer}"] = jnp.transpose(whh).astype(jnp.bfloat16)  # (H, 3H)
        bx = jnp.concatenate([bih[:2 * H] + bhh[:2 * H], bih[2 * H:]])    # r,z folded
        params[f"bx_{layer}"] = bx.reshape(1, 3 * H).astype(jnp.float32)
        params[f"bhn_{layer}"] = bhh[2 * H:].reshape(1, H).astype(jnp.float32)
    return params


# ----------------------------------------------------------------------------
# Module forward.  pack_padded_sequence is emulated by running the full padded
# sequence and gathering the hidden state at t = len - 1 (identical returned
# value, since later padded steps never affect earlier states).
# ----------------------------------------------------------------------------
def encoder_text_forward(params, x_ids, lengths, num_layers, use_abs=False):
    B, T = x_ids.shape
    H = params["whh_0"].shape[0]
    D0 = params["embed"].shape[1]

    # TODO(synk): the embedding row-gather is left to XLA (jnp.take); a Pallas
    # DMA-gather is possible but it is not the hot path of this module.
    # Gathering with time-major ids yields (T, B, D0) directly, so no big
    # activation transpose/relayout is materialized before the kernel.
    emb_tbd = jnp.take(params["embed"], jnp.transpose(x_ids), axis=0)
    emb_tbd = emb_tbd.astype(jnp.float32)                          # (T, B, D0)

    # Lengths clamped to [1, T] (PyTorch pack_padded_sequence would raise).
    lens = jnp.clip(jnp.asarray(lengths, jnp.int32), 1, T)

    b_tile, b_pad, vmem_limit, time_unroll = _plan(B, T, D0, H, num_layers)
    if b_pad != B:
        emb_tbd = jnp.pad(emb_tbd, ((0, 0), (0, b_pad - B), (0, 0)))
        lens = jnp.pad(lens, (0, b_pad - B), constant_values=1)
    lens_b1 = lens[:, None]                                        # (B_pad, 1)

    layer_params = [(params[f"wih_{l}"], params[f"whh_{l}"],
                     params[f"bx_{l}"], params[f"bhn_{l}"])
                    for l in range(num_layers)]
    out = gru_text_encoder(emb_tbd, lens_b1, layer_params, use_abs,
                           b_tile, vmem_limit, time_unroll)        # (B_pad, H)
    return out[:B]


# ----------------------------------------------------------------------------
# Pure-JAX reference (lax.scan GRU) with the SAME bf16-operand / f32-accumulate
# matmul numerics as the kernel, for correctness checking.
# ----------------------------------------------------------------------------
def reference_forward(params, x_ids, lengths, num_layers, use_abs=False):
    B, T = x_ids.shape
    H = params["whh_0"].shape[0]
    emb = jnp.take(params["embed"], x_ids, axis=0).astype(jnp.float32)
    h_seq = jnp.transpose(emb, (1, 0, 2))                          # (T, B, D)
    for layer in range(num_layers):
        wih = params[f"wih_{layer}"]       # (D_in, 3H) bf16
        whh = params[f"whh_{layer}"]       # (H, 3H)   bf16
        bx = params[f"bx_{layer}"]         # (1, 3H)
        bhn = params[f"bhn_{layer}"]       # (1, H)

        def step(h, x_t):
            gx = jnp.dot(x_t.astype(jnp.bfloat16), wih,
                         preferred_element_type=jnp.float32) + bx
            gh = jnp.dot(h.astype(jnp.bfloat16), whh,
                         preferred_element_type=jnp.float32)
            r = jax.nn.sigmoid(gx[:, :H] + gh[:, :H])
            z = jax.nn.sigmoid(gx[:, H:2 * H] + gh[:, H:2 * H])
            n = jnp.tanh(gx[:, 2 * H:] + r * (gh[:, 2 * H:] + bhn))
            h_new = (1.0 - z) * n + z * h
            return h_new, h_new

        _, h_seq = jax.lax.scan(step, jnp.zeros((B, H), jnp.float32), h_seq)
    idx = jnp.clip(jnp.asarray(lengths, jnp.int32), 1, T) - 1
    last = h_seq[idx, jnp.arange(B)]                               # (B, H)
    out = last / jnp.sqrt(jnp.sum(last * last, axis=1, keepdims=True))
    if use_abs:
        out = jnp.abs(out)
    return out


if __name__ == "__main__":
    vocab_size, word_dim, embed_size, num_layers = 50, 32, 32, 2
    B, T = 2, 8

    key = jax.random.PRNGKey(0)
    k_param, k_ids = jax.random.split(key)

    params = init_params(k_param, vocab_size, word_dim, embed_size, num_layers)
    x_ids = jax.random.randint(k_ids, (B, T), 0, vocab_size, dtype=jnp.int32)
    # pack_padded_sequence expects lengths sorted in decreasing order.
    lengths = jnp.array([8, 5], dtype=jnp.int32)

    fwd = jax.jit(encoder_text_forward, static_argnames=("num_layers", "use_abs"))
    out = fwd(params, x_ids, lengths, num_layers=num_layers, use_abs=False)
    out = jax.block_until_ready(out)

    assert out.shape == (B, embed_size)
    assert bool(jnp.all(jnp.isfinite(out)))
    row_norms = jnp.sqrt(jnp.sum(out * out, axis=1))
    assert bool(jnp.allclose(row_norms, 1.0, atol=1e-4))

    ref = jax.block_until_ready(
        reference_forward(params, x_ids, lengths, num_layers, use_abs=False))
    max_err = float(jnp.max(jnp.abs(out - ref)))
    assert max_err < 5e-3, f"mismatch vs pure-JAX reference: {max_err}"

    print("KERNEL_OK")
</pallas_src>

<mosaic_0001>
module attributes {stable_mosaic.version = 11 : i64} {
  func.func @kernel(%arg0: i32, %arg1: memref<8x8x32xf32, #tpu.memory_space<vmem>>, %arg2: memref<8x1xi32, #tpu.memory_space<vmem>>, %arg3: memref<32x96xbf16, #tpu.memory_space<vmem>>, %arg4: memref<32x96xbf16, #tpu.memory_space<vmem>>, %arg5: memref<1x96xf32, #tpu.memory_space<vmem>>, %arg6: memref<1x32xf32, #tpu.memory_space<vmem>>, %arg7: memref<32x96xbf16, #tpu.memory_space<vmem>>, %arg8: memref<32x96xbf16, #tpu.memory_space<vmem>>, %arg9: memref<1x96xf32, #tpu.memory_space<vmem>>, %arg10: memref<1x32xf32, #tpu.memory_space<vmem>>, %arg11: memref<8x32xf32, #tpu.memory_space<vmem>>, %arg12: memref<8x8x96xf32, #tpu.memory_space<vmem>>, %arg13: memref<8x8x32xf32, #tpu.memory_space<vmem>>) attributes {dimension_semantics = [#tpu.dimension_semantics<parallel>], iteration_bounds = array<i64: 2>, scalar_prefetch = 0 : i64, scratch_operands = 2 : i64, tpu.core_type = #tpu.core_type<tc>, window_params = [{transform_indices = @transform_0, window_bounds = array<i64: 8, 8, 32>}, {transform_indices = @transform_1, window_bounds = array<i64: 8, 1>}, {pipeline_mode = #tpu.pipeline_mode<synchronous>, transform_indices = @transform_2, window_bounds = array<i64: 32, 96>}, {pipeline_mode = #tpu.pipeline_mode<synchronous>, transform_indices = @transform_3, window_bounds = array<i64: 32, 96>}, {pipeline_mode = #tpu.pipeline_mode<synchronous>, transform_indices = @transform_4, window_bounds = array<i64: 1, 96>}, {pipeline_mode = #tpu.pipeline_mode<synchronous>, transform_indices = @transform_5, window_bounds = array<i64: 1, 32>}, {pipeline_mode = #tpu.pipeline_mode<synchronous>, transform_indices = @transform_6, window_bounds = array<i64: 32, 96>}, {pipeline_mode = #tpu.pipeline_mode<synchronous>, transform_indices = @transform_7, window_bounds = array<i64: 32, 96>}, {pipeline_mode = #tpu.pipeline_mode<synchronous>, transform_indices = @transform_8, window_bounds = array<i64: 1, 96>}, {pipeline_mode = #tpu.pipeline_mode<synchronous>, transform_indices = @transform_9, window_bounds = array<i64: 1, 32>}, {transform_indices = @transform_10, window_bounds = array<i64: 8, 32>}]} {
    %c0 = arith.constant 0 : index
    %c0_0 = arith.constant 0 : index
    %0 = vector.load %arg2[%c0, %c0_0] : memref<8x1xi32, #tpu.memory_space<vmem>>, vector<8x1xi32>
    %cst = arith.constant 0.000000e+00 : f32
    %1 = vector.broadcast %cst : f32 to vector<8x32xf32>
    %c0_1 = arith.constant 0 : index
    %c0_2 = arith.constant 0 : index
    %c0_3 = arith.constant 0 : index
    %2 = vector.load %arg1[%c0_1, %c0_2, %c0_3] : memref<8x8x32xf32, #tpu.memory_space<vmem>>, vector<1x8x32xf32>
    %3 = vector.shape_cast %2 : vector<1x8x32xf32> to vector<8x32xf32>
    %4 = arith.truncf %3 : vector<8x32xf32> to vector<8x32xbf16>
    %c0_4 = arith.constant 0 : index
    %c0_5 = arith.constant 0 : index
    %5 = vector.load %arg3[%c0_4, %c0_5] : memref<32x96xbf16, #tpu.memory_space<vmem>>, vector<32x96xbf16>
    %cst_6 = arith.constant dense<0.000000e+00> : vector<8x96xf32>
    %6 = tpu.matmul %4, %5, %cst_6 {dimension_numbers = #tpu.dot_dimension_numbers<[1], [0], [0], [1], [0, 0, 1, 1], [], []>} : vector<8x32xbf16>, vector<32x96xbf16>, vector<8x96xf32> -> vector<8x96xf32>
    %c0_7 = arith.constant 0 : index
    %c0_8 = arith.constant 0 : index
    %7 = vector.load %arg5[%c0_7, %c0_8] : memref<1x96xf32, #tpu.memory_space<vmem>>, vector<1x96xf32>
    %8 = vector.broadcast %7 : vector<1x96xf32> to vector<8x96xf32>
    %9 = arith.addf %6, %8 : vector<8x96xf32>
    %c0_9 = arith.constant 0 : index
    %c0_10 = arith.constant 0 : index
    %c0_11 = arith.constant 0 : index
    %10 = vector.load %arg12[%c0_9, %c0_10, %c0_11] : memref<8x8x96xf32, #tpu.memory_space<vmem>>, vector<1x8x96xf32>
    %11 = vector.shape_cast %10 : vector<1x8x96xf32> to vector<8x96xf32>
    %12 = vector.shape_cast %9 : vector<8x96xf32> to vector<1x8x96xf32>
    tpu.vector_store %arg12[%c0_9, %c0_10, %c0_11], %12 {strides = array<i32>} : memref<8x8x96xf32, #tpu.memory_space<vmem>>, vector<1x8x96xf32>,
    %c1 = arith.constant 1 : index
    %c0_12 = arith.constant 0 : index
    %c0_13 = arith.constant 0 : index
    %13 = vector.load %arg1[%c1, %c0_12, %c0_13] : memref<8x8x32xf32, #tpu.memory_space<vmem>>, vector<1x8x32xf32>
    %14 = vector.shape_cast %13 : vector<1x8x32xf32> to vector<8x32xf32>
    %15 = arith.truncf %14 : vector<8x32xf32> to vector<8x32xbf16>
    %c0_14 = arith.constant 0 : index
    %c0_15 = arith.constant 0 : index
    %16 = vector.load %arg3[%c0_14, %c0_15] : memref<32x96xbf16, #tpu.memory_space<vmem>>, vector<32x96xbf16>
    %cst_16 = arith.constant dense<0.000000e+00> : vector<8x96xf32>
    %17 = tpu.matmul %15, %16, %cst_16 {dimension_numbers = #tpu.dot_dimension_numbers<[1], [0], [0], [1], [0, 0, 1, 1], [], []>} : vector<8x32xbf16>, vector<32x96xbf16>, vector<8x96xf32> -> vector<8x96xf32>
    %c0_17 = arith.constant 0 : index
    %c0_18 = arith.constant 0 : index
    %18 = vector.load %arg5[%c0_17, %c0_18] : memref<1x96xf32, #tpu.memory_space<vmem>>, vector<1x96xf32>
    %19 = vector.broadcast %18 : vector<1x96xf32> to vector<8x96xf32>
    %20 = arith.addf %17, %19 : vector<8x96xf32>
    %c1_19 = arith.constant 1 : index
    %c0_20 = arith.constant 0 : index
    %c0_21 = arith.constant 0 : index
    %21 = vector.load %arg12[%c1_19, %c0_20, %c0_21] : memref<8x8x96xf32, #tpu.memory_space<vmem>>, vector<1x8x96xf32>
    %22 = vector.shape_cast %21 : vector<1x8x96xf32> to vector<8x96xf32>
    %23 = vector.shape_cast %20 : vector<8x96xf32> to vector<1x8x96xf32>
    tpu.vector_store %arg12[%c1_19, %c0_20, %c0_21], %23 {strides = array<i32>} : memref<8x8x96xf32, #tpu.memory_space<vmem>>, vector<1x8x96xf32>,
    %c2 = arith.constant 2 : index
    %c0_22 = arith.constant 0 : index
    %c0_23 = arith.constant 0 : index
    %24 = vector.load %arg1[%c2, %c0_22, %c0_23] : memref<8x8x32xf32, #tpu.memory_space<vmem>>, vector<1x8x32xf32>
    %25 = vector.shape_cast %24 : vector<1x8x32xf32> to vector<8x32xf32>
    %26 = arith.truncf %25 : vector<8x32xf32> to vector<8x32xbf16>
    %c0_24 = arith.constant 0 : index
    %c0_25 = arith.constant 0 : index
    %27 = vector.load %arg3[%c0_24, %c0_25] : memref<32x96xbf16, #tpu.memory_space<vmem>>, vector<32x96xbf16>
    %cst_26 = arith.constant dense<0.000000e+00> : vector<8x96xf32>
    %28 = tpu.matmul %26, %27, %cst_26 {dimension_numbers = #tpu.dot_dimension_numbers<[1], [0], [0], [1], [0, 0, 1, 1], [], []>} : vector<8x32xbf16>, vector<32x96xbf16>, vector<8x96xf32> -> vector<8x96xf32>
    %c0_27 = arith.constant 0 : index
    %c0_28 = arith.constant 0 : index
    %29 = vector.load %arg5[%c0_27, %c0_28] : memref<1x96xf32, #tpu.memory_space<vmem>>, vector<1x96xf32>
    %30 = vector.broadcast %29 : vector<1x96xf32> to vector<8x96xf32>
    %31 = arith.addf %28, %30 : vector<8x96xf32>
    %c2_29 = arith.constant 2 : index
    %c0_30 = arith.constant 0 : index
    %c0_31 = arith.constant 0 : index
    %32 = vector.load %arg12[%c2_29, %c0_30, %c0_31] : memref<8x8x96xf32, #tpu.memory_space<vmem>>, vector<1x8x96xf32>
    %33 = vector.shape_cast %32 : vector<1x8x96xf32> to vector<8x96xf32>
    %34 = vector.shape_cast %31 : vector<8x96xf32> to vector<1x8x96xf32>
    tpu.vector_store %arg12[%c2_29, %c0_30, %c0_31], %34 {strides = array<i32>} : memref<8x8x96xf32, #tpu.memory_space<vmem>>, vector<1x8x96xf32>,
    %c3 = arith.constant 3 : index
    %c0_32 = arith.constant 0 : index
    %c0_33 = arith.constant 0 : index
    %35 = vector.load %arg1[%c3, %c0_32, %c0_33] : memref<8x8x32xf32, #tpu.memory_space<vmem>>, vector<1x8x32xf32>
    %36 = vector.shape_cast %35 : vector<1x8x32xf32> to vector<8x32xf32>
    %37 = arith.truncf %36 : vector<8x32xf32> to vector<8x32xbf16>
    %c0_34 = arith.constant 0 : index
    %c0_35 = arith.constant 0 : index
    %38 = vector.load %arg3[%c0_34, %c0_35] : memref<32x96xbf16, #tpu.memory_space<vmem>>, vector<32x96xbf16>
    %cst_36 = arith.constant dense<0.000000e+00> : vector<8x96xf32>
    %39 = tpu.matmul %37, %38, %cst_36 {dimension_numbers = #tpu.dot_dimension_numbers<[1], [0], [0], [1], [0, 0, 1, 1], [], []>} : vector<8x32xbf16>, vector<32x96xbf16>, vector<8x96xf32> -> vector<8x96xf32>
    %c0_37 = arith.constant 0 : index
    %c0_38 = arith.constant 0 : index
    %40 = vector.load %arg5[%c0_37, %c0_38] : memref<1x96xf32, #tpu.memory_space<vmem>>, vector<1x96xf32>
    %41 = vector.broadcast %40 : vector<1x96xf32> to vector<8x96xf32>
    %42 = arith.addf %39, %41 : vector<8x96xf32>
    %c3_39 = arith.constant 3 : index
    %c0_40 = arith.constant 0 : index
    %c0_41 = arith.constant 0 : index
    %43 = vector.load %arg12[%c3_39, %c0_40, %c0_41] : memref<8x8x96xf32, #tpu.memory_space<vmem>>, vector<1x8x96xf32>
    %44 = vector.shape_cast %43 : vector<1x8x96xf32> to vector<8x96xf32>
    %45 = vector.shape_cast %42 : vector<8x96xf32> to vector<1x8x96xf32>
    tpu.vector_store %arg12[%c3_39, %c0_40, %c0_41], %45 {strides = array<i32>} : memref<8x8x96xf32, #tpu.memory_space<vmem>>, vector<1x8x96xf32>,
    %c4 = arith.constant 4 : index
    %c0_42 = arith.constant 0 : index
    %c0_43 = arith.constant 0 : index
    %46 = vector.load %arg1[%c4, %c0_42, %c0_43] : memref<8x8x32xf32, #tpu.memory_space<vmem>>, vector<1x8x32xf32>
    %47 = vector.shape_cast %46 : vector<1x8x32xf32> to vector<8x32xf32>
    %48 = arith.truncf %47 : vector<8x32xf32> to vector<8x32xbf16>
    %c0_44 = arith.constant 0 : index
    %c0_45 = arith.constant 0 : index
    %49 = vector.load %arg3[%c0_44, %c0_45] : memref<32x96xbf16, #tpu.memory_space<vmem>>, vector<32x96xbf16>
    %cst_46 = arith.constant dense<0.000000e+00> : vector<8x96xf32>
    %50 = tpu.matmul %48, %49, %cst_46 {dimension_numbers = #tpu.dot_dimension_numbers<[1], [0], [0], [1], [0, 0, 1, 1], [], []>} : vector<8x32xbf16>, vector<32x96xbf16>, vector<8x96xf32> -> vector<8x96xf32>
    %c0_47 = arith.constant 0 : index
    %c0_48 = arith.constant 0 : index
    %51 = vector.load %arg5[%c0_47, %c0_48] : memref<1x96xf32, #tpu.memory_space<vmem>>, vector<1x96xf32>
    %52 = vector.broadcast %51 : vector<1x96xf32> to vector<8x96xf32>
    %53 = arith.addf %50, %52 : vector<8x96xf32>
    %c4_49 = arith.constant 4 : index
    %c0_50 = arith.constant 0 : index
    %c0_51 = arith.constant 0 : index
    %54 = vector.load %arg12[%c4_49, %c0_50, %c0_51] : memref<8x8x96xf32, #tpu.memory_space<vmem>>, vector<1x8x96xf32>
    %55 = vector.shape_cast %54 : vector<1x8x96xf32> to vector<8x96xf32>
    %56 = vector.shape_cast %53 : vector<8x96xf32> to vector<1x8x96xf32>
    tpu.vector_store %arg12[%c4_49, %c0_50, %c0_51], %56 {strides = array<i32>} : memref<8x8x96xf32, #tpu.memory_space<vmem>>, vector<1x8x96xf32>,
    %c5 = arith.constant 5 : index
    %c0_52 = arith.constant 0 : index
    %c0_53 = arith.constant 0 : index
    %57 = vector.load %arg1[%c5, %c0_52, %c0_53] : memref<8x8x32xf32, #tpu.memory_space<vmem>>, vector<1x8x32xf32>
    %58 = vector.shape_cast %57 : vector<1x8x32xf32> to vector<8x32xf32>
    %59 = arith.truncf %58 : vector<8x32xf32> to vector<8x32xbf16>
    %c0_54 = arith.constant 0 : index
    %c0_55 = arith.constant 0 : index
    %60 = vector.load %arg3[%c0_54, %c0_55] : memref<32x96xbf16, #tpu.memory_space<vmem>>, vector<32x96xbf16>
    %cst_56 = arith.constant dense<0.000000e+00> : vector<8x96xf32>
    %61 = tpu.matmul %59, %60, %cst_56 {dimension_numbers = #tpu.dot_dimension_numbers<[1], [0], [0], [1], [0, 0, 1, 1], [], []>} : vector<8x32xbf16>, vector<32x96xbf16>, vector<8x96xf32> -> vector<8x96xf32>
    %c0_57 = arith.constant 0 : index
    %c0_58 = arith.constant 0 : index
    %62 = vector.load %arg5[%c0_57, %c0_58] : memref<1x96xf32, #tpu.memory_space<vmem>>, vector<1x96xf32>
    %63 = vector.broadcast %62 : vector<1x96xf32> to vector<8x96xf32>
    %64 = arith.addf %61, %63 : vector<8x96xf32>
    %c5_59 = arith.constant 5 : index
    %c0_60 = arith.constant 0 : index
    %c0_61 = arith.constant 0 : index
    %65 = vector.load %arg12[%c5_59, %c0_60, %c0_61] : memref<8x8x96xf32, #tpu.memory_space<vmem>>, vector<1x8x96xf32>
    %66 = vector.shape_cast %65 : vector<1x8x96xf32> to vector<8x96xf32>
    %67 = vector.shape_cast %64 : vector<8x96xf32> to vector<1x8x96xf32>
    tpu.vector_store %arg12[%c5_59, %c0_60, %c0_61], %67 {strides = array<i32>} : memref<8x8x96xf32, #tpu.memory_space<vmem>>, vector<1x8x96xf32>,
    %c6 = arith.constant 6 : index
    %c0_62 = arith.constant 0 : index
    %c0_63 = arith.constant 0 : index
    %68 = vector.load %arg1[%c6, %c0_62, %c0_63] : memref<8x8x32xf32, #tpu.memory_space<vmem>>, vector<1x8x32xf32>
    %69 = vector.shape_cast %68 : vector<1x8x32xf32> to vector<8x32xf32>
    %70 = arith.truncf %69 : vector<8x32xf32> to vector<8x32xbf16>
    %c0_64 = arith.constant 0 : index
    %c0_65 = arith.constant 0 : index
    %71 = vector.load %arg3[%c0_64, %c0_65] : memref<32x96xbf16, #tpu.memory_space<vmem>>, vector<32x96xbf16>
    %cst_66 = arith.constant dense<0.000000e+00> : vector<8x96xf32>
    %72 = tpu.matmul %70, %71, %cst_66 {dimension_numbers = #tpu.dot_dimension_numbers<[1], [0], [0], [1], [0, 0, 1, 1], [], []>} : vector<8x32xbf16>, vector<32x96xbf16>, vector<8x96xf32> -> vector<8x96xf32>
    %c0_67 = arith.constant 0 : index
    %c0_68 = arith.constant 0 : index
    %73 = vector.load %arg5[%c0_67, %c0_68] : memref<1x96xf32, #tpu.memory_space<vmem>>, vector<1x96xf32>
    %74 = vector.broadcast %73 : vector<1x96xf32> to vector<8x96xf32>
    %75 = arith.addf %72, %74 : vector<8x96xf32>
    %c6_69 = arith.constant 6 : index
    %c0_70 = arith.constant 0 : index
    %c0_71 = arith.constant 0 : index
    %76 = vector.load %arg12[%c6_69, %c0_70, %c0_71] : memref<8x8x96xf32, #tpu.memory_space<vmem>>, vector<1x8x96xf32>
    %77 = vector.shape_cast %76 : vector<1x8x96xf32> to vector<8x96xf32>
    %78 = vector.shape_cast %75 : vector<8x96xf32> to vector<1x8x96xf32>
    tpu.vector_store %arg12[%c6_69, %c0_70, %c0_71], %78 {strides = array<i32>} : memref<8x8x96xf32, #tpu.memory_space<vmem>>, vector<1x8x96xf32>,
    %c7 = arith.constant 7 : index
    %c0_72 = arith.constant 0 : index
    %c0_73 = arith.constant 0 : index
    %79 = vector.load %arg1[%c7, %c0_72, %c0_73] : memref<8x8x32xf32, #tpu.memory_space<vmem>>, vector<1x8x32xf32>
    %80 = vector.shape_cast %79 : vector<1x8x32xf32> to vector<8x32xf32>
    %81 = arith.truncf %80 : vector<8x32xf32> to vector<8x32xbf16>
    %c0_74 = arith.constant 0 : index
    %c0_75 = arith.constant 0 : index
    %82 = vector.load %arg3[%c0_74, %c0_75] : memref<32x96xbf16, #tpu.memory_space<vmem>>, vector<32x96xbf16>
    %cst_76 = arith.constant dense<0.000000e+00> : vector<8x96xf32>
    %83 = tpu.matmul %81, %82, %cst_76 {dimension_numbers = #tpu.dot_dimension_numbers<[1], [0], [0], [1], [0, 0, 1, 1], [], []>} : vector<8x32xbf16>, vector<32x96xbf16>, vector<8x96xf32> -> vector<8x96xf32>
    %c0_77 = arith.constant 0 : index
    %c0_78 = arith.constant 0 : index
    %84 = vector.load %arg5[%c0_77, %c0_78] : memref<1x96xf32, #tpu.memory_space<vmem>>, vector<1x96xf32>
    %85 = vector.broadcast %84 : vector<1x96xf32> to vector<8x96xf32>
    %86 = arith.addf %83, %85 : vector<8x96xf32>
    %c7_79 = arith.constant 7 : index
    %c0_80 = arith.constant 0 : index
    %c0_81 = arith.constant 0 : index
    %87 = vector.load %arg12[%c7_79, %c0_80, %c0_81] : memref<8x8x96xf32, #tpu.memory_space<vmem>>, vector<1x8x96xf32>
    %88 = vector.shape_cast %87 : vector<1x8x96xf32> to vector<8x96xf32>
    %89 = vector.shape_cast %86 : vector<8x96xf32> to vector<1x8x96xf32>
    tpu.vector_store %arg12[%c7_79, %c0_80, %c0_81], %89 {strides = array<i32>} : memref<8x8x96xf32, #tpu.memory_space<vmem>>, vector<1x8x96xf32>,
    %c0_i32 = arith.constant 0 : i32
    %90 = arith.truncf %1 : vector<8x32xf32> to vector<8x32xbf16>
    %c0_82 = arith.constant 0 : index
    %c0_83 = arith.constant 0 : index
    %91 = vector.load %arg4[%c0_82, %c0_83] : memref<32x96xbf16, #tpu.memory_space<vmem>>, vector<32x96xbf16>
    %cst_84 = arith.constant dense<0.000000e+00> : vector<8x96xf32>
    %92 = tpu.matmul %90, %91, %cst_84 {dimension_numbers = #tpu.dot_dimension_numbers<[1], [0], [0], [1], [0, 0, 1, 1], [], []>} : vector<8x32xbf16>, vector<32x96xbf16>, vector<8x96xf32> -> vector<8x96xf32>
    %93 = arith.index_cast %c0_i32 : i32 to index
    %c0_85 = arith.constant 0 : index
    %c0_86 = arith.constant 0 : index
    %94 = vector.load %arg12[%93, %c0_85, %c0_86] : memref<8x8x96xf32, #tpu.memory_space<vmem>>, vector<1x8x96xf32>
    %95 = vector.shape_cast %94 : vector<1x8x96xf32> to vector<8x96xf32>
    %96 = vector.extract_strided_slice %95 {offsets = [0, 0], sizes = [8, 64], strides = [1, 1]} : vector<8x96xf32> to vector<8x64xf32>
    %97 = vector.extract_strided_slice %92 {offsets = [0, 0], sizes = [8, 64], strides = [1, 1]} : vector<8x96xf32> to vector<8x64xf32>
    %98 = arith.addf %96, %97 : vector<8x64xf32>
    %99 = arith.negf %98 : vector<8x64xf32>
    %100 = math.exp %99 : vector<8x64xf32>
    %cst_87 = arith.constant 1.000000e+00 : f32
    %101 = vector.broadcast %cst_87 : f32 to vector<8x64xf32>
    %102 = arith.addf %101, %100 : vector<8x64xf32>
    %103 = arith.divf %101, %102 : vector<8x64xf32>
    %104 = vector.extract_strided_slice %103 {offsets = [0, 0], sizes = [8, 32], strides = [1, 1]} : vector<8x64xf32> to vector<8x32xf32>
    %105 = vector.extract_strided_slice %103 {offsets = [0, 32], sizes = [8, 32], strides = [1, 1]} : vector<8x64xf32> to vector<8x32xf32>
    %106 = vector.extract_strided_slice %95 {offsets = [0, 64], sizes = [8, 32], strides = [1, 1]} : vector<8x96xf32> to vector<8x32xf32>
    %107 = vector.extract_strided_slice %92 {offsets = [0, 64], sizes = [8, 32], strides = [1, 1]} : vector<8x96xf32> to vector<8x32xf32>
    %c0_88 = arith.constant 0 : index
    %c0_89 = arith.constant 0 : index
    %108 = vector.load %arg6[%c0_88, %c0_89] : memref<1x32xf32, #tpu.memory_space<vmem>>, vector<1x32xf32>
    %109 = vector.broadcast %108 : vector<1x32xf32> to vector<8x32xf32>
    %110 = arith.addf %107, %109 : vector<8x32xf32>
    %111 = arith.mulf %104, %110 : vector<8x32xf32>
    %112 = arith.addf %106, %111 : vector<8x32xf32>
    %113 = math.tanh %112 : vector<8x32xf32>
    %114 = arith.subf %1, %113 : vector<8x32xf32>
    %115 = arith.mulf %105, %114 : vector<8x32xf32>
    %116 = arith.addf %113, %115 : vector<8x32xf32>
    %117 = arith.index_cast %c0_i32 : i32 to index
    %c0_90 = arith.constant 0 : index
    %c0_91 = arith.constant 0 : index
    %118 = vector.load %arg13[%117, %c0_90, %c0_91] : memref<8x8x32xf32, #tpu.memory_space<vmem>>, vector<1x8x32xf32>
    %119 = vector.shape_cast %118 : vector<1x8x32xf32> to vector<8x32xf32>
    %120 = vector.shape_cast %116 : vector<8x32xf32> to vector<1x8x32xf32>
    tpu.vector_store %arg13[%117, %c0_90, %c0_91], %120 {strides = array<i32>} : memref<8x8x32xf32, #tpu.memory_space<vmem>>, vector<1x8x32xf32>,
    %c1_i32 = arith.constant 1 : i32
    %121 = arith.truncf %116 : vector<8x32xf32> to vector<8x32xbf16>
    %c0_92 = arith.constant 0 : index
    %c0_93 = arith.constant 0 : index
    %122 = vector.load %arg4[%c0_92, %c0_93] : memref<32x96xbf16, #tpu.memory_space<vmem>>, vector<32x96xbf16>
    %cst_94 = arith.constant dense<0.000000e+00> : vector<8x96xf32>
    %123 = tpu.matmul %121, %122, %cst_94 {dimension_numbers = #tpu.dot_dimension_numbers<[1], [0], [0], [1], [0, 0, 1, 1], [], []>} : vector<8x32xbf16>, vector<32x96xbf16>, vector<8x96xf32> -> vector<8x96xf32>
    %124 = arith.index_cast %c1_i32 : i32 to index
    %c0_95 = arith.constant 0 : index
    %c0_96 = arith.constant 0 : index
    %125 = vector.load %arg12[%124, %c0_95, %c0_96] : memref<8x8x96xf32, #tpu.memory_space<vmem>>, vector<1x8x96xf32>
    %126 = vector.shape_cast %125 : vector<1x8x96xf32> to vector<8x96xf32>
    %127 = vector.extract_strided_slice %126 {offsets = [0, 0], sizes = [8, 64], strides = [1, 1]} : vector<8x96xf32> to vector<8x64xf32>
    %128 = vector.extract_strided_slice %123 {offsets = [0, 0], sizes = [8, 64], strides = [1, 1]} : vector<8x96xf32> to vector<8x64xf32>
    %129 = arith.addf %127, %128 : vector<8x64xf32>
    %130 = arith.negf %129 : vector<8x64xf32>
    %131 = math.exp %130 : vector<8x64xf32>
    %cst_97 = arith.constant 1.000000e+00 : f32
    %132 = vector.broadcast %cst_97 : f32 to vector<8x64xf32>
    %133 = arith.addf %132, %131 : vector<8x64xf32>
    %134 = arith.divf %132, %133 : vector<8x64xf32>
    %135 = vector.extract_strided_slice %134 {offsets = [0, 0], sizes = [8, 32], strides = [1, 1]} : vector<8x64xf32> to vector<8x32xf32>
    %136 = vector.extract_strided_slice %134 {offsets = [0, 32], sizes = [8, 32], strides = [1, 1]} : vector<8x64xf32> to vector<8x32xf32>
    %137 = vector.extract_strided_slice %126 {offsets = [0, 64], sizes = [8, 32], strides = [1, 1]} : vector<8x96xf32> to vector<8x32xf32>
    %138 = vector.extract_strided_slice %123 {offsets = [0, 64], sizes = [8, 32], strides = [1, 1]} : vector<8x96xf32> to vector<8x32xf32>
    %c0_98 = arith.constant 0 : index
    %c0_99 = arith.constant 0 : index
    %139 = vector.load %arg6[%c0_98, %c0_99] : memref<1x32xf32, #tpu.memory_space<vmem>>, vector<1x32xf32>
    %140 = vector.broadcast %139 : vector<1x32xf32> to vector<8x32xf32>
    %141 = arith.addf %138, %140 : vector<8x32xf32>
    %142 = arith.mulf %135, %141 : vector<8x32xf32>
    %143 = arith.addf %137, %142 : vector<8x32xf32>
    %144 = math.tanh %143 : vector<8x32xf32>
    %145 = arith.subf %116, %144 : vector<8x32xf32>
    %146 = arith.mulf %136, %145 : vector<8x32xf32>
    %147 = arith.addf %144, %146 : vector<8x32xf32>
    %148 = arith.index_cast %c1_i32 : i32 to index
    %c0_100 = arith.constant 0 : index
    %c0_101 = arith.constant 0 : index
    %149 = vector.load %arg13[%148, %c0_100, %c0_101] : memref<8x8x32xf32, #tpu.memory_space<vmem>>, vector<1x8x32xf32>
    %150 = vector.shape_cast %149 : vector<1x8x32xf32> to vector<8x32xf32>
    %151 = vector.shape_cast %147 : vector<8x32xf32> to vector<1x8x32xf32>
    tpu.vector_store %arg13[%148, %c0_100, %c0_101], %151 {strides = array<i32>} : memref<8x8x32xf32, #tpu.memory_space<vmem>>, vector<1x8x32xf32>,
    %c2_i32 = arith.constant 2 : i32
    %152 = arith.truncf %147 : vector<8x32xf32> to vector<8x32xbf16>
    %c0_102 = arith.constant 0 : index
    %c0_103 = arith.constant 0 : index
    %153 = vector.load %arg4[%c0_102, %c0_103] : memref<32x96xbf16, #tpu.memory_space<vmem>>, vector<32x96xbf16>
    %cst_104 = arith.constant dense<0.000000e+00> : vector<8x96xf32>
    %154 = tpu.matmul %152, %153, %cst_104 {dimension_numbers = #tpu.dot_dimension_numbers<[1], [0], [0], [1], [0, 0, 1, 1], [], []>} : vector<8x32xbf16>, vector<32x96xbf16>, vector<8x96xf32> -> vector<8x96xf32>
    %155 = arith.index_cast %c2_i32 : i32 to index
    %c0_105 = arith.constant 0 : index
    %c0_106 = arith.constant 0 : index
    %156 = vector.load %arg12[%155, %c0_105, %c0_106] : memref<8x8x96xf32, #tpu.memory_space<vmem>>, vector<1x8x96xf32>
    %157 = vector.shape_cast %156 : vector<1x8x96xf32> to vector<8x96xf32>
    %158 = vector.extract_strided_slice %157 {offsets = [0, 0], sizes = [8, 64], strides = [1, 1]} : vector<8x96xf32> to vector<8x64xf32>
    %159 = vector.extract_strided_slice %154 {offsets = [0, 0], sizes = [8, 64], strides = [1, 1]} : vector<8x96xf32> to vector<8x64xf32>
    %160 = arith.addf %158, %159 : vector<8x64xf32>
    %161 = arith.negf %160 : vector<8x64xf32>
    %162 = math.exp %161 : vector<8x64xf32>
    %cst_107 = arith.constant 1.000000e+00 : f32
    %163 = vector.broadcast %cst_107 : f32 to vector<8x64xf32>
    %164 = arith.addf %163, %162 : vector<8x64xf32>
    %165 = arith.divf %163, %164 : vector<8x64xf32>
    %166 = vector.extract_strided_slice %165 {offsets = [0, 0], sizes = [8, 32], strides = [1, 1]} : vector<8x64xf32> to vector<8x32xf32>
    %167 = vector.extract_strided_slice %165 {offsets = [0, 32], sizes = [8, 32], strides = [1, 1]} : vector<8x64xf32> to vector<8x32xf32>
    %168 = vector.extract_strided_slice %157 {offsets = [0, 64], sizes = [8, 32], strides = [1, 1]} : vector<8x96xf32> to vector<8x32xf32>
    %169 = vector.extract_strided_slice %154 {offsets = [0, 64], sizes = [8, 32], strides = [1, 1]} : vector<8x96xf32> to vector<8x32xf32>
    %c0_108 = arith.constant 0 : index
    %c0_109 = arith.constant 0 : index
    %170 = vector.load %arg6[%c0_108, %c0_109] : memref<1x32xf32, #tpu.memory_space<vmem>>, vector<1x32xf32>
    %171 = vector.broadcast %170 : vector<1x32xf32> to vector<8x32xf32>
    %172 = arith.addf %169, %171 : vector<8x32xf32>
    %173 = arith.mulf %166, %172 : vector<8x32xf32>
    %174 = arith.addf %168, %173 : vector<8x32xf32>
    %175 = math.tanh %174 : vector<8x32xf32>
    %176 = arith.subf %147, %175 : vector<8x32xf32>
    %177 = arith.mulf %167, %176 : vector<8x32xf32>
    %178 = arith.addf %175, %177 : vector<8x32xf32>
    %179 = arith.index_cast %c2_i32 : i32 to index
    %c0_110 = arith.constant 0 : index
    %c0_111 = arith.constant 0 : index
    %180 = vector.load %arg13[%179, %c0_110, %c0_111] : memref<8x8x32xf32, #tpu.memory_space<vmem>>, vector<1x8x32xf32>
    %181 = vector.shape_cast %180 : vector<1x8x32xf32> to vector<8x32xf32>
    %182 = vector.shape_cast %178 : vector<8x32xf32> to vector<1x8x32xf32>
    tpu.vector_store %arg13[%179, %c0_110, %c0_111], %182 {strides = array<i32>} : memref<8x8x32xf32, #tpu.memory_space<vmem>>, vector<1x8x32xf32>,
    %c3_i32 = arith.constant 3 : i32
    %183 = arith.truncf %178 : vector<8x32xf32> to vector<8x32xbf16>
    %c0_112 = arith.constant 0 : index
    %c0_113 = arith.constant 0 : index
    %184 = vector.load %arg4[%c0_112, %c0_113] : memref<32x96xbf16, #tpu.memory_space<vmem>>, vector<32x96xbf16>
    %cst_114 = arith.constant dense<0.000000e+00> : vector<8x96xf32>
    %185 = tpu.matmul %183, %184, %cst_114 {dimension_numbers = #tpu.dot_dimension_numbers<[1], [0], [0], [1], [0, 0, 1, 1], [], []>} : vector<8x32xbf16>, vector<32x96xbf16>, vector<8x96xf32> -> vector<8x96xf32>
    %186 = arith.index_cast %c3_i32 : i32 to index
    %c0_115 = arith.constant 0 : index
    %c0_116 = arith.constant 0 : index
    %187 = vector.load %arg12[%186, %c0_115, %c0_116] : memref<8x8x96xf32, #tpu.memory_space<vmem>>, vector<1x8x96xf32>
    %188 = vector.shape_cast %187 : vector<1x8x96xf32> to vector<8x96xf32>
    %189 = vector.extract_strided_slice %188 {offsets = [0, 0], sizes = [8, 64], strides = [1, 1]} : vector<8x96xf32> to vector<8x64xf32>
    %190 = vector.extract_strided_slice %185 {offsets = [0, 0], sizes = [8, 64], strides = [1, 1]} : vector<8x96xf32> to vector<8x64xf32>
    %191 = arith.addf %189, %190 : vector<8x64xf32>
    %192 = arith.negf %191 : vector<8x64xf32>
    %193 = math.exp %192 : vector<8x64xf32>
    %cst_117 = arith.constant 1.000000e+00 : f32
    %194 = vector.broadcast %cst_117 : f32 to vector<8x64xf32>
    %195 = arith.addf %194, %193 : vector<8x64xf32>
    %196 = arith.divf %194, %195 : vector<8x64xf32>
    %197 = vector.extract_strided_slice %196 {offsets = [0, 0], sizes = [8, 32], strides = [1, 1]} : vector<8x64xf32> to vector<8x32xf32>
    %198 = vector.extract_strided_slice %196 {offsets = [0, 32], sizes = [8, 32], strides = [1, 1]} : vector<8x64xf32> to vector<8x32xf32>
    %199 = vector.extract_strided_slice %188 {offsets = [0, 64], sizes = [8, 32], strides = [1, 1]} : vector<8x96xf32> to vector<8x32xf32>
    %200 = vector.extract_strided_slice %185 {offsets = [0, 64], sizes = [8, 32], strides = [1, 1]} : vector<8x96xf32> to vector<8x32xf32>
    %c0_118 = arith.constant 0 : index
    %c0_119 = arith.constant 0 : index
    %201 = vector.load %arg6[%c0_118, %c0_119] : memref<1x32xf32, #tpu.memory_space<vmem>>, vector<1x32xf32>
    %202 = vector.broadcast %201 : vector<1x32xf32> to vector<8x32xf32>
    %203 = arith.addf %200, %202 : vector<8x32xf32>
    %204 = arith.mulf %197, %203 : vector<8x32xf32>
    %205 = arith.addf %199, %204 : vector<8x32xf32>
    %206 = math.tanh %205 : vector<8x32xf32>
    %207 = arith.subf %178, %206 : vector<8x32xf32>
    %208 = arith.mulf %198, %207 : vector<8x32xf32>
    %209 = arith.addf %206, %208 : vector<8x32xf32>
    %210 = arith.index_cast %c3_i32 : i32 to index
    %c0_120 = arith.constant 0 : index
    %c0_121 = arith.constant 0 : index
    %211 = vector.load %arg13[%210, %c0_120, %c0_121] : memref<8x8x32xf32, #tpu.memory_space<vmem>>, vector<1x8x32xf32>
    %212 = vector.shape_cast %211 : vector<1x8x32xf32> to vector<8x32xf32>
    %213 = vector.shape_cast %209 : vector<8x32xf32> to vector<1x8x32xf32>
    tpu.vector_store %arg13[%210, %c0_120, %c0_121], %213 {strides = array<i32>} : memref<8x8x32xf32, #tpu.memory_space<vmem>>, vector<1x8x32xf32>,
    %c4_i32 = arith.constant 4 : i32
    %214 = arith.truncf %209 : vector<8x32xf32> to vector<8x32xbf16>
    %c0_122 = arith.constant 0 : index
    %c0_123 = arith.constant 0 : index
    %215 = vector.load %arg4[%c0_122, %c0_123] : memref<32x96xbf16, #tpu.memory_space<vmem>>, vector<32x96xbf16>
    %cst_124 = arith.constant dense<0.000000e+00> : vector<8x96xf32>
    %216 = tpu.matmul %214, %215, %cst_124 {dimension_numbers = #tpu.dot_dimension_numbers<[1], [0], [0], [1], [0, 0, 1, 1], [], []>} : vector<8x32xbf16>, vector<32x96xbf16>, vector<8x96xf32> -> vector<8x96xf32>
    %217 = arith.index_cast %c4_i32 : i32 to index
    %c0_125 = arith.constant 0 : index
    %c0_126 = arith.constant 0 : index
    %218 = vector.load %arg12[%217, %c0_125, %c0_126] : memref<8x8x96xf32, #tpu.memory_space<vmem>>, vector<1x8x96xf32>
    %219 = vector.shape_cast %218 : vector<1x8x96xf32> to vector<8x96xf32>
    %220 = vector.extract_strided_slice %219 {offsets = [0, 0], sizes = [8, 64], strides = [1, 1]} : vector<8x96xf32> to vector<8x64xf32>
    %221 = vector.extract_strided_slice %216 {offsets = [0, 0], sizes = [8, 64], strides = [1, 1]} : vector<8x96xf32> to vector<8x64xf32>
    %222 = arith.addf %220, %221 : vector<8x64xf32>
    %223 = arith.negf %222 : vector<8x64xf32>
    %224 = math.exp %223 : vector<8x64xf32>
    %cst_127 = arith.constant 1.000000e+00 : f32
    %225 = vector.broadcast %cst_127 : f32 to vector<8x64xf32>
    %226 = arith.addf %225, %224 : vector<8x64xf32>
    %227 = arith.divf %225, %226 : vector<8x64xf32>
    %228 = vector.extract_strided_slice %227 {offsets = [0, 0], sizes = [8, 32], strides = [1, 1]} : vector<8x64xf32> to vector<8x32xf32>
    %229 = vector.extract_strided_slice %227 {offsets = [0, 32], sizes = [8, 32], strides = [1, 1]} : vector<8x64xf32> to vector<8x32xf32>
    %230 = vector.extract_strided_slice %219 {offsets = [0, 64], sizes = [8, 32], strides = [1, 1]} : vector<8x96xf32> to vector<8x32xf32>
    %231 = vector.extract_strided_slice %216 {offsets = [0, 64], sizes = [8, 32], strides = [1, 1]} : vector<8x96xf32> to vector<8x32xf32>
    %c0_128 = arith.constant 0 : index
    %c0_129 = arith.constant 0 : index
    %232 = vector.load %arg6[%c0_128, %c0_129] : memref<1x32xf32, #tpu.memory_space<vmem>>, vector<1x32xf32>
    %233 = vector.broadcast %232 : vector<1x32xf32> to vector<8x32xf32>
    %234 = arith.addf %231, %233 : vector<8x32xf32>
    %235 = arith.mulf %228, %234 : vector<8x32xf32>
    %236 = arith.addf %230, %235 : vector<8x32xf32>
    %237 = math.tanh %236 : vector<8x32xf32>
    %238 = arith.subf %209, %237 : vector<8x32xf32>
    %239 = arith.mulf %229, %238 : vector<8x32xf32>
    %240 = arith.addf %237, %239 : vector<8x32xf32>
    %241 = arith.index_cast %c4_i32 : i32 to index
    %c0_130 = arith.constant 0 : index
    %c0_131 = arith.constant 0 : index
    %242 = vector.load %arg13[%241, %c0_130, %c0_131] : memref<8x8x32xf32, #tpu.memory_space<vmem>>, vector<1x8x32xf32>
    %243 = vector.shape_cast %242 : vector<1x8x32xf32> to vector<8x32xf32>
    %244 = vector.shape_cast %240 : vector<8x32xf32> to vector<1x8x32xf32>
    tpu.vector_store %arg13[%241, %c0_130, %c0_131], %244 {strides = array<i32>} : memref<8x8x32xf32, #tpu.memory_space<vmem>>, vector<1x8x32xf32>,
    %c5_i32 = arith.constant 5 : i32
    %245 = arith.truncf %240 : vector<8x32xf32> to vector<8x32xbf16>
    %c0_132 = arith.constant 0 : index
    %c0_133 = arith.constant 0 : index
    %246 = vector.load %arg4[%c0_132, %c0_133] : memref<32x96xbf16, #tpu.memory_space<vmem>>, vector<32x96xbf16>
    %cst_134 = arith.constant dense<0.000000e+00> : vector<8x96xf32>
    %247 = tpu.matmul %245, %246, %cst_134 {dimension_numbers = #tpu.dot_dimension_numbers<[1], [0], [0], [1], [0, 0, 1, 1], [], []>} : vector<8x32xbf16>, vector<32x96xbf16>, vector<8x96xf32> -> vector<8x96xf32>
    %248 = arith.index_cast %c5_i32 : i32 to index
    %c0_135 = arith.constant 0 : index
    %c0_136 = arith.constant 0 : index
    %249 = vector.load %arg12[%248, %c0_135, %c0_136] : memref<8x8x96xf32, #tpu.memory_space<vmem>>, vector<1x8x96xf32>
    %250 = vector.shape_cast %249 : vector<1x8x96xf32> to vector<8x96xf32>
    %251 = vector.extract_strided_slice %250 {offsets = [0, 0], sizes = [8, 64], strides = [1, 1]} : vector<8x96xf32> to vector<8x64xf32>
    %252 = vector.extract_strided_slice %247 {offsets = [0, 0], sizes = [8, 64], strides = [1, 1]} : vector<8x96xf32> to vector<8x64xf32>
    %253 = arith.addf %251, %252 : vector<8x64xf32>
    %254 = arith.negf %253 : vector<8x64xf32>
    %255 = math.exp %254 : vector<8x64xf32>
    %cst_137 = arith.constant 1.000000e+00 : f32
    %256 = vector.broadcast %cst_137 : f32 to vector<8x64xf32>
    %257 = arith.addf %256, %255 : vector<8x64xf32>
    %258 = arith.divf %256, %257 : vector<8x64xf32>
    %259 = vector.extract_strided_slice %258 {offsets = [0, 0], sizes = [8, 32], strides = [1, 1]} : vector<8x64xf32> to vector<8x32xf32>
    %260 = vector.extract_strided_slice %258 {offsets = [0, 32], sizes = [8, 32], strides = [1, 1]} : vector<8x64xf32> to vector<8x32xf32>
    %261 = vector.extract_strided_slice %250 {offsets = [0, 64], sizes = [8, 32], strides = [1, 1]} : vector<8x96xf32> to vector<8x32xf32>
    %262 = vector.extract_strided_slice %247 {offsets = [0, 64], sizes = [8, 32], strides = [1, 1]} : vector<8x96xf32> to vector<8x32xf32>
    %c0_138 = arith.constant 0 : index
    %c0_139 = arith.constant 0 : index
    %263 = vector.load %arg6[%c0_138, %c0_139] : memref<1x32xf32, #tpu.memory_space<vmem>>, vector<1x32xf32>
    %264 = vector.broadcast %263 : vector<1x32xf32> to vector<8x32xf32>
    %265 = arith.addf %262, %264 : vector<8x32xf32>
    %266 = arith.mulf %259, %265 : vector<8x32xf32>
    %267 = arith.addf %261, %266 : vector<8x32xf32>
    %268 = math.tanh %267 : vector<8x32xf32>
    %269 = arith.subf %240, %268 : vector<8x32xf32>
    %270 = arith.mulf %260, %269 : vector<8x32xf32>
    %271 = arith.addf %268, %270 : vector<8x32xf32>
    %272 = arith.index_cast %c5_i32 : i32 to index
    %c0_140 = arith.constant 0 : index
    %c0_141 = arith.constant 0 : index
    %273 = vector.load %arg13[%272, %c0_140, %c0_141] : memref<8x8x32xf32, #tpu.memory_space<vmem>>, vector<1x8x32xf32>
    %274 = vector.shape_cast %273 : vector<1x8x32xf32> to vector<8x32xf32>
    %275 = vector.shape_cast %271 : vector<8x32xf32> to vector<1x8x32xf32>
    tpu.vector_store %arg13[%272, %c0_140, %c0_141], %275 {strides = array<i32>} : memref<8x8x32xf32, #tpu.memory_space<vmem>>, vector<1x8x32xf32>,
    %c6_i32 = arith.constant 6 : i32
    %276 = arith.truncf %271 : vector<8x32xf32> to vector<8x32xbf16>
    %c0_142 = arith.constant 0 : index
    %c0_143 = arith.constant 0 : index
    %277 = vector.load %arg4[%c0_142, %c0_143] : memref<32x96xbf16, #tpu.memory_space<vmem>>, vector<32x96xbf16>
    %cst_144 = arith.constant dense<0.000000e+00> : vector<8x96xf32>
    %278 = tpu.matmul %276, %277, %cst_144 {dimension_numbers = #tpu.dot_dimension_numbers<[1], [0], [0], [1], [0, 0, 1, 1], [], []>} : vector<8x32xbf16>, vector<32x96xbf16>, vector<8x96xf32> -> vector<8x96xf32>
    %279 = arith.index_cast %c6_i32 : i32 to index
    %c0_145 = arith.constant 0 : index
    %c0_146 = arith.constant 0 : index
    %280 = vector.load %arg12[%279, %c0_145, %c0_146] : memref<8x8x96xf32, #tpu.memory_space<vmem>>, vector<1x8x96xf32>
    %281 = vector.shape_cast %280 : vector<1x8x96xf32> to vector<8x96xf32>
    %282 = vector.extract_strided_slice %281 {offsets = [0, 0], sizes = [8, 64], strides = [1, 1]} : vector<8x96xf32> to vector<8x64xf32>
    %283 = vector.extract_strided_slice %278 {offsets = [0, 0], sizes = [8, 64], strides = [1, 1]} : vector<8x96xf32> to vector<8x64xf32>
    %284 = arith.addf %282, %283 : vector<8x64xf32>
    %285 = arith.negf %284 : vector<8x64xf32>
    %286 = math.exp %285 : vector<8x64xf32>
    %cst_147 = arith.constant 1.000000e+00 : f32
    %287 = vector.broadcast %cst_147 : f32 to vector<8x64xf32>
    %288 = arith.addf %287, %286 : vector<8x64xf32>
    %289 = arith.divf %287, %288 : vector<8x64xf32>
    %290 = vector.extract_strided_slice %289 {offsets = [0, 0], sizes = [8, 32], strides = [1, 1]} : vector<8x64xf32> to vector<8x32xf32>
    %291 = vector.extract_strided_slice %289 {offsets = [0, 32], sizes = [8, 32], strides = [1, 1]} : vector<8x64xf32> to vector<8x32xf32>
    %292 = vector.extract_strided_slice %281 {offsets = [0, 64], sizes = [8, 32], strides = [1, 1]} : vector<8x96xf32> to vector<8x32xf32>
    %293 = vector.extract_strided_slice %278 {offsets = [0, 64], sizes = [8, 32], strides = [1, 1]} : vector<8x96xf32> to vector<8x32xf32>
    %c0_148 = arith.constant 0 : index
    %c0_149 = arith.constant 0 : index
    %294 = vector.load %arg6[%c0_148, %c0_149] : memref<1x32xf32, #tpu.memory_space<vmem>>, vector<1x32xf32>
    %295 = vector.broadcast %294 : vector<1x32xf32> to vector<8x32xf32>
    %296 = arith.addf %293, %295 : vector<8x32xf32>
    %297 = arith.mulf %290, %296 : vector<8x32xf32>
    %298 = arith.addf %292, %297 : vector<8x32xf32>
    %299 = math.tanh %298 : vector<8x32xf32>
    %300 = arith.subf %271, %299 : vector<8x32xf32>
    %301 = arith.mulf %291, %300 : vector<8x32xf32>
    %302 = arith.addf %299, %301 : vector<8x32xf32>
    %303 = arith.index_cast %c6_i32 : i32 to index
    %c0_150 = arith.constant 0 : index
    %c0_151 = arith.constant 0 : index
    %304 = vector.load %arg13[%303, %c0_150, %c0_151] : memref<8x8x32xf32, #tpu.memory_space<vmem>>, vector<1x8x32xf32>
    %305 = vector.shape_cast %304 : vector<1x8x32xf32> to vector<8x32xf32>
    %306 = vector.shape_cast %302 : vector<8x32xf32> to vector<1x8x32xf32>
    tpu.vector_store %arg13[%303, %c0_150, %c0_151], %306 {strides = array<i32>} : memref<8x8x32xf32, #tpu.memory_space<vmem>>, vector<1x8x32xf32>,
    %c7_i32 = arith.constant 7 : i32
    %307 = arith.truncf %302 : vector<8x32xf32> to vector<8x32xbf16>
    %c0_152 = arith.constant 0 : index
    %c0_153 = arith.constant 0 : index
    %308 = vector.load %arg4[%c0_152, %c0_153] : memref<32x96xbf16, #tpu.memory_space<vmem>>, vector<32x96xbf16>
    %cst_154 = arith.constant dense<0.000000e+00> : vector<8x96xf32>
    %309 = tpu.matmul %307, %308, %cst_154 {dimension_numbers = #tpu.dot_dimension_numbers<[1], [0], [0], [1], [0, 0, 1, 1], [], []>} : vector<8x32xbf16>, vector<32x96xbf16>, vector<8x96xf32> -> vector<8x96xf32>
    %310 = arith.index_cast %c7_i32 : i32 to index
    %c0_155 = arith.constant 0 : index
    %c0_156 = arith.constant 0 : index
    %311 = vector.load %arg12[%310, %c0_155, %c0_156] : memref<8x8x96xf32, #tpu.memory_space<vmem>>, vector<1x8x96xf32>
    %312 = vector.shape_cast %311 : vector<1x8x96xf32> to vector<8x96xf32>
    %313 = vector.extract_strided_slice %312 {offsets = [0, 0], sizes = [8, 64], strides = [1, 1]} : vector<8x96xf32> to vector<8x64xf32>
    %314 = vector.extract_strided_slice %309 {offsets = [0, 0], sizes = [8, 64], strides = [1, 1]} : vector<8x96xf32> to vector<8x64xf32>
    %315 = arith.addf %313, %314 : vector<8x64xf32>
    %316 = arith.negf %315 : vector<8x64xf32>
    %317 = math.exp %316 : vector<8x64xf32>
    %cst_157 = arith.constant 1.000000e+00 : f32
    %318 = vector.broadcast %cst_157 : f32 to vector<8x64xf32>
    %319 = arith.addf %318, %317 : vector<8x64xf32>
    %320 = arith.divf %318, %319 : vector<8x64xf32>
    %321 = vector.extract_strided_slice %320 {offsets = [0, 0], sizes = [8, 32], strides = [1, 1]} : vector<8x64xf32> to vector<8x32xf32>
    %322 = vector.extract_strided_slice %320 {offsets = [0, 32], sizes = [8, 32], strides = [1, 1]} : vector<8x64xf32> to vector<8x32xf32>
    %323 = vector.extract_strided_slice %312 {offsets = [0, 64], sizes = [8, 32], strides = [1, 1]} : vector<8x96xf32> to vector<8x32xf32>
    %324 = vector.extract_strided_slice %309 {offsets = [0, 64], sizes = [8, 32], strides = [1, 1]} : vector<8x96xf32> to vector<8x32xf32>
    %c0_158 = arith.constant 0 : index
    %c0_159 = arith.constant 0 : index
    %325 = vector.load %arg6[%c0_158, %c0_159] : memref<1x32xf32, #tpu.memory_space<vmem>>, vector<1x32xf32>
    %326 = vector.broadcast %325 : vector<1x32xf32> to vector<8x32xf32>
    %327 = arith.addf %324, %326 : vector<8x32xf32>
    %328 = arith.mulf %321, %327 : vector<8x32xf32>
    %329 = arith.addf %323, %328 : vector<8x32xf32>
    %330 = math.tanh %329 : vector<8x32xf32>
    %331 = arith.subf %302, %330 : vector<8x32xf32>
    %332 = arith.mulf %322, %331 : vector<8x32xf32>
    %333 = arith.addf %330, %332 : vector<8x32xf32>
    %334 = arith.index_cast %c7_i32 : i32 to index
    %c0_160 = arith.constant 0 : index
    %c0_161 = arith.constant 0 : index
    %335 = vector.load %arg13[%334, %c0_160, %c0_161] : memref<8x8x32xf32, #tpu.memory_space<vmem>>, vector<1x8x32xf32>
    %336 = vector.shape_cast %335 : vector<1x8x32xf32> to vector<8x32xf32>
    %337 = vector.shape_cast %333 : vector<8x32xf32> to vector<1x8x32xf32>
    tpu.vector_store %arg13[%334, %c0_160, %c0_161], %337 {strides = array<i32>} : memref<8x8x32xf32, #tpu.memory_space<vmem>>, vector<1x8x32xf32>,
    %c8_i32 = arith.constant 8 : i32
    %c0_162 = arith.constant 0 : index
    %c0_163 = arith.constant 0 : index
    %c0_164 = arith.constant 0 : index
    %338 = vector.load %arg13[%c0_162, %c0_163, %c0_164] : memref<8x8x32xf32, #tpu.memory_space<vmem>>, vector<1x8x32xf32>
    %339 = vector.shape_cast %338 : vector<1x8x32xf32> to vector<8x32xf32>
    %340 = arith.truncf %339 : vector<8x32xf32> to vector<8x32xbf16>
    %c0_165 = arith.constant 0 : index
    %c0_166 = arith.constant 0 : index
    %341 = vector.load %arg7[%c0_165, %c0_166] : memref<32x96xbf16, #tpu.memory_space<vmem>>, vector<32x96xbf16>
    %cst_167 = arith.constant dense<0.000000e+00> : vector<8x96xf32>
    %342 = tpu.matmul %340, %341, %cst_167 {dimension_numbers = #tpu.dot_dimension_numbers<[1], [0], [0], [1], [0, 0, 1, 1], [], []>} : vector<8x32xbf16>, vector<32x96xbf16>, vector<8x96xf32> -> vector<8x96xf32>
    %c0_168 = arith.constant 0 : index
    %c0_169 = arith.constant 0 : index
    %343 = vector.load %arg9[%c0_168, %c0_169] : memref<1x96xf32, #tpu.memory_space<vmem>>, vector<1x96xf32>
    %344 = vector.broadcast %343 : vector<1x96xf32> to vector<8x96xf32>
    %345 = arith.addf %342, %344 : vector<8x96xf32>
    %c0_170 = arith.constant 0 : index
    %c0_171 = arith.constant 0 : index
    %c0_172 = arith.constant 0 : index
    %346 = vector.load %arg12[%c0_170, %c0_171, %c0_172] : memref<8x8x96xf32, #tpu.memory_space<vmem>>, vector<1x8x96xf32>
    %347 = vector.shape_cast %346 : vector<1x8x96xf32> to vector<8x96xf32>
    %348 = vector.shape_cast %345 : vector<8x96xf32> to vector<1x8x96xf32>
    tpu.vector_store %arg12[%c0_170, %c0_171, %c0_172], %348 {strides = array<i32>} : memref<8x8x96xf32, #tpu.memory_space<vmem>>, vector<1x8x96xf32>,
    %c1_173 = arith.constant 1 : index
    %c0_174 = arith.constant 0 : index
    %c0_175 = arith.constant 0 : index
    %349 = vector.load %arg13[%c1_173, %c0_174, %c0_175] : memref<8x8x32xf32, #tpu.memory_space<vmem>>, vector<1x8x32xf32>
    %350 = vector.shape_cast %349 : vector<1x8x32xf32> to vector<8x32xf32>
    %351 = arith.truncf %350 : vector<8x32xf32> to vector<8x32xbf16>
    %c0_176 = arith.constant 0 : index
    %c0_177 = arith.constant 0 : index
    %352 = vector.load %arg7[%c0_176, %c0_177] : memref<32x96xbf16, #tpu.memory_space<vmem>>, vector<32x96xbf16>
    %cst_178 = arith.constant dense<0.000000e+00> : vector<8x96xf32>
    %353 = tpu.matmul %351, %352, %cst_178 {dimension_numbers = #tpu.dot_dimension_numbers<[1], [0], [0], [1], [0, 0, 1, 1], [], []>} : vector<8x32xbf16>, vector<32x96xbf16>, vector<8x96xf32> -> vector<8x96xf32>
    %c0_179 = arith.constant 0 : index
    %c0_180 = arith.constant 0 : index
    %354 = vector.load %arg9[%c0_179, %c0_180] : memref<1x96xf32, #tpu.memory_space<vmem>>, vector<1x96xf32>
    %355 = vector.broadcast %354 : vector<1x96xf32> to vector<8x96xf32>
    %356 = arith.addf %353, %355 : vector<8x96xf32>
    %c1_181 = arith.constant 1 : index
    %c0_182 = arith.constant 0 : index
    %c0_183 = arith.constant 0 : index
    %357 = vector.load %arg12[%c1_181, %c0_182, %c0_183] : memref<8x8x96xf32, #tpu.memory_space<vmem>>, vector<1x8x96xf32>
    %358 = vector.shape_cast %357 : vector<1x8x96xf32> to vector<8x96xf32>
    %359 = vector.shape_cast %356 : vector<8x96xf32> to vector<1x8x96xf32>
    tpu.vector_store %arg12[%c1_181, %c0_182, %c0_183], %359 {strides = array<i32>} : memref<8x8x96xf32, #tpu.memory_space<vmem>>, vector<1x8x96xf32>,
    %c2_184 = arith.constant 2 : index
    %c0_185 = arith.constant 0 : index
    %c0_186 = arith.constant 0 : index
    %360 = vector.load %arg13[%c2_184, %c0_185, %c0_186] : memref<8x8x32xf32, #tpu.memory_space<vmem>>, vector<1x8x32xf32>
    %361 = vector.shape_cast %360 : vector<1x8x32xf32> to vector<8x32xf32>
    %362 = arith.truncf %361 : vector<8x32xf32> to vector<8x32xbf16>
    %c0_187 = arith.constant 0 : index
    %c0_188 = arith.constant 0 : index
    %363 = vector.load %arg7[%c0_187, %c0_188] : memref<32x96xbf16, #tpu.memory_space<vmem>>, vector<32x96xbf16>
    %cst_189 = arith.constant dense<0.000000e+00> : vector<8x96xf32>
    %364 = tpu.matmul %362, %363, %cst_189 {dimension_numbers = #tpu.dot_dimension_numbers<[1], [0], [0], [1], [0, 0, 1, 1], [], []>} : vector<8x32xbf16>, vector<32x96xbf16>, vector<8x96xf32> -> vector<8x96xf32>
    %c0_190 = arith.constant 0 : index
    %c0_191 = arith.constant 0 : index
    %365 = vector.load %arg9[%c0_190, %c0_191] : memref<1x96xf32, #tpu.memory_space<vmem>>, vector<1x96xf32>
    %366 = vector.broadcast %365 : vector<1x96xf32> to vector<8x96xf32>
    %367 = arith.addf %364, %366 : vector<8x96xf32>
    %c2_192 = arith.constant 2 : index
    %c0_193 = arith.constant 0 : index
    %c0_194 = arith.constant 0 : index
    %368 = vector.load %arg12[%c2_192, %c0_193, %c0_194] : memref<8x8x96xf32, #tpu.memory_space<vmem>>, vector<1x8x96xf32>
    %369 = vector.shape_cast %368 : vector<1x8x96xf32> to vector<8x96xf32>
    %370 = vector.shape_cast %367 : vector<8x96xf32> to vector<1x8x96xf32>
    tpu.vector_store %arg12[%c2_192, %c0_193, %c0_194], %370 {strides = array<i32>} : memref<8x8x96xf32, #tpu.memory_space<vmem>>, vector<1x8x96xf32>,
    %c3_195 = arith.constant 3 : index
    %c0_196 = arith.constant 0 : index
    %c0_197 = arith.constant 0 : index
    %371 = vector.load %arg13[%c3_195, %c0_196, %c0_197] : memref<8x8x32xf32, #tpu.memory_space<vmem>>, vector<1x8x32xf32>
    %372 = vector.shape_cast %371 : vector<1x8x32xf32> to vector<8x32xf32>
    %373 = arith.truncf %372 : vector<8x32xf32> to vector<8x32xbf16>
    %c0_198 = arith.constant 0 : index
    %c0_199 = arith.constant 0 : index
    %374 = vector.load %arg7[%c0_198, %c0_199] : memref<32x96xbf16, #tpu.memory_space<vmem>>, vector<32x96xbf16>
    %cst_200 = arith.constant dense<0.000000e+00> : vector<8x96xf32>
    %375 = tpu.matmul %373, %374, %cst_200 {dimension_numbers = #tpu.dot_dimension_numbers<[1], [0], [0], [1], [0, 0, 1, 1], [], []>} : vector<8x32xbf16>, vector<32x96xbf16>, vector<8x96xf32> -> vector<8x96xf32>
    %c0_201 = arith.constant 0 : index
    %c0_202 = arith.constant 0 : index
    %376 = vector.load %arg9[%c0_201, %c0_202] : memref<1x96xf32, #tpu.memory_space<vmem>>, vector<1x96xf32>
    %377 = vector.broadcast %376 : vector<1x96xf32> to vector<8x96xf32>
    %378 = arith.addf %375, %377 : vector<8x96xf32>
    %c3_203 = arith.constant 3 : index
    %c0_204 = arith.constant 0 : index
    %c0_205 = arith.constant 0 : index
    %379 = vector.load %arg12[%c3_203, %c0_204, %c0_205] : memref<8x8x96xf32, #tpu.memory_space<vmem>>, vector<1x8x96xf32>
    %380 = vector.shape_cast %379 : vector<1x8x96xf32> to vector<8x96xf32>
    %381 = vector.shape_cast %378 : vector<8x96xf32> to vector<1x8x96xf32>
    tpu.vector_store %arg12[%c3_203, %c0_204, %c0_205], %381 {strides = array<i32>} : memref<8x8x96xf32, #tpu.memory_space<vmem>>, vector<1x8x96xf32>,
    %c4_206 = arith.constant 4 : index
    %c0_207 = arith.constant 0 : index
    %c0_208 = arith.constant 0 : index
    %382 = vector.load %arg13[%c4_206, %c0_207, %c0_208] : memref<8x8x32xf32, #tpu.memory_space<vmem>>, vector<1x8x32xf32>
    %383 = vector.shape_cast %382 : vector<1x8x32xf32> to vector<8x32xf32>
    %384 = arith.truncf %383 : vector<8x32xf32> to vector<8x32xbf16>
    %c0_209 = arith.constant 0 : index
    %c0_210 = arith.constant 0 : index
    %385 = vector.load %arg7[%c0_209, %c0_210] : memref<32x96xbf16, #tpu.memory_space<vmem>>, vector<32x96xbf16>
    %cst_211 = arith.constant dense<0.000000e+00> : vector<8x96xf32>
    %386 = tpu.matmul %384, %385, %cst_211 {dimension_numbers = #tpu.dot_dimension_numbers<[1], [0], [0], [1], [0, 0, 1, 1], [], []>} : vector<8x32xbf16>, vector<32x96xbf16>, vector<8x96xf32> -> vector<8x96xf32>
    %c0_212 = arith.constant 0 : index
    %c0_213 = arith.constant 0 : index
    %387 = vector.load %arg9[%c0_212, %c0_213] : memref<1x96xf32, #tpu.memory_space<vmem>>, vector<1x96xf32>
    %388 = vector.broadcast %387 : vector<1x96xf32> to vector<8x96xf32>
    %389 = arith.addf %386, %388 : vector<8x96xf32>
    %c4_214 = arith.constant 4 : index
    %c0_215 = arith.constant 0 : index
    %c0_216 = arith.constant 0 : index
    %390 = vector.load %arg12[%c4_214, %c0_215, %c0_216] : memref<8x8x96xf32, #tpu.memory_space<vmem>>, vector<1x8x96xf32>
    %391 = vector.shape_cast %390 : vector<1x8x96xf32> to vector<8x96xf32>
    %392 = vector.shape_cast %389 : vector<8x96xf32> to vector<1x8x96xf32>
    tpu.vector_store %arg12[%c4_214, %c0_215, %c0_216], %392 {strides = array<i32>} : memref<8x8x96xf32, #tpu.memory_space<vmem>>, vector<1x8x96xf32>,
    %c5_217 = arith.constant 5 : index
    %c0_218 = arith.constant 0 : index
    %c0_219 = arith.constant 0 : index
    %393 = vector.load %arg13[%c5_217, %c0_218, %c0_219] : memref<8x8x32xf32, #tpu.memory_space<vmem>>, vector<1x8x32xf32>
    %394 = vector.shape_cast %393 : vector<1x8x32xf32> to vector<8x32xf32>
    %395 = arith.truncf %394 : vector<8x32xf32> to vector<8x32xbf16>
    %c0_220 = arith.constant 0 : index
    %c0_221 = arith.constant 0 : index
    %396 = vector.load %arg7[%c0_220, %c0_221] : memref<32x96xbf16, #tpu.memory_space<vmem>>, vector<32x96xbf16>
    %cst_222 = arith.constant dense<0.000000e+00> : vector<8x96xf32>
    %397 = tpu.matmul %395, %396, %cst_222 {dimension_numbers = #tpu.dot_dimension_numbers<[1], [0], [0], [1], [0, 0, 1, 1], [], []>} : vector<8x32xbf16>, vector<32x96xbf16>, vector<8x96xf32> -> vector<8x96xf32>
    %c0_223 = arith.constant 0 : index
    %c0_224 = arith.constant 0 : index
    %398 = vector.load %arg9[%c0_223, %c0_224] : memref<1x96xf32, #tpu.memory_space<vmem>>, vector<1x96xf32>
    %399 = vector.broadcast %398 : vector<1x96xf32> to vector<8x96xf32>
    %400 = arith.addf %397, %399 : vector<8x96xf32>
    %c5_225 = arith.constant 5 : index
    %c0_226 = arith.constant 0 : index
    %c0_227 = arith.constant 0 : index
    %401 = vector.load %arg12[%c5_225, %c0_226, %c0_227] : memref<8x8x96xf32, #tpu.memory_space<vmem>>, vector<1x8x96xf32>
    %402 = vector.shape_cast %401 : vector<1x8x96xf32> to vector<8x96xf32>
    %403 = vector.shape_cast %400 : vector<8x96xf32> to vector<1x8x96xf32>
    tpu.vector_store %arg12[%c5_225, %c0_226, %c0_227], %403 {strides = array<i32>} : memref<8x8x96xf32, #tpu.memory_space<vmem>>, vector<1x8x96xf32>,
    %c6_228 = arith.constant 6 : index
    %c0_229 = arith.constant 0 : index
    %c0_230 = arith.constant 0 : index
    %404 = vector.load %arg13[%c6_228, %c0_229, %c0_230] : memref<8x8x32xf32, #tpu.memory_space<vmem>>, vector<1x8x32xf32>
    %405 = vector.shape_cast %404 : vector<1x8x32xf32> to vector<8x32xf32>
    %406 = arith.truncf %405 : vector<8x32xf32> to vector<8x32xbf16>
    %c0_231 = arith.constant 0 : index
    %c0_232 = arith.constant 0 : index
    %407 = vector.load %arg7[%c0_231, %c0_232] : memref<32x96xbf16, #tpu.memory_space<vmem>>, vector<32x96xbf16>
    %cst_233 = arith.constant dense<0.000000e+00> : vector<8x96xf32>
    %408 = tpu.matmul %406, %407, %cst_233 {dimension_numbers = #tpu.dot_dimension_numbers<[1], [0], [0], [1], [0, 0, 1, 1], [], []>} : vector<8x32xbf16>, vector<32x96xbf16>, vector<8x96xf32> -> vector<8x96xf32>
    %c0_234 = arith.constant 0 : index
    %c0_235 = arith.constant 0 : index
    %409 = vector.load %arg9[%c0_234, %c0_235] : memref<1x96xf32, #tpu.memory_space<vmem>>, vector<1x96xf32>
    %410 = vector.broadcast %409 : vector<1x96xf32> to vector<8x96xf32>
    %411 = arith.addf %408, %410 : vector<8x96xf32>
    %c6_236 = arith.constant 6 : index
    %c0_237 = arith.constant 0 : index
    %c0_238 = arith.constant 0 : index
    %412 = vector.load %arg12[%c6_236, %c0_237, %c0_238] : memref<8x8x96xf32, #tpu.memory_space<vmem>>, vector<1x8x96xf32>
    %413 = vector.shape_cast %412 : vector<1x8x96xf32> to vector<8x96xf32>
    %414 = vector.shape_cast %411 : vector<8x96xf32> to vector<1x8x96xf32>
    tpu.vector_store %arg12[%c6_236, %c0_237, %c0_238], %414 {strides = array<i32>} : memref<8x8x96xf32, #tpu.memory_space<vmem>>, vector<1x8x96xf32>,
    %c7_239 = arith.constant 7 : index
    %c0_240 = arith.constant 0 : index
    %c0_241 = arith.constant 0 : index
    %415 = vector.load %arg13[%c7_239, %c0_240, %c0_241] : memref<8x8x32xf32, #tpu.memory_space<vmem>>, vector<1x8x32xf32>
    %416 = vector.shape_cast %415 : vector<1x8x32xf32> to vector<8x32xf32>
    %417 = arith.truncf %416 : vector<8x32xf32> to vector<8x32xbf16>
    %c0_242 = arith.constant 0 : index
    %c0_243 = arith.constant 0 : index
    %418 = vector.load %arg7[%c0_242, %c0_243] : memref<32x96xbf16, #tpu.memory_space<vmem>>, vector<32x96xbf16>
    %cst_244 = arith.constant dense<0.000000e+00> : vector<8x96xf32>
    %419 = tpu.matmul %417, %418, %cst_244 {dimension_numbers = #tpu.dot_dimension_numbers<[1], [0], [0], [1], [0, 0, 1, 1], [], []>} : vector<8x32xbf16>, vector<32x96xbf16>, vector<8x96xf32> -> vector<8x96xf32>
    %c0_245 = arith.constant 0 : index
    %c0_246 = arith.constant 0 : index
    %420 = vector.load %arg9[%c0_245, %c0_246] : memref<1x96xf32, #tpu.memory_space<vmem>>, vector<1x96xf32>
    %421 = vector.broadcast %420 : vector<1x96xf32> to vector<8x96xf32>
    %422 = arith.addf %419, %421 : vector<8x96xf32>
    %c7_247 = arith.constant 7 : index
    %c0_248 = arith.constant 0 : index
    %c0_249 = arith.constant 0 : index
    %423 = vector.load %arg12[%c7_247, %c0_248, %c0_249] : memref<8x8x96xf32, #tpu.memory_space<vmem>>, vector<1x8x96xf32>
    %424 = vector.shape_cast %423 : vector<1x8x96xf32> to vector<8x96xf32>
    %425 = vector.shape_cast %422 : vector<8x96xf32> to vector<1x8x96xf32>
    tpu.vector_store %arg12[%c7_247, %c0_248, %c0_249], %425 {strides = array<i32>} : memref<8x8x96xf32, #tpu.memory_space<vmem>>, vector<1x8x96xf32>,
    %c0_i32_250 = arith.constant 0 : i32
    %426 = arith.truncf %1 : vector<8x32xf32> to vector<8x32xbf16>
    %c0_251 = arith.constant 0 : index
    %c0_252 = arith.constant 0 : index
    %427 = vector.load %arg8[%c0_251, %c0_252] : memref<32x96xbf16, #tpu.memory_space<vmem>>, vector<32x96xbf16>
    %cst_253 = arith.constant dense<0.000000e+00> : vector<8x96xf32>
    %428 = tpu.matmul %426, %427, %cst_253 {dimension_numbers = #tpu.dot_dimension_numbers<[1], [0], [0], [1], [0, 0, 1, 1], [], []>} : vector<8x32xbf16>, vector<32x96xbf16>, vector<8x96xf32> -> vector<8x96xf32>
    %429 = arith.index_cast %c0_i32_250 : i32 to index
    %c0_254 = arith.constant 0 : index
    %c0_255 = arith.constant 0 : index
    %430 = vector.load %arg12[%429, %c0_254, %c0_255] : memref<8x8x96xf32, #tpu.memory_space<vmem>>, vector<1x8x96xf32>
    %431 = vector.shape_cast %430 : vector<1x8x96xf32> to vector<8x96xf32>
    %432 = vector.extract_strided_slice %431 {offsets = [0, 0], sizes = [8, 64], strides = [1, 1]} : vector<8x96xf32> to vector<8x64xf32>
    %433 = vector.extract_strided_slice %428 {offsets = [0, 0], sizes = [8, 64], strides = [1, 1]} : vector<8x96xf32> to vector<8x64xf32>
    %434 = arith.addf %432, %433 : vector<8x64xf32>
    %435 = arith.negf %434 : vector<8x64xf32>
    %436 = math.exp %435 : vector<8x64xf32>
    %cst_256 = arith.constant 1.000000e+00 : f32
    %437 = vector.broadcast %cst_256 : f32 to vector<8x64xf32>
    %438 = arith.addf %437, %436 : vector<8x64xf32>
    %439 = arith.divf %437, %438 : vector<8x64xf32>
    %440 = vector.extract_strided_slice %439 {offsets = [0, 0], sizes = [8, 32], strides = [1, 1]} : vector<8x64xf32> to vector<8x32xf32>
    %441 = vector.extract_strided_slice %439 {offsets = [0, 32], sizes = [8, 32], strides = [1, 1]} : vector<8x64xf32> to vector<8x32xf32>
    %442 = vector.extract_strided_slice %431 {offsets = [0, 64], sizes = [8, 32], strides = [1, 1]} : vector<8x96xf32> to vector<8x32xf32>
    %443 = vector.extract_strided_slice %428 {offsets = [0, 64], sizes = [8, 32], strides = [1, 1]} : vector<8x96xf32> to vector<8x32xf32>
    %c0_257 = arith.constant 0 : index
    %c0_258 = arith.constant 0 : index
    %444 = vector.load %arg10[%c0_257, %c0_258] : memref<1x32xf32, #tpu.memory_space<vmem>>, vector<1x32xf32>
    %445 = vector.broadcast %444 : vector<1x32xf32> to vector<8x32xf32>
    %446 = arith.addf %443, %445 : vector<8x32xf32>
    %447 = arith.mulf %440, %446 : vector<8x32xf32>
    %448 = arith.addf %442, %447 : vector<8x32xf32>
    %449 = math.tanh %448 : vector<8x32xf32>
    %450 = arith.subf %1, %449 : vector<8x32xf32>
    %451 = arith.mulf %441, %450 : vector<8x32xf32>
    %452 = arith.addf %449, %451 : vector<8x32xf32>
    %c1_i32_259 = arith.constant 1 : i32
    %453 = arith.addi %c0_i32_250, %c1_i32_259 : i32
    %454 = vector.broadcast %453 : i32 to vector<8x1xi32>
    %455 = arith.cmpi eq, %0, %454 : vector<8x1xi32>
    %456 = vector.shape_cast %455 : vector<8x1xi1> to vector<8x1xi1>
    %457 = vector.broadcast %456 : vector<8x1xi1> to vector<8x32xi1>
    %458 = arith.select %457, %452, %1 : vector<8x32xi1>, vector<8x32xf32>
    %c1_i32_260 = arith.constant 1 : i32
    %459 = arith.truncf %452 : vector<8x32xf32> to vector<8x32xbf16>
    %c0_261 = arith.constant 0 : index
    %c0_262 = arith.constant 0 : index
    %460 = vector.load %arg8[%c0_261, %c0_262] : memref<32x96xbf16, #tpu.memory_space<vmem>>, vector<32x96xbf16>
    %cst_263 = arith.constant dense<0.000000e+00> : vector<8x96xf32>
    %461 = tpu.matmul %459, %460, %cst_263 {dimension_numbers = #tpu.dot_dimension_numbers<[1], [0], [0], [1], [0, 0, 1, 1], [], []>} : vector<8x32xbf16>, vector<32x96xbf16>, vector<8x96xf32> -> vector<8x96xf32>
    %462 = arith.index_cast %c1_i32_260 : i32 to index
    %c0_264 = arith.constant 0 : index
    %c0_265 = arith.constant 0 : index
    %463 = vector.load %arg12[%462, %c0_264, %c0_265] : memref<8x8x96xf32, #tpu.memory_space<vmem>>, vector<1x8x96xf32>
    %464 = vector.shape_cast %463 : vector<1x8x96xf32> to vector<8x96xf32>
    %465 = vector.extract_strided_slice %464 {offsets = [0, 0], sizes = [8, 64], strides = [1, 1]} : vector<8x96xf32> to vector<8x64xf32>
    %466 = vector.extract_strided_slice %461 {offsets = [0, 0], sizes = [8, 64], strides = [1, 1]} : vector<8x96xf32> to vector<8x64xf32>
    %467 = arith.addf %465, %466 : vector<8x64xf32>
    %468 = arith.negf %467 : vector<8x64xf32>
    %469 = math.exp %468 : vector<8x64xf32>
    %cst_266 = arith.constant 1.000000e+00 : f32
    %470 = vector.broadcast %cst_266 : f32 to vector<8x64xf32>
    %471 = arith.addf %470, %469 : vector<8x64xf32>
    %472 = arith.divf %470, %471 : vector<8x64xf32>
    %473 = vector.extract_strided_slice %472 {offsets = [0, 0], sizes = [8, 32], strides = [1, 1]} : vector<8x64xf32> to vector<8x32xf32>
    %474 = vector.extract_strided_slice %472 {offsets = [0, 32], sizes = [8, 32], strides = [1, 1]} : vector<8x64xf32> to vector<8x32xf32>
    %475 = vector.extract_strided_slice %464 {offsets = [0, 64], sizes = [8, 32], strides = [1, 1]} : vector<8x96xf32> to vector<8x32xf32>
    %476 = vector.extract_strided_slice %461 {offsets = [0, 64], sizes = [8, 32], strides = [1, 1]} : vector<8x96xf32> to vector<8x32xf32>
    %c0_267 = arith.constant 0 : index
    %c0_268 = arith.constant 0 : index
    %477 = vector.load %arg10[%c0_267, %c0_268] : memref<1x32xf32, #tpu.memory_space<vmem>>, vector<1x32xf32>
    %478 = vector.broadcast %477 : vector<1x32xf32> to vector<8x32xf32>
    %479 = arith.addf %476, %478 : vector<8x32xf32>
    %480 = arith.mulf %473, %479 : vector<8x32xf32>
    %481 = arith.addf %475, %480 : vector<8x32xf32>
    %482 = math.tanh %481 : vector<8x32xf32>
    %483 = arith.subf %452, %482 : vector<8x32xf32>
    %484 = arith.mulf %474, %483 : vector<8x32xf32>
    %485 = arith.addf %482, %484 : vector<8x32xf32>
    %c1_i32_269 = arith.constant 1 : i32
    %486 = arith.addi %c1_i32_260, %c1_i32_269 : i32
    %487 = vector.broadcast %486 : i32 to vector<8x1xi32>
    %488 = arith.cmpi eq, %0, %487 : vector<8x1xi32>
    %489 = vector.shape_cast %488 : vector<8x1xi1> to vector<8x1xi1>
    %490 = vector.broadcast %489 : vector<8x1xi1> to vector<8x32xi1>
    %491 = arith.select %490, %485, %458 : vector<8x32xi1>, vector<8x32xf32>
    %c2_i32_270 = arith.constant 2 : i32
    %492 = arith.truncf %485 : vector<8x32xf32> to vector<8x32xbf16>
    %c0_271 = arith.constant 0 : index
    %c0_272 = arith.constant 0 : index
    %493 = vector.load %arg8[%c0_271, %c0_272] : memref<32x96xbf16, #tpu.memory_space<vmem>>, vector<32x96xbf16>
    %cst_273 = arith.constant dense<0.000000e+00> : vector<8x96xf32>
    %494 = tpu.matmul %492, %493, %cst_273 {dimension_numbers = #tpu.dot_dimension_numbers<[1], [0], [0], [1], [0, 0, 1, 1], [], []>} : vector<8x32xbf16>, vector<32x96xbf16>, vector<8x96xf32> -> vector<8x96xf32>
    %495 = arith.index_cast %c2_i32_270 : i32 to index
    %c0_274 = arith.constant 0 : index
    %c0_275 = arith.constant 0 : index
    %496 = vector.load %arg12[%495, %c0_274, %c0_275] : memref<8x8x96xf32, #tpu.memory_space<vmem>>, vector<1x8x96xf32>
    %497 = vector.shape_cast %496 : vector<1x8x96xf32> to vector<8x96xf32>
    %498 = vector.extract_strided_slice %497 {offsets = [0, 0], sizes = [8, 64], strides = [1, 1]} : vector<8x96xf32> to vector<8x64xf32>
    %499 = vector.extract_strided_slice %494 {offsets = [0, 0], sizes = [8, 64], strides = [1, 1]} : vector<8x96xf32> to vector<8x64xf32>
    %500 = arith.addf %498, %499 : vector<8x64xf32>
    %501 = arith.negf %500 : vector<8x64xf32>
    %502 = math.exp %501 : vector<8x64xf32>
    %cst_276 = arith.constant 1.000000e+00 : f32
    %503 = vector.broadcast %cst_276 : f32 to vector<8x64xf32>
    %504 = arith.addf %503, %502 : vector<8x64xf32>
    %505 = arith.divf %503, %504 : vector<8x64xf32>
    %506 = vector.extract_strided_slice %505 {offsets = [0, 0], sizes = [8, 32], strides = [1, 1]} : vector<8x64xf32> to vector<8x32xf32>
    %507 = vector.extract_strided_slice %505 {offsets = [0, 32], sizes = [8, 32], strides = [1, 1]} : vector<8x64xf32> to vector<8x32xf32>
    %508 = vector.extract_strided_slice %497 {offsets = [0, 64], sizes = [8, 32], strides = [1, 1]} : vector<8x96xf32> to vector<8x32xf32>
    %509 = vector.extract_strided_slice %494 {offsets = [0, 64], sizes = [8, 32], strides = [1, 1]} : vector<8x96xf32> to vector<8x32xf32>
    %c0_277 = arith.constant 0 : index
    %c0_278 = arith.constant 0 : index
    %510 = vector.load %arg10[%c0_277, %c0_278] : memref<1x32xf32, #tpu.memory_space<vmem>>, vector<1x32xf32>
    %511 = vector.broadcast %510 : vector<1x32xf32> to vector<8x32xf32>
    %512 = arith.addf %509, %511 : vector<8x32xf32>
    %513 = arith.mulf %506, %512 : vector<8x32xf32>
    %514 = arith.addf %508, %513 : vector<8x32xf32>
    %515 = math.tanh %514 : vector<8x32xf32>
    %516 = arith.subf %485, %515 : vector<8x32xf32>
    %517 = arith.mulf %507, %516 : vector<8x32xf32>
    %518 = arith.addf %515, %517 : vector<8x32xf32>
    %c1_i32_279 = arith.constant 1 : i32
    %519 = arith.addi %c2_i32_270, %c1_i32_279 : i32
    %520 = vector.broadcast %519 : i32 to vector<8x1xi32>
    %521 = arith.cmpi eq, %0, %520 : vector<8x1xi32>
    %522 = vector.shape_cast %521 : vector<8x1xi1> to vector<8x1xi1>
    %523 = vector.broadcast %522 : vector<8x1xi1> to vector<8x32xi1>
    %524 = arith.select %523, %518, %491 : vector<8x32xi1>, vector<8x32xf32>
    %c3_i32_280 = arith.constant 3 : i32
    %525 = arith.truncf %518 : vector<8x32xf32> to vector<8x32xbf16>
    %c0_281 = arith.constant 0 : index
    %c0_282 = arith.constant 0 : index
    %526 = vector.load %arg8[%c0_281, %c0_282] : memref<32x96xbf16, #tpu.memory_space<vmem>>, vector<32x96xbf16>
    %cst_283 = arith.constant dense<0.000000e+00> : vector<8x96xf32>
    %527 = tpu.matmul %525, %526, %cst_283 {dimension_numbers = #tpu.dot_dimension_numbers<[1], [0], [0], [1], [0, 0, 1, 1], [], []>} : vector<8x32xbf16>, vector<32x96xbf16>, vector<8x96xf32> -> vector<8x96xf32>
    %528 = arith.index_cast %c3_i32_280 : i32 to index
    %c0_284 = arith.constant 0 : index
    %c0_285 = arith.constant 0 : index
    %529 = vector.load %arg12[%528, %c0_284, %c0_285] : memref<8x8x96xf32, #tpu.memory_space<vmem>>, vector<1x8x96xf32>
    %530 = vector.shape_cast %529 : vector<1x8x96xf32> to vector<8x96xf32>
    %531 = vector.extract_strided_slice %530 {offsets = [0, 0], sizes = [8, 64], strides = [1, 1]} : vector<8x96xf32> to vector<8x64xf32>
    %532 = vector.extract_strided_slice %527 {offsets = [0, 0], sizes = [8, 64], strides = [1, 1]} : vector<8x96xf32> to vector<8x64xf32>
    %533 = arith.addf %531, %532 : vector<8x64xf32>
    %534 = arith.negf %533 : vector<8x64xf32>
    %535 = math.exp %534 : vector<8x64xf32>
    %cst_286 = arith.constant 1.000000e+00 : f32
    %536 = vector.broadcast %cst_286 : f32 to vector<8x64xf32>
    %537 = arith.addf %536, %535 : vector<8x64xf32>
    %538 = arith.divf %536, %537 : vector<8x64xf32>
    %539 = vector.extract_strided_slice %538 {offsets = [0, 0], sizes = [8, 32], strides = [1, 1]} : vector<8x64xf32> to vector<8x32xf32>
    %540 = vector.extract_strided_slice %538 {offsets = [0, 32], sizes = [8, 32], strides = [1, 1]} : vector<8x64xf32> to vector<8x32xf32>
    %541 = vector.extract_strided_slice %530 {offsets = [0, 64], sizes = [8, 32], strides = [1, 1]} : vector<8x96xf32> to vector<8x32xf32>
    %542 = vector.extract_strided_slice %527 {offsets = [0, 64], sizes = [8, 32], strides = [1, 1]} : vector<8x96xf32> to vector<8x32xf32>
    %c0_287 = arith.constant 0 : index
    %c0_288 = arith.constant 0 : index
    %543 = vector.load %arg10[%c0_287, %c0_288] : memref<1x32xf32, #tpu.memory_space<vmem>>, vector<1x32xf32>
    %544 = vector.broadcast %543 : vector<1x32xf32> to vector<8x32xf32>
    %545 = arith.addf %542, %544 : vector<8x32xf32>
    %546 = arith.mulf %539, %545 : vector<8x32xf32>
    %547 = arith.addf %541, %546 : vector<8x32xf32>
    %548 = math.tanh %547 : vector<8x32xf32>
    %549 = arith.subf %518, %548 : vector<8x32xf32>
    %550 = arith.mulf %540, %549 : vector<8x32xf32>
    %551 = arith.addf %548, %550 : vector<8x32xf32>
    %c1_i32_289 = arith.constant 1 : i32
    %552 = arith.addi %c3_i32_280, %c1_i32_289 : i32
    %553 = vector.broadcast %552 : i32 to vector<8x1xi32>
    %554 = arith.cmpi eq, %0, %553 : vector<8x1xi32>
    %555 = vector.shape_cast %554 : vector<8x1xi1> to vector<8x1xi1>
    %556 = vector.broadcast %555 : vector<8x1xi1> to vector<8x32xi1>
    %557 = arith.select %556, %551, %524 : vector<8x32xi1>, vector<8x32xf32>
    %c4_i32_290 = arith.constant 4 : i32
    %558 = arith.truncf %551 : vector<8x32xf32> to vector<8x32xbf16>
    %c0_291 = arith.constant 0 : index
    %c0_292 = arith.constant 0 : index
    %559 = vector.load %arg8[%c0_291, %c0_292] : memref<32x96xbf16, #tpu.memory_space<vmem>>, vector<32x96xbf16>
    %cst_293 = arith.constant dense<0.000000e+00> : vector<8x96xf32>
    %560 = tpu.matmul %558, %559, %cst_293 {dimension_numbers = #tpu.dot_dimension_numbers<[1], [0], [0], [1], [0, 0, 1, 1], [], []>} : vector<8x32xbf16>, vector<32x96xbf16>, vector<8x96xf32> -> vector<8x96xf32>
    %561 = arith.index_cast %c4_i32_290 : i32 to index
    %c0_294 = arith.constant 0 : index
    %c0_295 = arith.constant 0 : index
    %562 = vector.load %arg12[%561, %c0_294, %c0_295] : memref<8x8x96xf32, #tpu.memory_space<vmem>>, vector<1x8x96xf32>
    %563 = vector.shape_cast %562 : vector<1x8x96xf32> to vector<8x96xf32>
    %564 = vector.extract_strided_slice %563 {offsets = [0, 0], sizes = [8, 64], strides = [1, 1]} : vector<8x96xf32> to vector<8x64xf32>
    %565 = vector.extract_strided_slice %560 {offsets = [0, 0], sizes = [8, 64], strides = [1, 1]} : vector<8x96xf32> to vector<8x64xf32>
    %566 = arith.addf %564, %565 : vector<8x64xf32>
    %567 = arith.negf %566 : vector<8x64xf32>
    %568 = math.exp %567 : vector<8x64xf32>
    %cst_296 = arith.constant 1.000000e+00 : f32
    %569 = vector.broadcast %cst_296 : f32 to vector<8x64xf32>
    %570 = arith.addf %569, %568 : vector<8x64xf32>
    %571 = arith.divf %569, %570 : vector<8x64xf32>
    %572 = vector.extract_strided_slice %571 {offsets = [0, 0], sizes = [8, 32], strides = [1, 1]} : vector<8x64xf32> to vector<8x32xf32>
    %573 = vector.extract_strided_slice %571 {offsets = [0, 32], sizes = [8, 32], strides = [1, 1]} : vector<8x64xf32> to vector<8x32xf32>
    %574 = vector.extract_strided_slice %563 {offsets = [0, 64], sizes = [8, 32], strides = [1, 1]} : vector<8x96xf32> to vector<8x32xf32>
    %575 = vector.extract_strided_slice %560 {offsets = [0, 64], sizes = [8, 32], strides = [1, 1]} : vector<8x96xf32> to vector<8x32xf32>
    %c0_297 = arith.constant 0 : index
    %c0_298 = arith.constant 0 : index
    %576 = vector.load %arg10[%c0_297, %c0_298] : memref<1x32xf32, #tpu.memory_space<vmem>>, vector<1x32xf32>
    %577 = vector.broadcast %576 : vector<1x32xf32> to vector<8x32xf32>
    %578 = arith.addf %575, %577 : vector<8x32xf32>
    %579 = arith.mulf %572, %578 : vector<8x32xf32>
    %580 = arith.addf %574, %579 : vector<8x32xf32>
    %581 = math.tanh %580 : vector<8x32xf32>
    %582 = arith.subf %551, %581 : vector<8x32xf32>
    %583 = arith.mulf %573, %582 : vector<8x32xf32>
    %584 = arith.addf %581, %583 : vector<8x32xf32>
    %c1_i32_299 = arith.constant 1 : i32
    %585 = arith.addi %c4_i32_290, %c1_i32_299 : i32
    %586 = vector.broadcast %585 : i32 to vector<8x1xi32>
    %587 = arith.cmpi eq, %0, %586 : vector<8x1xi32>
    %588 = vector.shape_cast %587 : vector<8x1xi1> to vector<8x1xi1>
    %589 = vector.broadcast %588 : vector<8x1xi1> to vector<8x32xi1>
    %590 = arith.select %589, %584, %557 : vector<8x32xi1>, vector<8x32xf32>
    %c5_i32_300 = arith.constant 5 : i32
    %591 = arith.truncf %584 : vector<8x32xf32> to vector<8x32xbf16>
    %c0_301 = arith.constant 0 : index
    %c0_302 = arith.constant 0 : index
    %592 = vector.load %arg8[%c0_301, %c0_302] : memref<32x96xbf16, #tpu.memory_space<vmem>>, vector<32x96xbf16>
    %cst_303 = arith.constant dense<0.000000e+00> : vector<8x96xf32>
    %593 = tpu.matmul %591, %592, %cst_303 {dimension_numbers = #tpu.dot_dimension_numbers<[1], [0], [0], [1], [0, 0, 1, 1], [], []>} : vector<8x32xbf16>, vector<32x96xbf16>, vector<8x96xf32> -> vector<8x96xf32>
    %594 = arith.index_cast %c5_i32_300 : i32 to index
    %c0_304 = arith.constant 0 : index
    %c0_305 = arith.constant 0 : index
    %595 = vector.load %arg12[%594, %c0_304, %c0_305] : memref<8x8x96xf32, #tpu.memory_space<vmem>>, vector<1x8x96xf32>
    %596 = vector.shape_cast %595 : vector<1x8x96xf32> to vector<8x96xf32>
    %597 = vector.extract_strided_slice %596 {offsets = [0, 0], sizes = [8, 64], strides = [1, 1]} : vector<8x96xf32> to vector<8x64xf32>
    %598 = vector.extract_strided_slice %593 {offsets = [0, 0], sizes = [8, 64], strides = [1, 1]} : vector<8x96xf32> to vector<8x64xf32>
    %599 = arith.addf %597, %598 : vector<8x64xf32>
    %600 = arith.negf %599 : vector<8x64xf32>
    %601 = math.exp %600 : vector<8x64xf32>
    %cst_306 = arith.constant 1.000000e+00 : f32
    %602 = vector.broadcast %cst_306 : f32 to vector<8x64xf32>
    %603 = arith.addf %602, %601 : vector<8x64xf32>
    %604 = arith.divf %602, %603 : vector<8x64xf32>
    %605 = vector.extract_strided_slice %604 {offsets = [0, 0], sizes = [8, 32], strides = [1, 1]} : vector<8x64xf32> to vector<8x32xf32>
    %606 = vector.extract_strided_slice %604 {offsets = [0, 32], sizes = [8, 32], strides = [1, 1]} : vector<8x64xf32> to vector<8x32xf32>
    %607 = vector.extract_strided_slice %596 {offsets = [0, 64], sizes = [8, 32], strides = [1, 1]} : vector<8x96xf32> to vector<8x32xf32>
    %608 = vector.extract_strided_slice %593 {offsets = [0, 64], sizes = [8, 32], strides = [1, 1]} : vector<8x96xf32> to vector<8x32xf32>
    %c0_307 = arith.constant 0 : index
    %c0_308 = arith.constant 0 : index
    %609 = vector.load %arg10[%c0_307, %c0_308] : memref<1x32xf32, #tpu.memory_space<vmem>>, vector<1x32xf32>
    %610 = vector.broadcast %609 : vector<1x32xf32> to vector<8x32xf32>
    %611 = arith.addf %608, %610 : vector<8x32xf32>
    %612 = arith.mulf %605, %611 : vector<8x32xf32>
    %613 = arith.addf %607, %612 : vector<8x32xf32>
    %614 = math.tanh %613 : vector<8x32xf32>
    %615 = arith.subf %584, %614 : vector<8x32xf32>
    %616 = arith.mulf %606, %615 : vector<8x32xf32>
    %617 = arith.addf %614, %616 : vector<8x32xf32>
    %c1_i32_309 = arith.constant 1 : i32
    %618 = arith.addi %c5_i32_300, %c1_i32_309 : i32
    %619 = vector.broadcast %618 : i32 to vector<8x1xi32>
    %620 = arith.cmpi eq, %0, %619 : vector<8x1xi32>
    %621 = vector.shape_cast %620 : vector<8x1xi1> to vector<8x1xi1>
    %622 = vector.broadcast %621 : vector<8x1xi1> to vector<8x32xi1>
    %623 = arith.select %622, %617, %590 : vector<8x32xi1>, vector<8x32xf32>
    %c6_i32_310 = arith.constant 6 : i32
    %624 = arith.truncf %617 : vector<8x32xf32> to vector<8x32xbf16>
    %c0_311 = arith.constant 0 : index
    %c0_312 = arith.constant 0 : index
    %625 = vector.load %arg8[%c0_311, %c0_312] : memref<32x96xbf16, #tpu.memory_space<vmem>>, vector<32x96xbf16>
    %cst_313 = arith.constant dense<0.000000e+00> : vector<8x96xf32>
    %626 = tpu.matmul %624, %625, %cst_313 {dimension_numbers = #tpu.dot_dimension_numbers<[1], [0], [0], [1], [0, 0, 1, 1], [], []>} : vector<8x32xbf16>, vector<32x96xbf16>, vector<8x96xf32> -> vector<8x96xf32>
    %627 = arith.index_cast %c6_i32_310 : i32 to index
    %c0_314 = arith.constant 0 : index
    %c0_315 = arith.constant 0 : index
    %628 = vector.load %arg12[%627, %c0_314, %c0_315] : memref<8x8x96xf32, #tpu.memory_space<vmem>>, vector<1x8x96xf32>
    %629 = vector.shape_cast %628 : vector<1x8x96xf32> to vector<8x96xf32>
    %630 = vector.extract_strided_slice %629 {offsets = [0, 0], sizes = [8, 64], strides = [1, 1]} : vector<8x96xf32> to vector<8x64xf32>
    %631 = vector.extract_strided_slice %626 {offsets = [0, 0], sizes = [8, 64], strides = [1, 1]} : vector<8x96xf32> to vector<8x64xf32>
    %632 = arith.addf %630, %631 : vector<8x64xf32>
    %633 = arith.negf %632 : vector<8x64xf32>
    %634 = math.exp %633 : vector<8x64xf32>
    %cst_316 = arith.constant 1.000000e+00 : f32
    %635 = vector.broadcast %cst_316 : f32 to vector<8x64xf32>
    %636 = arith.addf %635, %634 : vector<8x64xf32>
    %637 = arith.divf %635, %636 : vector<8x64xf32>
    %638 = vector.extract_strided_slice %637 {offsets = [0, 0], sizes = [8, 32], strides = [1, 1]} : vector<8x64xf32> to vector<8x32xf32>
    %639 = vector.extract_strided_slice %637 {offsets = [0, 32], sizes = [8, 32], strides = [1, 1]} : vector<8x64xf32> to vector<8x32xf32>
    %640 = vector.extract_strided_slice %629 {offsets = [0, 64], sizes = [8, 32], strides = [1, 1]} : vector<8x96xf32> to vector<8x32xf32>
    %641 = vector.extract_strided_slice %626 {offsets = [0, 64], sizes = [8, 32], strides = [1, 1]} : vector<8x96xf32> to vector<8x32xf32>
    %c0_317 = arith.constant 0 : index
    %c0_318 = arith.constant 0 : index
    %642 = vector.load %arg10[%c0_317, %c0_318] : memref<1x32xf32, #tpu.memory_space<vmem>>, vector<1x32xf32>
    %643 = vector.broadcast %642 : vector<1x32xf32> to vector<8x32xf32>
    %644 = arith.addf %641, %643 : vector<8x32xf32>
    %645 = arith.mulf %638, %644 : vector<8x32xf32>
    %646 = arith.addf %640, %645 : vector<8x32xf32>
    %647 = math.tanh %646 : vector<8x32xf32>
    %648 = arith.subf %617, %647 : vector<8x32xf32>
    %649 = arith.mulf %639, %648 : vector<8x32xf32>
    %650 = arith.addf %647, %649 : vector<8x32xf32>
    %c1_i32_319 = arith.constant 1 : i32
    %651 = arith.addi %c6_i32_310, %c1_i32_319 : i32
    %652 = vector.broadcast %651 : i32 to vector<8x1xi32>
    %653 = arith.cmpi eq, %0, %652 : vector<8x1xi32>
    %654 = vector.shape_cast %653 : vector<8x1xi1> to vector<8x1xi1>
    %655 = vector.broadcast %654 : vector<8x1xi1> to vector<8x32xi1>
    %656 = arith.select %655, %650, %623 : vector<8x32xi1>, vector<8x32xf32>
    %c7_i32_320 = arith.constant 7 : i32
    %657 = arith.truncf %650 : vector<8x32xf32> to vector<8x32xbf16>
    %c0_321 = arith.constant 0 : index
    %c0_322 = arith.constant 0 : index
    %658 = vector.load %arg8[%c0_321, %c0_322] : memref<32x96xbf16, #tpu.memory_space<vmem>>, vector<32x96xbf16>
    %cst_323 = arith.constant dense<0.000000e+00> : vector<8x96xf32>
    %659 = tpu.matmul %657, %658, %cst_323 {dimension_numbers = #tpu.dot_dimension_numbers<[1], [0], [0], [1], [0, 0, 1, 1], [], []>} : vector<8x32xbf16>, vector<32x96xbf16>, vector<8x96xf32> -> vector<8x96xf32>
    %660 = arith.index_cast %c7_i32_320 : i32 to index
    %c0_324 = arith.constant 0 : index
    %c0_325 = arith.constant 0 : index
    %661 = vector.load %arg12[%660, %c0_324, %c0_325] : memref<8x8x96xf32, #tpu.memory_space<vmem>>, vector<1x8x96xf32>
    %662 = vector.shape_cast %661 : vector<1x8x96xf32> to vector<8x96xf32>
    %663 = vector.extract_strided_slice %662 {offsets = [0, 0], sizes = [8, 64], strides = [1, 1]} : vector<8x96xf32> to vector<8x64xf32>
    %664 = vector.extract_strided_slice %659 {offsets = [0, 0], sizes = [8, 64], strides = [1, 1]} : vector<8x96xf32> to vector<8x64xf32>
    %665 = arith.addf %663, %664 : vector<8x64xf32>
    %666 = arith.negf %665 : vector<8x64xf32>
    %667 = math.exp %666 : vector<8x64xf32>
    %cst_326 = arith.constant 1.000000e+00 : f32
    %668 = vector.broadcast %cst_326 : f32 to vector<8x64xf32>
    %669 = arith.addf %668, %667 : vector<8x64xf32>
    %670 = arith.divf %668, %669 : vector<8x64xf32>
    %671 = vector.extract_strided_slice %670 {offsets = [0, 0], sizes = [8, 32], strides = [1, 1]} : vector<8x64xf32> to vector<8x32xf32>
    %672 = vector.extract_strided_slice %670 {offsets = [0, 32], sizes = [8, 32], strides = [1, 1]} : vector<8x64xf32> to vector<8x32xf32>
    %673 = vector.extract_strided_slice %662 {offsets = [0, 64], sizes = [8, 32], strides = [1, 1]} : vector<8x96xf32> to vector<8x32xf32>
    %674 = vector.extract_strided_slice %659 {offsets = [0, 64], sizes = [8, 32], strides = [1, 1]} : vector<8x96xf32> to vector<8x32xf32>
    %c0_327 = arith.constant 0 : index
    %c0_328 = arith.constant 0 : index
    %675 = vector.load %arg10[%c0_327, %c0_328] : memref<1x32xf32, #tpu.memory_space<vmem>>, vector<1x32xf32>
    %676 = vector.broadcast %675 : vector<1x32xf32> to vector<8x32xf32>
    %677 = arith.addf %674, %676 : vector<8x32xf32>
    %678 = arith.mulf %671, %677 : vector<8x32xf32>
    %679 = arith.addf %673, %678 : vector<8x32xf32>
    %680 = math.tanh %679 : vector<8x32xf32>
    %681 = arith.subf %650, %680 : vector<8x32xf32>
    %682 = arith.mulf %672, %681 : vector<8x32xf32>
    %683 = arith.addf %680, %682 : vector<8x32xf32>
    %c1_i32_329 = arith.constant 1 : i32
    %684 = arith.addi %c7_i32_320, %c1_i32_329 : i32
    %685 = vector.broadcast %684 : i32 to vector<8x1xi32>
    %686 = arith.cmpi eq, %0, %685 : vector<8x1xi32>
    %687 = vector.shape_cast %686 : vector<8x1xi1> to vector<8x1xi1>
    %688 = vector.broadcast %687 : vector<8x1xi1> to vector<8x32xi1>
    %689 = arith.select %688, %683, %656 : vector<8x32xi1>, vector<8x32xf32>
    %c8_i32_330 = arith.constant 8 : i32
    %690 = arith.mulf %689, %689 : vector<8x32xf32>
    %cst_331 = arith.constant dense<0.000000e+00> : vector<8xf32>
    %691 = vector.multi_reduction <add>, %690, %cst_331 [1] : vector<8x32xf32> to vector<8xf32>
    %692 = vector.shape_cast %691 : vector<8xf32> to vector<8x1xf32>
    %693 = math.rsqrt %692 : vector<8x1xf32>
    %694 = vector.broadcast %693 : vector<8x1xf32> to vector<8x32xf32>
    %695 = arith.mulf %689, %694 : vector<8x32xf32>
    %c0_332 = arith.constant 0 : index
    %c0_333 = arith.constant 0 : index
    %696 = vector.load %arg11[%c0_332, %c0_333] : memref<8x32xf32, #tpu.memory_space<vmem>>, vector<8x32xf32>
    tpu.vector_store %arg11[%c0_332, %c0_333], %695 {strides = array<i32>} : memref<8x32xf32, #tpu.memory_space<vmem>>, vector<8x32xf32>,
    return
  }
  func.func @transform_0(%arg0: i32) -> (i32, i32, i32) {
    %c0_i32 = arith.constant 0 : i32
    %c0_i32_0 = arith.constant 0 : i32
    %c0_i32_1 = arith.constant 0 : i32
    return %c0_i32, %arg0, %c0_i32_0 : i32, i32, i32
  }
  func.func @transform_1(%arg0: i32) -> (i32, i32) {
    %c0_i32 = arith.constant 0 : i32
    %c0_i32_0 = arith.constant 0 : i32
    return %arg0, %c0_i32 : i32, i32
  }
  func.func @transform_2(%arg0: i32) -> (i32, i32) {
    %c0_i32 = arith.constant 0 : i32
    %c0_i32_0 = arith.constant 0 : i32
    %c0_i32_1 = arith.constant 0 : i32
    return %c0_i32, %c0_i32_0 : i32, i32
  }
  func.func @transform_3(%arg0: i32) -> (i32, i32) {
    %c0_i32 = arith.constant 0 : i32
    %c0_i32_0 = arith.constant 0 : i32
    %c0_i32_1 = arith.constant 0 : i32
    return %c0_i32, %c0_i32_0 : i32, i32
  }
  func.func @transform_4(%arg0: i32) -> (i32, i32) {
    %c0_i32 = arith.constant 0 : i32
    %c0_i32_0 = arith.constant 0 : i32
    %c0_i32_1 = arith.constant 0 : i32
    return %c0_i32, %c0_i32_0 : i32, i32
  }
  func.func @transform_5(%arg0: i32) -> (i32, i32) {
    %c0_i32 = arith.constant 0 : i32
    %c0_i32_0 = arith.constant 0 : i32
    %c0_i32_1 = arith.constant 0 : i32
    return %c0_i32, %c0_i32_0 : i32, i32
  }
  func.func @transform_6(%arg0: i32) -> (i32, i32) {
    %c0_i32 = arith.constant 0 : i32
    %c0_i32_0 = arith.constant 0 : i32
    %c0_i32_1 = arith.constant 0 : i32
    return %c0_i32, %c0_i32_0 : i32, i32
  }
  func.func @transform_7(%arg0: i32) -> (i32, i32) {
    %c0_i32 = arith.constant 0 : i32
    %c0_i32_0 = arith.constant 0 : i32
    %c0_i32_1 = arith.constant 0 : i32
    return %c0_i32, %c0_i32_0 : i32, i32
  }
  func.func @transform_8(%arg0: i32) -> (i32, i32) {
    %c0_i32 = arith.constant 0 : i32
    %c0_i32_0 = arith.constant 0 : i32
    %c0_i32_1 = arith.constant 0 : i32
    return %c0_i32, %c0_i32_0 : i32, i32
  }
  func.func @transform_9(%arg0: i32) -> (i32, i32) {
    %c0_i32 = arith.constant 0 : i32
    %c0_i32_0 = arith.constant 0 : i32
    %c0_i32_1 = arith.constant 0 : i32
    return %c0_i32, %c0_i32_0 : i32, i32
  }
  func.func @transform_10(%arg0: i32) -> (i32, i32) {
    %c0_i32 = arith.constant 0 : i32
    %c0_i32_0 = arith.constant 0 : i32
    return %arg0, %c0_i32 : i32, i32
  }
}

</mosaic_0001>

<bundles_post_ra>
// kernel: encoder_text_forward.1
= control target key start
LH: loop header
LB: loop body
LE: loop exit
PB: predicated region body
PF: predicated region fallthrough
CT: control target
= control target key end

     0   :  { %s3041_s13 = smov 0   ;;  %s3043_s14 = smov 0   ;;  %s3620_s0 = inlined_call_operand.vmem [shape: f32[8,16,32], index: 0, kind: input, shape index: {}]   ;;  %s3621_s1 = inlined_call_operand.vmem [shape: s32[16,1], index: 1, kind: input, shape index: {}]   ;;  %s3622_s2 = inlined_call_operand.vmem [shape: bf16[32,96], index: 2, kind: input, shape index: {}]   ;;  %s3623_s3 = inlined_call_operand.vmem [shape: bf16[32,96], index: 3, kind: input, shape index: {}]   ;;  %s3624_s4 = inlined_call_operand.vmem [shape: f32[1,96], index: 4, kind: input, shape index: {}]   ;;  %s3625_s5 = inlined_call_operand.vmem [shape: f32[1,32], index: 5, kind: input, shape index: {}]   ;;  %s3626_s6 = inlined_call_operand.vmem [shape: bf16[32,96], index: 6, kind: input, shape index: {}]   ;;  %s3627_s7 = inlined_call_operand.vmem [shape: bf16[32,96], index: 7, kind: input, shape index: {}]   ;;  %s3628_s8 = inlined_call_operand.vmem [shape: f32[1,96], index: 8, kind: input, shape index: {}]   ;;  %s3629_s9 = inlined_call_operand.vmem [shape: f32[1,32], index: 9, kind: input, shape index: {}]   ;;  %s3630_s10 = inlined_call_operand.vmem [shape: f32[16,32], index: 10, kind: output, shape index: {}]  }
   0x1   :  { %s3045_s15 = smov 0  }
   0x2 LB: > { %s2489_s16 = sadd.s32 4294967295, %s2980_s15   ;;  %s3058_s17 = sadd.s32 1, %s2980_s15   ;;  %s2980_s15 = sphi %s3045_s15, %s3633_s15   ;;  %s2976_s14 = sphi %s3043_s14, %s3632_s14   ;;  %s2972_s13 = sphi %s3041_s13, %s3631_s13  }
   0x3   : > { %s24_s18 = ssub.s32 %s2980_s15, %s3058_s17  ;;  %s27_s19 = sadd.s32 1, %s2976_s14 }
   0x4   : > { %p25_p0 = scmp.eq.s32.totalorder %s24_s18, 0  ;;  %p34_p1 = scmp.ne.s32.totalorder %s2976_s14, %s2972_s13 }
   0x5   : > { %p35_p2 = scmp.eq.s32.totalorder %s2980_s15, 0  ;;  %p2492_p4 = scmp.ge.s32.totalorder %s2980_s15, 2 }
   0x6   : > { %s3067_s20 = scalar_select %p25_p0, %s2976_s14, %s27_s19  }
   0x7   : > { %p36_p3 = por %p35_p2, %p34_p1  ;;  %304 = sbr.rel (%p2492_p4) target bundleno = 24 (0x18), region = 48 }
   0xc   : > { %307 = sbr.rel (!%p36_p3) target bundleno = 24 (0x18), region = 52  ;;  %s309_s21 = sand.u32 (%p36_p3), 1, %s2976_s14  }
   0xd   : > { %s2494_s22 = sshll.u32 (%p36_p3), %s2980_s15, 3  ;;  %s2493_s23 = sshll.u32 (%p36_p3), %s309_s21, 6 }
   0xe   : > { %s313_s26 = scalar_lea.vmem (%p36_p3), %s3620_s0, %s2494_s22  ;;  %s311_s27 = scalar_lea.vmem (%p36_p3), [#allocation4], %s2493_s23 }
   0xf   : > { %v356_v0 = vld [vmem:[%s313_s26] sm:$0xff] (%p36_p3)  ;;  %v358_v1 = vld [vmem:[%s313_s26 + $0x10] sm:$0xff] (%p36_p3) }
  0x10   : > { %v360_v2 = vld [vmem:[%s313_s26 + $0x20] sm:$0xff] (%p36_p3)  ;;  %357 = vst [vmem:[%s311_s27] sm:$0xff] (%p36_p3), %v356_v0  ;;  %v362_v3 = vld [vmem:[%s313_s26 + $0x30] sm:$0xff] (%p36_p3) }
  0x11   : > { %359 = vst [vmem:[%s311_s27 + $0x8] sm:$0xff] %v358_v1  ;;  %v364_v4 = vld [vmem:[%s313_s26 + $0x40] sm:$0xff]  ;;  %v366_v5 = vld [vmem:[%s313_s26 + $0x50] sm:$0xff] }
  0x12   : > { %361 = vst [vmem:[%s311_s27 + $0x10] sm:$0xff] %v360_v2  ;;  %v368_v6 = vld [vmem:[%s313_s26 + $0x60] sm:$0xff]  ;;  %v370_v7 = vld [vmem:[%s313_s26 + $0x70] sm:$0xff] }
  0x13   : > { %363 = vst [vmem:[%s311_s27 + $0x18] sm:$0xff] %v362_v3 }
  0x14   : > { %365 = vst [vmem:[%s311_s27 + $0x20] sm:$0xff] %v364_v4 }
  0x15   : > { %367 = vst [vmem:[%s311_s27 + $0x28] sm:$0xff] %v366_v5 }
  0x16   : > { %369 = vst [vmem:[%s311_s27 + $0x30] sm:$0xff] %v368_v6 }
  0x17   : > { %371 = vst [vmem:[%s311_s27 + $0x38] sm:$0xff] %v370_v7 }
  0x18 PF: > { %p2495_p5 = scmp.ge.s32.totalorder %s2980_s15, 1  ;;  %p383_p6 = scmp.lt.s32.totalorder %s2980_s15, 3 }
  0x1a   : > { %p384_p7 = pnand %p2495_p5, %p383_p6 }
  0x1b   : > { %s390_s30 = sand.u32 (!%p384_p7), 1, %s2972_s13   ;;  %s2983_s28 = smov (!%p384_p7), 64  }
  0x1c   : > { %387 = sbr.rel (%p384_p7) target bundleno = 9253 (0x2425), region = 94  ;;  %s2496_s11 = sshll.u32 (!%p384_p7), %s390_s30, 6 }
  0x1d   : > { %s3087_s19 = scalar_lea.vmem (!%p384_p7), [#allocation4], %s2496_s11  ;;  %s2984_s21 = smov (!%p384_p7), 96  }
  0x1e   : > { %s2985_s22 = smov (!%p384_p7), 32   ;;  %p430_p8 = scmp.lt.s32.totalorder (!%p384_p7), %s2489_s16, 1 }
  0x21   : > { %v2755_v8 = vld [vmem:[%s3622_s2 + $0x8] sm:$0xff]  ;;  %v2982_v9 = vmov 0   ;;  %v2754_v10 = vld [vmem:[%s3622_s2] sm:$0xff]  ;;  %vm462_vm0 = vcmask 261120   ;;  %vm479_vm1 = vcmask 785408   ;;  %s3635_s16 = smov (!%p430_p8, %s2489_s16), 1 }
  0x22   : > { %2832 = vset.pattern.permute.xlu1 %v2982_v9  ;;  %2833 = vset.pattern.permute.xlu2 %v2982_v9  ;;  %v440_v11 = vld [vmem:[%s3087_s19] sm:$0xff]  ;;  %v2763_v12 = vld [vmem:[%s3622_s2 + $0x8] sm:$0xff]  ;;  %s2497_s27 = sshll.u32 %s3635_s16, 3 }
  0x23   : > { %472 = vmatpush.bf16.msra.mxu0 %v2755_v8  ;;  %2834 = vset.pattern.permute.xlu0 %v2982_v9  ;;  %v441_v13 = vpack.c.bf16 %v440_v11, %v440_v11  ;;  %v2762_v14 = vld [vmem:[%s3622_s2] sm:$0xff]  ;;  %v2771_v15 = vld [vmem:[%s3623_s3 + $0x8] sm:$0xff]  ;;  %s433_s30 = scalar_lea.vmem %s3621_s1, %s2497_s27 }
  0x24   : > { %v2835_v16 = vld [vmem:[%s3625_s5] ss:$0 sm:$0xff]  ;;  %v2757_v55 = vld [vmem:[%s3622_s2 + $0x8] sm:$0xff] }
  0x25   : > { %824 = vrot.lane.b32.xlu0 %v2835_v16, %s2983_s28  ;;  %v2770_v17 = vld [vmem:[%s3623_s3] sm:$0xff]  ;;  %513 = vmatpush.bf16.msra.mxu1 %v2757_v55  ;;  %v2508_v57 = vld [vmem:[%s3087_s19 + $0x8] sm:$0xff] }
  0x26   : > { %v2538_v18 = vld [vmem:[%s3087_s19 + $0x20] sm:$0xff]  ;;  %v2765_v58 = vld [vmem:[%s3622_s2 + $0x8] sm:$0xff]  ;;  %v483_v59 = vpack.c.bf16 %v2508_v57, %v2508_v57 }
  0x27   : > { %473 = vmatpush.bf16.msra.mxu0 %v2754_v10  ;;  %v606_v19 = vpack.c.bf16 %v2538_v18, %v2538_v18  ;;  %v2836_v20 = vld [vmem:[%s3624_s4] ss:$0 sm:$0xff]  ;;  %v2773_v61 = vld [vmem:[%s3623_s3 + $0x8] sm:$0xff] }
  0x28   : > { %v2837_v24 = vld [vmem:[%s3624_s4] ss:$0 sm:$0xff]  ;;  %v2548_v63 = vld [vmem:[%s3087_s19 + $0x28] sm:$0xff] }
  0x29   : > { %v2756_v56 = vld [vmem:[%s3622_s2] sm:$0xff]  ;;  %v647_v0 = vpack.c.bf16 %v2548_v63, %v2548_v63 }
  0x2a   : > { %2507 = vmatmul.msk.bf16.vlgmr.msra.gmra.mxu0 %vm462_vm0, %v441_v13  ;;  %514 = vmatpush.bf16.msra.mxu1 %v2756_v56  ;;  %v2764_v60 = vld [vmem:[%s3622_s2] sm:$0xff] }
  0x2b   : > { %636 = vmatpush.bf16.msrb.mxu0 %v2763_v12  ;;  %v2772_v62 = vld [vmem:[%s3623_s3] sm:$0xff] }
  0x2c   : > { %v2838_v4 = vld [vmem:[%s3625_s5] ss:$0 sm:$0xff] }
  0x2d   : > { %2517 = vmatmul.msk.bf16.vlgmr.msra.gmra.mxu1 %vm462_vm0, %v483_v59  ;;  %v2839_v6 = vld [vmem:[%s3624_s4] ss:$0 sm:$0xff] }
  0x2e   : > { %677 = vmatpush.bf16.msrb.mxu1 %v2765_v58  ;;  %v2840_v11 = vld [vmem:[%s3624_s4] ss:$0 sm:$0xff] }
  0x2f   : > { %637 = vmatpush.bf16.msrb.mxu0 %v2762_v14  ;;  %v2841_v55 = vld [vmem:[%s3625_s5] ss:$0 sm:$0xff] }
  0x30   : > { %v2842_v57 = vld [vmem:[%s3624_s4] ss:$0 sm:$0xff] }
  0x32   : > { %678 = vmatpush.bf16.msrb.mxu1 %v2764_v60 }
  0x33   : > { %793 = vmatpush.bf16.msra.mxu0 %v2771_v15 }
  0x36   : > { %884 = vmatpush.bf16.msra.mxu1 %v2773_v61  ;;  %v2843_v61 = vld [vmem:[%s3624_s4] ss:$0 sm:$0xff] }
  0x37   : > { %794 = vmatpush.bf16.msra.mxu0 %v2770_v17 }
  0x3a   : > { %2547 = vmatmul.msk.bf16.vlgmr.msrb.gmra.mxu0 %vm462_vm0, %v606_v19  ;;  %885 = vmatpush.bf16.msra.mxu1 %v2772_v62 }
  0x3d   : > { %2557 = vmatmul.msk.bf16.vlgmr.msrb.gmra.mxu1 %vm462_vm0, %v647_v0 }
  0x4a   : > { %795 = vmatmul.bf16.vlgmr.msra.gmra.mxu0 %v2982_v9 }
  0x97   : > { %v825_v28 = vpop.permute.xlu0 %824 }
  0xa7   : > { %v475_v21 = vpop.f32.mrf.mxu0 }
  0xa8   : > { %v476_v22 = vadd.f32 %v2836_v20, %v475_v21 }
  0xaa   : > { %480 = vst.msk [vmem:[#allocation2] sm:$0xff] %vm479_vm1, %v476_v22  ;;  %v516_v7 = vpop.f32.mrf.mxu1 }
  0xab   : > { %v517_v8 = vadd.f32 %v2839_v6, %v516_v7 }
  0xad   : > { %521 = vst.msk [vmem:[#allocation2 + $0x8] sm:$0xff] %vm479_vm1, %v517_v8 }
  0xaf   : > { %v477_v23 = vpop.f32.mrf.mxu0 }
  0xb1   : > { %v800_v32 = vld [vmem:[#allocation2] sm:$0xff] }
  0xb2   : > { %v518_v10 = vpop.f32.mrf.mxu1 }
  0xb4   : > { %v891_v19 = vld [vmem:[#allocation2 + $0x8] sm:$0xff] }
  0xb7   : > { %v639_v25 = vpop.f32.mrf.mxu0 }
  0xb8   : > { %v640_v26 = vadd.f32 %v2837_v24, %v639_v25 }
  0xba   : > { %644 = vst.msk [vmem:[#allocation2 + $0x20] sm:$0xff] %vm479_vm1, %v640_v26  ;;  %v680_v12 = vpop.f32.mrf.mxu1 }
  0xbb   : > { %v681_v13 = vadd.f32 %v2840_v11, %v680_v12 }
  0xbd   : > { %685 = vst.msk [vmem:[#allocation2 + $0x28] sm:$0xff] %vm479_vm1, %v681_v13 }
  0xbf   : > { %v641_v27 = vpop.f32.mrf.mxu0 }
  0xc2   : > { %v682_v14 = vpop.f32.mrf.mxu1 }
  0xc7   : > { %v796_v29 = vpop.f32.mrf.mxu0 }
  0xc8   : > { %v827_v30 = vadd.f32 %v825_v28, %v796_v29  ;;  %v801_v33 = vadd.f32 %v800_v32, %v796_v29 }
  0xca   : > { %829 = vrot.lane.b32.xlu0 %v827_v30, %s2983_s28  ;;  %v2586_v34 = vmul.f32 -1.442695, %v801_v33 }
  0xcc   : > { %2860 = vpow2.f32 %v2586_v34 }
  0xcf   : > { %v798_v31 = vpop.f32.mrf.mxu0 }
  0xd2   : > { %v2861_v35 = vpop.eup %2860  ;;  %915 = vrot.lane.b32.xlu0 %v2838_v4, %s2983_s28 }
  0xd3   : > { %v805_v36 = vadd.f32 1.0, %v2861_v35 }
  0xd5   : > { %2862 = vrcp.f32 %v805_v36  ;;  %v817_v42 = vand.u32 2147483648, %v805_v36  ;;  %vm811_vm3 = vweird.f32 %v805_v36  ;;  %v815_v43 = vand.u32 2147483647, %v805_v36 }
  0xd7   : > { %v818_v45 = vor.u32 1.1754944e-38, %v817_v42  ;;  %vm816_vm5 = vcmp.eq.f32.partialorder %v815_v43, 8.507059e+37  ;;  %v2759_v42 = vld [vmem:[%s3622_s2 + $0x8] sm:$0xff]  ;;  %v2758_v43 = vld [vmem:[%s3622_s2] sm:$0xff] }
  0xd8   : > { %554 = vmatpush.bf16.msra.mxu2 %v2759_v42 }
  0xdb   : > { %v2863_v37 = vpop.eup %2862 }
  0xdc   : > { %v807_v38 = vmul.f32 %v2863_v37, %v805_v36  ;;  %vm812_vm2 = vweird.f32 %v2863_v37  ;;  %555 = vmatpush.bf16.msra.mxu2 %v2758_v43  ;;  %v2844_v43 = vld [vmem:[%s3625_s5] ss:$0 sm:$0xff] }
  0xdd   : > { %vm813_vm4 = vmor %vm811_vm3, %vm812_vm2 }
  0xde   : > { %v808_v39 = vsub.f32 1.0, %v807_v38 }
  0xe0   : > { %v809_v40 = vmul.f32 %v2863_v37, %v808_v39 }
  0xe2   : > { %v810_v41 = vadd.f32 %v2863_v37, %v809_v40 }
  0xe4   : > { %v814_v44 = vsel %vm813_vm4, %v2863_v37, %v810_v41 }
  0xe5   : > { %v819_v47 = vsel %vm816_vm5, %v818_v45, %v814_v44  ;;  %v2518_v44 = vld [vmem:[%s3087_s19 + $0x10] sm:$0xff]  ;;  %v2767_v45 = vld [vmem:[%s3622_s2 + $0x8] sm:$0xff] }
  0xe6   : > { %718 = vmatpush.bf16.msrb.mxu2 %v2767_v45  ;;  %v2845_v45 = vld [vmem:[%s3624_s4] ss:$0 sm:$0xff] }
 0x13c   : > { %v830_v46 = vpop.permute.xlu0 %829 }
 0x13d   : > { %v832_v48 = vmul.f32 %v830_v46, %v819_v47  ;;  %v524_v46 = vpack.c.bf16 %v2518_v44, %v2518_v44 }
 0x13f   : > { %834 = vrot.lane.b32.xlu1 %v832_v48, %s2983_s28  ;;  %v2775_v48 = vld [vmem:[%s3623_s3 + $0x8] sm:$0xff]  ;;  %2527 = vmatmul.msk.bf16.vlgmr.msra.gmra.mxu2 %vm462_vm0, %v524_v46 }
 0x144   : > { %v916_v15 = vpop.permute.xlu0 %915 }
 0x1b1   : > { %v835_v49 = vpop.permute.xlu1 %834 }
 0x1b2   : > { %v837_v50 = vadd.f32 %v835_v49, %v800_v32  ;;  %v2774_v49 = vld [vmem:[%s3623_s3] sm:$0xff] }
 0x1b4   : > { %2864 = vtanh.f32 %v837_v50  ;;  %v2558_v50 = vld [vmem:[%s3087_s19 + $0x30] sm:$0xff] }
 0x1ba   : > { %v2865_v51 = vpop.eup %2864 }
 0x1bb   : > { %v839_v52 = vsub.f32 0.0, %v2865_v51 }
 0x1bd   : > { %841 = vrot.lane.b32.xlu1 %v839_v52, %s2984_s21 }
 0x1c2   : > { %v557_v58 = vpop.f32.mrf.mxu2 }
 0x1c3   : > { %v558_v59 = vadd.f32 %v2842_v57, %v557_v58 }
 0x1c5   : > { %562 = vst.msk [vmem:[#allocation2 + $0x10] sm:$0xff] %vm479_vm1, %v558_v59 }
 0x1ca   : > { %v559_v60 = vpop.f32.mrf.mxu2 }
 0x1cc   : > { %v983_v6 = vld [vmem:[#allocation2 + $0x10] sm:$0xff] }
 0x22f   : > { %v842_v53 = vpop.permute.xlu1 %841 }
 0x230   : > { %v844_v54 = vmul.f32 %v842_v53, %v819_v47  ;;  %v2766_v47 = vld [vmem:[%s3622_s2] sm:$0xff] }
 0x231   : > { %719 = vmatpush.bf16.msrb.mxu2 %v2766_v47 }
 0x232   : > { %846 = vrot.lane.b32.xlu2 %v844_v54, %s2985_s22 }
 0x235   : > { %976 = vmatpush.bf16.msra.mxu2 %v2775_v48 }
 0x239   : > { %977 = vmatpush.bf16.msra.mxu2 %v2774_v49  ;;  %v2846_v49 = vld [vmem:[%s3624_s4] ss:$0 sm:$0xff] }
 0x28c   : > { %v847_v1 = vpop.permute.xlu2 %846 }
 0x28d   : > { %v3144_v2 = vadd.f32 %v2865_v51, %v847_v1  ;;  %v688_v51 = vpack.c.bf16 %v2558_v50, %v2558_v50 }
 0x28f   : > { %v855_v3 = vpack.c.bf16 %v3144_v2, %v3144_v2  ;;  %2567 = vmatmul.msk.bf16.vlgmr.msrb.gmra.mxu2 %vm462_vm0, %v688_v51 }
 0x291   : > { %861 = vrot.lane.b32.xlu2 %v855_v3, %s2983_s28 }
 0x2eb   : > { %v862_v5 = vpop.permute.xlu2 %861 }
 0x2ec   : > { %2595 = vmatmul.msk.bf16.vlgmr.msra.gmra.mxu1 %vm462_vm0, %v862_v5 }
 0x312   : > { %v721_v62 = vpop.f32.mrf.mxu2 }
 0x313   : > { %v722_v63 = vadd.f32 %v2843_v61, %v721_v62 }
 0x315   : > { %726 = vst.msk [vmem:[#allocation2 + $0x30] sm:$0xff] %vm479_vm1, %v722_v63 }
 0x31a   : > { %v723_v0 = vpop.f32.mrf.mxu2 }
 0x369   : > { %v887_v16 = vpop.f32.mrf.mxu1 }
 0x36a   : > { %v918_v17 = vadd.f32 %v916_v15, %v887_v16  ;;  %v892_v20 = vadd.f32 %v891_v19, %v887_v16 }
 0x36c   : > { %920 = vrot.lane.b32.xlu1 %v918_v17, %s2983_s28  ;;  %v2596_v21 = vmul.f32 -1.442695, %v892_v20 }
 0x36e   : > { %2866 = vpow2.f32 %v2596_v21 }
 0x371   : > { %v889_v18 = vpop.f32.mrf.mxu1 }
 0x374   : > { %v2867_v22 = vpop.eup %2866 }
 0x375   : > { %v896_v23 = vadd.f32 1.0, %v2867_v22 }
 0x377   : > { %2868 = vrcp.f32 %v896_v23  ;;  %v908_v29 = vand.u32 2147483648, %v896_v23  ;;  %vm902_vm7 = vweird.f32 %v896_v23  ;;  %v906_v30 = vand.u32 2147483647, %v896_v23 }
 0x379   : > { %v909_v32 = vor.u32 1.1754944e-38, %v908_v29  ;;  %vm907_vm9 = vcmp.eq.f32.partialorder %v906_v30, 8.507059e+37  ;;  %v2761_v30 = vld [vmem:[%s3622_s2 + $0x8] sm:$0xff] }
 0x37a   : > { %595 = vmatpush.bf16.msra.mxu3 %v2761_v30  ;;  %v1167_v30 = vld [vmem:[#allocation2 + $0x20] sm:$0xff] }
 0x37d   : > { %v2869_v24 = vpop.eup %2868 }
 0x37e   : > { %v898_v25 = vmul.f32 %v2869_v24, %v896_v23  ;;  %vm903_vm6 = vweird.f32 %v2869_v24 }
 0x37f   : > { %vm904_vm8 = vmor %vm902_vm7, %vm903_vm6 }
 0x380   : > { %v899_v26 = vsub.f32 1.0, %v898_v25 }
 0x382   : > { %v900_v27 = vmul.f32 %v2869_v24, %v899_v26 }
 0x384   : > { %v901_v28 = vadd.f32 %v2869_v24, %v900_v27 }
 0x386   : > { %v905_v31 = vsel %vm904_vm8, %v2869_v24, %v901_v28 }
 0x387   : > { %v910_v34 = vsel %vm907_vm9, %v909_v32, %v905_v31  ;;  %v2760_v31 = vld [vmem:[%s3622_s2] sm:$0xff]  ;;  %v2528_v32 = vld [vmem:[%s3087_s19 + $0x18] sm:$0xff] }
 0x388   : > { %596 = vmatpush.bf16.msra.mxu3 %v2760_v31 }
 0x3de   : > { %v921_v33 = vpop.permute.xlu1 %920 }
 0x3df   : > { %v923_v35 = vmul.f32 %v921_v33, %v910_v34  ;;  %v2769_v33 = vld [vmem:[%s3622_s2 + $0x8] sm:$0xff] }
 0x3e0   : > { %759 = vmatpush.bf16.msrb.mxu3 %v2769_v33 }
 0x3e1   : > { %925 = vrot.lane.b32.xlu2 %v923_v35, %s2983_s28  ;;  %v2768_v35 = vld [vmem:[%s3622_s2] sm:$0xff] }
 0x3e4   : > { %760 = vmatpush.bf16.msrb.mxu3 %v2768_v35 }
 0x43b   : > { %v926_v36 = vpop.permute.xlu2 %925 }
 0x43c   : > { %v928_v37 = vadd.f32 %v926_v36, %v891_v19  ;;  %v2777_v36 = vld [vmem:[%s3623_s3 + $0x8] sm:$0xff] }
 0x43e   : > { %2870 = vtanh.f32 %v928_v37  ;;  %v2776_v37 = vld [vmem:[%s3623_s3] sm:$0xff] }
 0x444   : > { %v2871_v38 = vpop.eup %2870 }
 0x445   : > { %v930_v39 = vsub.f32 %v3144_v2, %v2871_v38 }
 0x447   : > { %932 = vrot.lane.b32.xlu0 %v930_v39, %s2984_s21 }
 0x44f   : > { %1007 = vrot.lane.b32.xlu0 %v2841_v55, %s2983_s28 }
 0x4b9   : > { %v933_v40 = vpop.permute.xlu0 %932 }
 0x4ba   : > { %v935_v41 = vmul.f32 %v933_v40, %v910_v34  ;;  %v565_v34 = vpack.c.bf16 %v2528_v32, %v2528_v32 }
 0x4bc   : > { %937 = vrot.lane.b32.xlu1 %v935_v41, %s2985_s22  ;;  %2537 = vmatmul.msk.bf16.vlgmr.msra.gmra.mxu3 %vm462_vm0, %v565_v34 }
 0x4bd   : > { %1068 = vmatpush.bf16.msra.mxu3 %v2777_v36 }
 0x4c1   : > { %v1008_v1 = vpop.permute.xlu0 %1007  ;;  %1069 = vmatpush.bf16.msra.mxu3 %v2776_v37 }
 0x52e   : > { %v938_v52 = vpop.permute.xlu1 %937 }
 0x52f   : > { %v3189_v53 = vadd.f32 %v2871_v38, %v938_v52  ;;  %v2568_v38 = vld [vmem:[%s3087_s19 + $0x38] sm:$0xff] }
 0x530   : > { %v729_v39 = vpack.c.bf16 %v2568_v38, %v2568_v38 }
 0x531   : > { %v947_v54 = vpack.c.bf16 %v3189_v53, %v3189_v53 }
 0x532   : > { %2577 = vmatmul.msk.bf16.vlgmr.msrb.gmra.mxu3 %vm462_vm0, %v729_v39 }
 0x533   : > { %953 = vrot.lane.b32.xlu2 %v947_v54, %s2983_s28 }
 0x53f   : > { %v598_v46 = vpop.f32.mrf.mxu3 }
 0x540   : > { %v599_v47 = vadd.f32 %v2845_v45, %v598_v46 }
 0x542   : > { %603 = vst.msk [vmem:[#allocation2 + $0x18] sm:$0xff] %vm479_vm1, %v599_v47 }
 0x547   : > { %v600_v48 = vpop.f32.mrf.mxu3 }
 0x548   : > { %v2787_v48 = vld [vmem:[%s3626_s6 + $0x8] sm:$0xff] }
 0x549   : > { %v1075_v58 = vld [vmem:[#allocation2 + $0x18] sm:$0xff] }
 0x58d   : > { %v954_v56 = vpop.permute.xlu2 %953 }
 0x58e   : > { %2605 = vmatmul.msk.bf16.vlgmr.msra.gmra.mxu2 %vm462_vm0, %v954_v56 }
 0x5b5   : > { %v762_v50 = vpop.f32.mrf.mxu3 }
 0x5b6   : > { %v763_v51 = vadd.f32 %v2846_v49, %v762_v50  ;;  %v2786_v49 = vld [vmem:[%s3626_s6] sm:$0xff] }
 0x5b8   : > { %767 = vst.msk [vmem:[#allocation2 + $0x38] sm:$0xff] %vm479_vm1, %v763_v51 }
 0x5bd   : > { %v764_v52 = vpop.f32.mrf.mxu3 }
 0x611   : > { %v979_v3 = vpop.f32.mrf.mxu2 }
 0x612   : > { %v1010_v4 = vadd.f32 %v1008_v1, %v979_v3  ;;  %v984_v7 = vadd.f32 %v983_v6, %v979_v3 }
 0x614   : > { %1012 = vrot.lane.b32.xlu1 %v1010_v4, %s2983_s28  ;;  %v2606_v8 = vmul.f32 -1.442695, %v984_v7 }
 0x616   : > { %2872 = vpow2.f32 %v2606_v8 }
 0x619   : > { %v981_v5 = vpop.f32.mrf.mxu2 }
 0x61c   : > { %v2873_v10 = vpop.eup %2872 }
 0x61d   : > { %v988_v11 = vadd.f32 1.0, %v2873_v10 }
 0x61f   : > { %2874 = vrcp.f32 %v988_v11  ;;  %v1000_v17 = vand.u32 2147483648, %v988_v11  ;;  %vm994_vm11 = vweird.f32 %v988_v11  ;;  %v998_v18 = vand.u32 2147483647, %v988_v11 }
 0x621   : > { %v1001_v20 = vor.u32 1.1754944e-38, %v1000_v17  ;;  %vm999_vm13 = vcmp.eq.f32.partialorder %v998_v18, 8.507059e+37 }
 0x625   : > { %v2875_v12 = vpop.eup %2874 }
 0x626   : > { %v990_v13 = vmul.f32 %v2875_v12, %v988_v11  ;;  %vm995_vm10 = vweird.f32 %v2875_v12 }
 0x627   : > { %vm996_vm12 = vmor %vm994_vm11, %vm995_vm10 }
 0x628   : > { %v991_v14 = vsub.f32 1.0, %v990_v13 }
 0x62a   : > { %v992_v15 = vmul.f32 %v2875_v12, %v991_v14 }
 0x62c   : > { %v993_v16 = vadd.f32 %v2875_v12, %v992_v15 }
 0x62e   : > { %v997_v19 = vsel %vm996_vm12, %v2875_v12, %v993_v16 }
 0x62f   : > { %v1002_v21 = vsel %vm999_vm13, %v1001_v20, %v997_v19  ;;  %v2779_v19 = vld [vmem:[%s3623_s3 + $0x8] sm:$0xff]  ;;  %v2778_v20 = vld [vmem:[%s3623_s3] sm:$0xff] }
 0x630   : > { %1160 = vmatpush.bf16.msrb.mxu0 %v2779_v19  ;;  %v2851_v19 = vld [vmem:[%s3628_s8] ss:$0 sm:$0xff] }
 0x634   : > { %1161 = vmatpush.bf16.msrb.mxu0 %v2778_v20 }
 0x638   : > { %1530 = vmatpush.bf16.msra.mxu0 %v2787_v48 }
 0x63c   : > { %1531 = vmatpush.bf16.msra.mxu0 %v2786_v49 }
 0x686   : > { %v1013_v22 = vpop.permute.xlu1 %1012 }
 0x687   : > { %v1015_v23 = vmul.f32 %v1013_v22, %v1002_v21 }
 0x689   : > { %1017 = vrot.lane.b32.xlu2 %v1015_v23, %s2983_s28 }
 0x6e3   : > { %v1018_v24 = vpop.permute.xlu2 %1017 }
 0x6e4   : > { %v1020_v25 = vadd.f32 %v1018_v24, %v983_v6  ;;  %v2847_v24 = vld [vmem:[%s3625_s5] ss:$0 sm:$0xff] }
 0x6e6   : > { %2876 = vtanh.f32 %v1020_v25 }
 0x6ec   : > { %v2877_v26 = vpop.eup %2876 }
 0x6ed   : > { %v1022_v27 = vsub.f32 %v3189_v53, %v2877_v26 }
 0x6ef   : > { %1024 = vrot.lane.b32.xlu0 %v1022_v27, %s2984_s21 }
 0x6f7   : > { %1099 = vrot.lane.b32.xlu0 %v2844_v43, %s2983_s28 }
 0x761   : > { %v1025_v28 = vpop.permute.xlu0 %1024 }
 0x762   : > { %v1027_v29 = vmul.f32 %v1025_v28, %v1002_v21 }
 0x764   : > { %1029 = vrot.lane.b32.xlu1 %v1027_v29, %s2985_s22 }
 0x769   : > { %v1100_v54 = vpop.permute.xlu0 %1099 }
 0x7d6   : > { %v1030_v40 = vpop.permute.xlu1 %1029 }
 0x7d7   : > { %v3234_v41 = vadd.f32 %v2877_v26, %v1030_v40 }
 0x7d9   : > { %v1039_v42 = vpack.c.bf16 %v3234_v41, %v3234_v41 }
 0x7db   : > { %1045 = vrot.lane.b32.xlu2 %v1039_v42, %s2983_s28 }
 0x835   : > { %v1046_v44 = vpop.permute.xlu2 %1045 }
 0x836   : > { %2615 = vmatmul.msk.bf16.vlgmr.msra.gmra.mxu3 %vm462_vm0, %v1046_v44 }
 0x8b9   : > { %v1071_v55 = vpop.f32.mrf.mxu3 }
 0x8ba   : > { %v1102_v56 = vadd.f32 %v1100_v54, %v1071_v55  ;;  %v1076_v59 = vadd.f32 %v1075_v58, %v1071_v55 }
 0x8bc   : > { %1104 = vrot.lane.b32.xlu1 %v1102_v56, %s2983_s28  ;;  %v2616_v60 = vmul.f32 -1.442695, %v1076_v59  ;;  %v2848_v59 = vld [vmem:[%s3628_s8] ss:$0 sm:$0xff] }
 0x8be   : > { %2878 = vpow2.f32 %v2616_v60 }
 0x8c1   : > { %v1073_v57 = vpop.f32.mrf.mxu3 }
 0x8c4   : > { %v2879_v61 = vpop.eup %2878 }
 0x8c5   : > { %v1080_v62 = vadd.f32 1.0, %v2879_v61 }
 0x8c7   : > { %2880 = vrcp.f32 %v1080_v62  ;;  %v1092_v5 = vand.u32 2147483648, %v1080_v62  ;;  %vm1086_vm15 = vweird.f32 %v1080_v62  ;;  %v1090_v6 = vand.u32 2147483647, %v1080_v62 }
 0x8c9   : > { %v1093_v8 = vor.u32 1.1754944e-38, %v1092_v5  ;;  %vm1091_vm3 = vcmp.eq.f32.partialorder %v1090_v6, 8.507059e+37  ;;  %v2795_v5 = vld [vmem:[%s3626_s6 + $0x8] sm:$0xff]  ;;  %v2794_v6 = vld [vmem:[%s3626_s6] sm:$0xff] }
 0x8cd   : > { %v2881_v63 = vpop.eup %2880 }
 0x8ce   : > { %v1082_v0 = vmul.f32 %v2881_v63, %v1080_v62  ;;  %vm1087_vm14 = vweird.f32 %v2881_v63 }
 0x8cf   : > { %vm1088_vm2 = vmor %vm1086_vm15, %vm1087_vm14 }
 0x8d0   : > { %v1083_v1 = vsub.f32 1.0, %v1082_v0  ;;  %v2780_v0 = vld [vmem:[%s3623_s3] sm:$0xff] }
 0x8d2   : > { %v1084_v3 = vmul.f32 %v2881_v63, %v1083_v1 }
 0x8d4   : > { %v1085_v4 = vadd.f32 %v2881_v63, %v1084_v3 }
 0x8d6   : > { %v1089_v7 = vsel %vm1088_vm2, %v2881_v63, %v1085_v4  ;;  %v2781_v63 = vld [vmem:[%s3623_s3 + $0x8] sm:$0xff] }
 0x8d7   : > { %v1094_v10 = vsel %vm1091_vm3, %v1093_v8, %v1089_v7  ;;  %1252 = vmatpush.bf16.msrb.mxu1 %v2781_v63  ;;  %v3314_v7 = vld [vmem:[%s3627_s7 + $0x8] sm:$0xff]  ;;  %v3320_v8 = vld [vmem:[%s3627_s7] sm:$0xff] }
 0x8db   : > { %1253 = vmatpush.bf16.msrb.mxu1 %v2780_v0 }
 0x92e   : > { %v1105_v11 = vpop.permute.xlu1 %1104 }
 0x92f   : > { %v1107_v12 = vmul.f32 %v1105_v11, %v1094_v10  ;;  %v2850_v11 = vld [vmem:[%s3629_s9] ss:$0 sm:$0xff] }
 0x931   : > { %1109 = vrot.lane.b32.xlu2 %v1107_v12, %s2983_s28 }
 0x98b   : > { %v1110_v13 = vpop.permute.xlu2 %1109 }
 0x98c   : > { %v1112_v14 = vadd.f32 %v1110_v13, %v1075_v58 }
 0x98e   : > { %2882 = vtanh.f32 %v1112_v14 }
 0x994   : > { %v2883_v15 = vpop.eup %2882 }
 0x995   : > { %v1114_v16 = vsub.f32 %v3234_v41, %v2883_v15 }
 0x997   : > { %1116 = vrot.lane.b32.xlu0 %v1114_v16, %s2984_s21 }
 0x99f   : > { %1191 = vrot.lane.b32.xlu0 %v2847_v24, %s2983_s28 }
 0xa09   : > { %v1117_v17 = vpop.permute.xlu0 %1116 }
 0xa0a   : > { %v1119_v18 = vmul.f32 %v1117_v17, %v1094_v10  ;;  %v2849_v10 = vld [vmem:[%s3625_s5] ss:$0 sm:$0xff] }
 0xa0c   : > { %1121 = vrot.lane.b32.xlu1 %v1119_v18, %s2985_s22 }
 0xa11   : > { %v1192_v26 = vpop.permute.xlu0 %1191 }
 0xa7e   : > { %v1122_v21 = vpop.permute.xlu1 %1121 }
 0xa7f   : > { %v3263_v22 = vadd.f32 %v2883_v15, %v1122_v21 }
 0xa81   : > { %v1131_v23 = vpack.c.bf16 %v3263_v22, %v3263_v22 }
 0xa83   : > { %1137 = vrot.lane.b32.xlu2 %v1131_v23, %s2983_s28 }
 0xadd   : > { %v1138_v25 = vpop.permute.xlu2 %1137 }
 0xade   : > { %2625 = vmatmul.msk.bf16.vlgmr.msrb.gmra.mxu0 %vm462_vm0, %v1138_v25 }
 0xadf   : > { %1686 = vmatpush.bf16.msrb.mxu0 %v2795_v5 }
 0xae3   : > { %1687 = vmatpush.bf16.msrb.mxu0 %v2794_v6 }
 0xb5b   : > { %v1163_v27 = vpop.f32.mrf.mxu0 }
 0xb5c   : > { %v1194_v28 = vadd.f32 %v1192_v26, %v1163_v27  ;;  %v1168_v31 = vadd.f32 %v1167_v30, %v1163_v27 }
 0xb5e   : > { %1196 = vrot.lane.b32.xlu1 %v1194_v28, %s2983_s28  ;;  %v2626_v32 = vmul.f32 -1.442695, %v1168_v31 }
 0xb60   : > { %2884 = vpow2.f32 %v2626_v32 }
 0xb63   : > { %v1165_v29 = vpop.f32.mrf.mxu0 }
 0xb64   : > { %v1259_v29 = vld [vmem:[#allocation2 + $0x28] sm:$0xff] }
 0xb66   : > { %v2885_v33 = vpop.eup %2884 }
 0xb67   : > { %v1172_v34 = vadd.f32 1.0, %v2885_v33 }
 0xb69   : > { %2886 = vrcp.f32 %v1172_v34  ;;  %v1184_v40 = vand.u32 2147483648, %v1172_v34  ;;  %vm1178_vm5 = vweird.f32 %v1172_v34  ;;  %v1182_v42 = vand.u32 2147483647, %v1172_v34 }
 0xb6b   : > { %v1185_v44 = vor.u32 1.1754944e-38, %v1184_v40  ;;  %vm1183_vm7 = vcmp.eq.f32.partialorder %v1182_v42, 8.507059e+37 }
 0xb6f   : > { %v2887_v35 = vpop.eup %2886 }
 0xb70   : > { %v1174_v36 = vmul.f32 %v2887_v35, %v1172_v34  ;;  %vm1179_vm4 = vweird.f32 %v2887_v35 }
 0xb71   : > { %vm1180_vm6 = vmor %vm1178_vm5, %vm1179_vm4 }
 0xb72   : > { %v1175_v37 = vsub.f32 1.0, %v1174_v36 }
 0xb74   : > { %v1176_v38 = vmul.f32 %v2887_v35, %v1175_v37 }
 0xb76   : > { %v1177_v39 = vadd.f32 %v2887_v35, %v1176_v38 }
 0xb78   : > { %v1181_v43 = vsel %vm1180_vm6, %v2887_v35, %v1177_v39 }
 0xb79   : > { %v1186_v45 = vsel %vm1183_vm7, %v1185_v44, %v1181_v43 }
 0xbd0   : > { %v1197_v46 = vpop.permute.xlu1 %1196 }
 0xbd1   : > { %v1199_v47 = vmul.f32 %v1197_v46, %v1186_v45 }
 0xbd3   : > { %1201 = vrot.lane.b32.xlu2 %v1199_v47, %s2983_s28 }
 0xbdb   : > { %851 = vrot.lane.b32.xlu2 %v3144_v2, %s2983_s28 }
 0xbe3   : > { %1283 = vrot.lane.b32.xlu2 %v2849_v10, %s2983_s28 }
 0xc2d   : > { %v1202_v50 = vpop.permute.xlu2 %1201 }
 0xc2e   : > { %v1204_v51 = vadd.f32 %v1202_v50, %v1167_v30 }
 0xc30   : > { %2888 = vtanh.f32 %v1204_v51 }
 0xc35   : > { %v852_v52 = vpop.permute.xlu2 %851 }
 0xc36   : > { %v2889_v54 = vpop.eup %2888  ;;  %854 = vst.msk [vmem:[#allocation3] sm:$0xff] %vm462_vm0, %v852_v52 }
 0xc37   : > { %v1206_v55 = vsub.f32 %v3263_v22, %v2889_v54 }
 0xc39   : > { %1208 = vrot.lane.b32.xlu0 %v1206_v55, %s2984_s21 }
 0xc3d   : > { %v1499_v2 = vld [vmem:[#allocation3] sm:$0xff]  ;;  %v1284_v16 = vpop.permute.xlu2 %1283 }
 0xc3e   : > { %v1500_v56 = vpack.c.bf16 %v1499_v2, %v1499_v2 }
 0xc40   : > { %2665 = vmatmul.msk.bf16.vlgmr.msra.gmra.mxu0 %vm462_vm0, %v1500_v56 }
 0xc41   : > { %1833 = vmatpush.bf16.msra.mxu0 %v3314_v7 }
 0xc45   : > { %1834 = vmatpush.bf16.msra.mxu0 %v3320_v8 }
 0xcab   : > { %v1209_v57 = vpop.permute.xlu0 %1208 }
 0xcac   : > { %v1211_v58 = vmul.f32 %v1209_v57, %v1186_v45 }
 0xcae   : > { %1213 = vrot.lane.b32.xlu1 %v1211_v58, %s2985_s22 }
 0xcbd   : > { %v1533_v60 = vpop.f32.mrf.mxu0 }
 0xcbe   : > { %v1534_v61 = vadd.f32 %v2848_v59, %v1533_v60 }
 0xcc0   : > { %1537 = vst.msk [vmem:[#allocation2] sm:$0xff] %vm479_vm1, %v1534_v61 }
 0xcc5   : > { %v1535_v62 = vpop.f32.mrf.mxu0 }
 0xcc7   : > { %v1840_v31 = vld [vmem:[#allocation2] sm:$0xff] }
 0xd20   : > { %v1214_v1 = vpop.permute.xlu1 %1213 }
 0xd21   : > { %v3298_v3 = vadd.f32 %v2889_v54, %v1214_v1 }
 0xd23   : > { %1218 = vrot.lane.b32.xlu1 %v3298_v3, %s2983_s28  ;;  %v1223_v4 = vpack.c.bf16 %v3298_v3, %v3298_v3 }
 0xd25   : > { %1229 = vrot.lane.b32.xlu0 %v1223_v4, %s2983_s28 }
 0xd2d   : > { %1864 = vrot.lane.b32.xlu0 %v2850_v11, %s2983_s28 }
 0xd95   : > { %v1219_v12 = vpop.permute.xlu1 %1218 }
 0xd96   : > { %1222 = vst.msk [vmem:[#allocation3 + $0x20] sm:$0xff] %vm462_vm0, %v1219_v12 }
 0xd97   : > { %v1230_v13 = vpop.permute.xlu0 %1229 }
 0xd98   : > { %2635 = vmatmul.msk.bf16.vlgmr.msrb.gmra.mxu1 %vm462_vm0, %v1230_v13 }
 0xd9d   : > { %v1655_v14 = vld [vmem:[#allocation3 + $0x20] sm:$0xff] }
 0xd9e   : > { %v1656_v15 = vpack.c.bf16 %v1655_v14, %v1655_v14  ;;  %v2789_v14 = vld [vmem:[%s3626_s6 + $0x8] sm:$0xff] }
 0xd9f   : > { %v3342_v25 = vpop.permute.xlu0 %1864  ;;  %1569 = vmatpush.bf16.msra.mxu1 %v2789_v14 }
 0xda0   : > { %2701 = vmatmul.msk.bf16.vlgmr.msrb.gmra.mxu0 %vm462_vm0, %v1656_v15 }
 0xda1   : > { %2123 = vmatpush.bf16.msrb.mxu0 %v3314_v7 }
 0xda5   : > { %2124 = vmatpush.bf16.msrb.mxu0 %v3320_v8 }
 0xdb0   : > { %1835 = vmatmul.bf16.vlgmr.msra.gmra.mxu0 %v2982_v9 }
 0xe15   : > { %v1255_v17 = vpop.f32.mrf.mxu1 }
 0xe16   : > { %v1286_v18 = vadd.f32 %v1284_v16, %v1255_v17  ;;  %v1260_v30 = vadd.f32 %v1259_v29, %v1255_v17  ;;  %v2788_v16 = vld [vmem:[%s3626_s6] sm:$0xff] }
 0xe17   : > { %1570 = vmatpush.bf16.msra.mxu1 %v2788_v16 }
 0xe18   : > { %1288 = vrot.lane.b32.xlu1 %v1286_v18, %s2983_s28  ;;  %v2636_v33 = vmul.f32 -1.442695, %v1260_v30 }
 0xe1a   : > { %2890 = vpow2.f32 %v2636_v33  ;;  %v2783_v33 = vld [vmem:[%s3623_s3 + $0x8] sm:$0xff] }
 0xe1b   : > { %1344 = vmatpush.bf16.msrb.mxu2 %v2783_v33 }
 0xe1d   : > { %v1257_v20 = vpop.f32.mrf.mxu1  ;;  %v1689_v21 = vpop.f32.mrf.mxu0 }
 0xe1e   : > { %v1690_v23 = vadd.f32 %v2851_v19, %v1689_v21 }
 0xe20   : > { %1693 = vst.msk [vmem:[#allocation2 + $0x20] sm:$0xff] %vm479_vm1, %v1690_v23  ;;  %v2891_v35 = vpop.eup %2890 }
 0xe21   : > { %v1264_v37 = vadd.f32 1.0, %v2891_v35  ;;  %v2782_v35 = vld [vmem:[%s3623_s3] sm:$0xff] }
 0xe22   : > { %1345 = vmatpush.bf16.msrb.mxu2 %v2782_v35 }
 0xe23   : > { %vm1270_vm10 = vweird.f32 %v1264_v37  ;;  %v1276_v51 = vand.u32 2147483648, %v1264_v37  ;;  %v1274_v54 = vand.u32 2147483647, %v1264_v37 }
 0xe25   : > { %v1691_v24 = vpop.f32.mrf.mxu0  ;;  %v1277_v57 = vor.u32 1.1754944e-38, %v1276_v51  ;;  %vm1275_vm15 = vcmp.eq.f32.partialorder %v1274_v54, 8.507059e+37 }
 0xe2d   : > { %v1836_v26 = vpop.f32.mrf.mxu0 }
 0xe2e   : > { %v1867_v27 = vadd.f32 %v3342_v25, %v1836_v26  ;;  %v1841_v32 = vadd.f32 %v1840_v31, %v1836_v26 }
 0xe30   : > { %1869 = vrot.lane.b32.xlu2 %v1867_v27, %s2983_s28  ;;  %v2737_v34 = vmul.f32 -1.442695, %v1841_v32  ;;  %v2797_v32 = vld [vmem:[%s3626_s6 + $0x8] sm:$0xff] }
 0xe31   : > { %1725 = vmatpush.bf16.msrb.mxu1 %v2797_v32 }
 0xe32   : > { %2892 = vpow2.f32 %v2737_v34  ;;  %v2796_v34 = vld [vmem:[%s3626_s6] sm:$0xff] }
 0xe33   : > { %2894 = vrcp.f32 %v1264_v37 }
 0xe35   : > { %v1838_v28 = vpop.f32.mrf.mxu0  ;;  %1726 = vmatpush.bf16.msrb.mxu1 %v2796_v34 }
 0xe36   : > { %v2852_v28 = vld [vmem:[%s3628_s8] ss:$0 sm:$0xff] }
 0xe38   : > { %v2893_v36 = vpop.eup %2892 }
 0xe39   : > { %v1845_v38 = vadd.f32 1.0, %v2893_v36  ;;  %v2895_v39 = vpop.eup %2894  ;;  %v2853_v36 = vld [vmem:[%s3625_s5] ss:$0 sm:$0xff] }
 0xe3a   : > { %v1266_v43 = vmul.f32 %v2895_v39, %v1264_v37  ;;  %vm1271_vm8 = vweird.f32 %v2895_v39 }
 0xe3b   : > { %2896 = vrcp.f32 %v1845_v38  ;;  %v1857_v50 = vand.u32 2147483648, %v1845_v38  ;;  %vm1851_vm11 = vweird.f32 %v1845_v38  ;;  %v1855_v52 = vand.u32 2147483647, %v1845_v38  ;;  %vm1272_vm12 = vmor %vm1270_vm10, %vm1271_vm8 }
 0xe3c   : > { %v1267_v45 = vsub.f32 1.0, %v1266_v43  ;;  %v2854_v43 = vld [vmem:[%s3628_s8] ss:$0 sm:$0xff] }
 0xe3d   : > { %v1858_v56 = vor.u32 1.1754944e-38, %v1857_v50  ;;  %vm1856_vm14 = vcmp.eq.f32.partialorder %v1855_v52, 8.507059e+37 }
 0xe3e   : > { %v1268_v47 = vmul.f32 %v2895_v39, %v1267_v45 }
 0xe40   : > { %v1269_v49 = vadd.f32 %v2895_v39, %v1268_v47 }
 0xe41   : > { %v2897_v40 = vpop.eup %2896 }
 0xe42   : > { %v1847_v42 = vmul.f32 %v2897_v40, %v1845_v38  ;;  %vm1852_vm9 = vweird.f32 %v2897_v40  ;;  %v1273_v2 = vsel %vm1272_vm12, %v2895_v39, %v1269_v49 }
 0xe43   : > { %vm1853_vm13 = vmor %vm1851_vm11, %vm1852_vm9  ;;  %v1278_v61 = vsel %vm1275_vm15, %v1277_v57, %v1273_v2 }
 0xe44   : > { %v1848_v44 = vsub.f32 1.0, %v1847_v42 }
 0xe46   : > { %v1849_v46 = vmul.f32 %v2897_v40, %v1848_v44 }
 0xe48   : > { %v1850_v48 = vadd.f32 %v2897_v40, %v1849_v46 }
 0xe4a   : > { %v1854_v55 = vsel %vm1853_vm13, %v2897_v40, %v1850_v48 }
 0xe4b   : > { %v1859_v58 = vsel %vm1856_vm14, %v1858_v56, %v1854_v55  ;;  %v1351_v55 = vld [vmem:[#allocation2 + $0x30] sm:$0xff] }
 0xe8a   : > { %v1870_v59 = vpop.permute.xlu2 %1869  ;;  %v1289_v60 = vpop.permute.xlu1 %1288 }
 0xe8b   : > { %v1872_v62 = vmul.f32 %v1870_v59, %v1859_v58  ;;  %v1291_v63 = vmul.f32 %v1289_v60, %v1278_v61 }
 0xe8d   : > { %1874 = vrot.lane.b32.xlu1 %v1872_v62, %s2983_s28  ;;  %1293 = vrot.lane.b32.xlu0 %v1291_v63, %s2983_s28 }
 0xeff   : > { %v1875_v0 = vpop.permute.xlu1 %1874  ;;  %v1294_v1 = vpop.permute.xlu0 %1293 }
 0xf00   : > { %v1877_v4 = vadd.f32 %v1875_v0, %v1840_v31  ;;  %v1296_v5 = vadd.f32 %v1294_v1, %v1259_v29 }
 0xf02   : > { %2898 = vtanh.f32 %v1877_v4 }
 0xf03   : > { %2900 = vtanh.f32 %v1296_v5 }
 0xf08   : > { %v2899_v6 = vpop.eup %2898 }
 0xf09   : > { %v2901_v10 = vpop.eup %2900  ;;  %v1879_v11 = vsub.f32 0.0, %v2899_v6 }
 0xf0a   : > { %v1298_v12 = vsub.f32 %v3298_v3, %v2901_v10 }
 0xf0b   : > { %1881 = vrot.lane.b32.xlu0 %v1879_v11, %s2984_s21 }
 0xf0c   : > { %1300 = vrot.lane.b32.xlu2 %v1298_v12, %s2984_s21 }
 0xf13   : > { %942 = vrot.lane.b32.xlu0 %v3189_v53, %s2983_s28 }
 0xf66   : > { %v1301_v13 = vpop.permute.xlu2 %1300 }
 0xf67   : > { %v1303_v15 = vmul.f32 %v1301_v13, %v1278_v61 }
 0xf69   : > { %1305 = vrot.lane.b32.xlu1 %v1303_v15, %s2985_s22 }
 0xf7d   : > { %v1882_v3 = vpop.permute.xlu0 %1881 }
 0xf7e   : > { %v1884_v17 = vmul.f32 %v1882_v3, %v1859_v58 }
 0xf80   : > { %1886 = vrot.lane.b32.xlu2 %v1884_v17, %s2985_s22 }
 0xf85   : > { %v943_v18 = vpop.permute.xlu0 %942 }
 0xf86   : > { %946 = vst.msk [vmem:[#allocation3 + $0x8] sm:$0xff] %vm462_vm0, %v943_v18 }
 0xf8d   : > { %v1538_v53 = vld [vmem:[#allocation3 + $0x8] sm:$0xff] }
 0xf8e   : > { %v1539_v19 = vpack.c.bf16 %v1538_v53, %v1538_v53 }
 0xf90   : > { %2674 = vmatmul.msk.bf16.vlgmr.msra.gmra.mxu1 %vm462_vm0, %v1539_v19 }
 0xf91   : > { %1910 = vmatpush.bf16.msra.mxu1 %v3314_v7 }
 0xf95   : > { %1911 = vmatpush.bf16.msra.mxu1 %v3320_v8 }
 0xfda   : > { %v1887_v20 = vpop.permute.xlu2 %1886 }
 0xfdb   : > { %v1306_v21 = vpop.permute.xlu1 %1305  ;;  %v3363_v23 = vadd.f32 %v2899_v6, %v1887_v20 }
 0xfdc   : > { %v3365_v24 = vadd.f32 %v2901_v10, %v1306_v21 }
 0xfdd   : > { %v1897_v26 = vpack.c.bf16 %v3363_v23, %v3363_v23 }
 0xfde   : > { %1310 = vrot.lane.b32.xlu2 %v3365_v24, %s2983_s28  ;;  %v1315_v27 = vpack.c.bf16 %v3365_v24, %v3365_v24 }
 0xfdf   : > { %1899 = vrot.lane.b32.xlu0 %v1897_v26, %s2983_s28 }
 0xfe0   : > { %1321 = vrot.lane.b32.xlu1 %v1315_v27, %s2983_s28 }
 0xfe8   : > { %1375 = vrot.lane.b32.xlu1 %v2853_v36, %s2983_s28 }
0x100d   : > { %v1572_v29 = vpop.f32.mrf.mxu1 }
0x100e   : > { %v1573_v30 = vadd.f32 %v2852_v28, %v1572_v29 }
0x1010   : > { %1576 = vst.msk [vmem:[#allocation2 + $0x8] sm:$0xff] %vm479_vm1, %v1573_v30 }
0x1015   : > { %v1574_v31 = vpop.f32.mrf.mxu1 }
0x1017   : > { %v1917_v58 = vld [vmem:[#allocation2 + $0x8] sm:$0xff] }
0x1038   : > { %v1311_v37 = vpop.permute.xlu2 %1310 }
0x1039   : > { %1314 = vst.msk [vmem:[#allocation3 + $0x28] sm:$0xff] %vm462_vm0, %v1311_v37 }
0x1040   : > { %v1694_v38 = vld [vmem:[#allocation3 + $0x28] sm:$0xff] }
0x1041   : > { %v1695_v39 = vpack.c.bf16 %v1694_v38, %v1694_v38 }
0x1043   : > { %2710 = vmatmul.msk.bf16.vlgmr.msrb.gmra.mxu1 %vm462_vm0, %v1695_v39  ;;  %v2791_v39 = vld [vmem:[%s3626_s6 + $0x8] sm:$0xff] }
0x1044   : > { %2194 = vmatpush.bf16.msrb.mxu1 %v3314_v7  ;;  %1608 = vmatpush.bf16.msra.mxu2 %v2791_v39 }
0x1048   : > { %2195 = vmatpush.bf16.msrb.mxu1 %v3320_v8 }
0x1051   : > { %v1900_v40 = vpop.permute.xlu0 %1899 }
0x1052   : > { %v1322_v42 = vpop.permute.xlu1 %1321 }
0x1053   : > { %2645 = vmatmul.msk.bf16.vlgmr.msrb.gmra.mxu2 %vm462_vm0, %v1322_v42  ;;  %2738 = vmatmul.msk.bf16.vlgmr.msra.gmra.mxu1 %vm462_vm0, %v1900_v40  ;;  %v2790_v40 = vld [vmem:[%s3626_s6] sm:$0xff] }
0x1054   : > { %1609 = vmatpush.bf16.msra.mxu2 %v2790_v40 }
0x105a   : > { %v1376_v49 = vpop.permute.xlu1 %1375 }
0x10c0   : > { %v1728_v44 = vpop.f32.mrf.mxu1 }
0x10c1   : > { %v1729_v45 = vadd.f32 %v2854_v43, %v1728_v44 }
0x10c3   : > { %1732 = vst.msk [vmem:[#allocation2 + $0x28] sm:$0xff] %vm479_vm1, %v1729_v45 }
0x10c8   : > { %v1730_v46 = vpop.f32.mrf.mxu1 }
0x10d0   : > { %v1913_v47 = vpop.f32.mrf.mxu1 }
0x10d1   : > { %v1938_v48 = vadd.f32 %v1913_v47, %v3342_v25  ;;  %v1918_v60 = vadd.f32 %v1917_v58, %v1913_v47 }
0x10d3   : > { %1940 = vrot.lane.b32.xlu0 %v1938_v48, %s2983_s28  ;;  %v2739_v61 = vmul.f32 -1.442695, %v1918_v60  ;;  %v2784_v60 = vld [vmem:[%s3623_s3] sm:$0xff] }
0x10d6   : > { %v1347_v50 = vpop.f32.mrf.mxu2 }
0x10d7   : > { %v1378_v51 = vadd.f32 %v1376_v49, %v1347_v50  ;;  %v1352_v2 = vadd.f32 %v1351_v55, %v1347_v50 }
0x10d8   : > { %v1915_v52 = vpop.f32.mrf.mxu1 }
0x10d9   : > { %1380 = vrot.lane.b32.xlu2 %v1378_v51, %s2983_s28  ;;  %v2646_v56 = vmul.f32 -1.442695, %v1352_v2 }
0x10db   : > { %2902 = vpow2.f32 %v2646_v56 }
0x10de   : > { %v1349_v54 = vpop.f32.mrf.mxu2 }
0x10df   : > { %v2855_v54 = vld [vmem:[%s3628_s8] ss:$0 sm:$0xff] }
0x10e1   : > { %v2903_v57 = vpop.eup %2902 }
0x10e2   : > { %v1356_v59 = vadd.f32 1.0, %v2903_v57  ;;  %v2799_v57 = vld [vmem:[%s3626_s6 + $0x8] sm:$0xff] }
0x10e3   : > { %1764 = vmatpush.bf16.msrb.mxu2 %v2799_v57 }
0x10e4   : > { %2904 = vrcp.f32 %v1356_v59  ;;  %v1368_v10 = vand.u32 2147483648, %v1356_v59  ;;  %vm1362_vm3 = vweird.f32 %v1356_v59  ;;  %v1366_v11 = vand.u32 2147483647, %v1356_v59 }
0x10e5   : > { %2906 = vpow2.f32 %v2739_v61 }
0x10e6   : > { %v1369_v14 = vor.u32 1.1754944e-38, %v1368_v10  ;;  %vm1367_vm5 = vcmp.eq.f32.partialorder %v1366_v11, 8.507059e+37 }
0x10ea   : > { %v2905_v62 = vpop.eup %2904 }
0x10eb   : > { %v1358_v63 = vmul.f32 %v2905_v62, %v1356_v59  ;;  %v2907_v0 = vpop.eup %2906  ;;  %vm1363_vm2 = vweird.f32 %v2905_v62  ;;  %v2798_v59 = vld [vmem:[%s3626_s6] sm:$0xff] }
0x10ec   : > { %v1922_v4 = vadd.f32 1.0, %v2907_v0  ;;  %vm1364_vm4 = vmor %vm1362_vm3, %vm1363_vm2  ;;  %1765 = vmatpush.bf16.msrb.mxu2 %v2798_v59  ;;  %v2856_v0 = vld [vmem:[%s3625_s5] ss:$0 sm:$0xff] }
0x10ed   : > { %v1359_v1 = vsub.f32 1.0, %v1358_v63 }
0x10ee   : > { %2908 = vrcp.f32 %v1922_v4  ;;  %v1934_v20 = vand.u32 2147483648, %v1922_v4  ;;  %vm1928_vm7 = vweird.f32 %v1922_v4  ;;  %v1932_v21 = vand.u32 2147483647, %v1922_v4 }
0x10ef   : > { %v1360_v5 = vmul.f32 %v2905_v62, %v1359_v1 }
0x10f0   : > { %v1935_v27 = vor.u32 1.1754944e-38, %v1934_v20  ;;  %vm1933_vm9 = vcmp.eq.f32.partialorder %v1932_v21, 8.507059e+37 }
0x10f1   : > { %v1361_v6 = vadd.f32 %v2905_v62, %v1360_v5  ;;  %v2857_v5 = vld [vmem:[%s3628_s8] ss:$0 sm:$0xff] }
0x10f3   : > { %v1365_v13 = vsel %vm1364_vm4, %v2905_v62, %v1361_v6 }
0x10f4   : > { %v2909_v12 = vpop.eup %2908  ;;  %v1370_v16 = vsel %vm1367_vm5, %v1369_v14, %v1365_v13 }
0x10f5   : > { %v1924_v15 = vmul.f32 %v2909_v12, %v1922_v4  ;;  %vm1929_vm6 = vweird.f32 %v2909_v12 }
0x10f6   : > { %vm1930_vm8 = vmor %vm1928_vm7, %vm1929_vm6 }
0x10f7   : > { %v1925_v18 = vsub.f32 1.0, %v1924_v15 }
0x10f9   : > { %v1926_v53 = vmul.f32 %v2909_v12, %v1925_v18  ;;  %v1443_v18 = vld [vmem:[#allocation2 + $0x38] sm:$0xff] }
0x10fb   : > { %v1927_v19 = vadd.f32 %v2909_v12, %v1926_v53 }
0x10fd   : > { %v1931_v26 = vsel %vm1930_vm8, %v2909_v12, %v1927_v19 }
0x10fe   : > { %v1936_v29 = vsel %vm1933_vm9, %v1935_v27, %v1931_v26 }
0x1133   : > { %v1381_v3 = vpop.permute.xlu2 %1380 }
0x1134   : > { %v1383_v17 = vmul.f32 %v1381_v3, %v1370_v16 }
0x1136   : > { %1385 = vrot.lane.b32.xlu1 %v1383_v17, %s2983_s28 }
0x1145   : > { %v1941_v28 = vpop.permute.xlu0 %1940 }
0x1146   : > { %v1943_v30 = vmul.f32 %v1941_v28, %v1936_v29 }
0x1148   : > { %1945 = vrot.lane.b32.xlu2 %v1943_v30, %s2983_s28 }
0x11a2   : > { %v1946_v31 = vpop.permute.xlu2 %1945 }
0x11a3   : > { %v1948_v32 = vadd.f32 %v1946_v31, %v1917_v58  ;;  %v2785_v58 = vld [vmem:[%s3623_s3 + $0x8] sm:$0xff] }
0x11a4   : > { %1436 = vmatpush.bf16.msrb.mxu3 %v2785_v58 }
0x11a5   : > { %2910 = vtanh.f32 %v1948_v32 }
0x11a8   : > { %v1386_v33 = vpop.permute.xlu1 %1385  ;;  %1437 = vmatpush.bf16.msrb.mxu3 %v2784_v60 }
0x11a9   : > { %v1388_v34 = vadd.f32 %v1386_v33, %v1351_v55 }
0x11ab   : > { %v2911_v35 = vpop.eup %2910  ;;  %2912 = vtanh.f32 %v1388_v34 }
0x11ac   : > { %v1950_v36 = vsub.f32 %v3363_v23, %v2911_v35 }
0x11ae   : > { %1952 = vrot.lane.b32.xlu1 %v1950_v36, %s2984_s21 }
0x11b1   : > { %v2913_v37 = vpop.eup %2912 }
0x11b2   : > { %v1390_v38 = vsub.f32 %v3365_v24, %v2913_v37 }
0x11b4   : > { %1392 = vrot.lane.b32.xlu0 %v1390_v38, %s2984_s21 }
0x11b6   : > { %1034 = vrot.lane.b32.xlu1 %v3234_v41, %s2983_s28 }
0x1220   : > { %v1953_v42 = vpop.permute.xlu1 %1952 }
0x1221   : > { %v1955_v43 = vmul.f32 %v1953_v42, %v1936_v29 }
0x1223   : > { %1957 = vrot.lane.b32.xlu0 %v1955_v43, %s2985_s22 }
0x1226   : > { %v1393_v24 = vpop.permute.xlu0 %1392 }
0x1227   : > { %v1395_v44 = vmul.f32 %v1393_v24, %v1370_v16 }
0x1228   : > { %v1035_v45 = vpop.permute.xlu1 %1034 }
0x1229   : > { %1038 = vst.msk [vmem:[#allocation3 + $0x10] sm:$0xff] %vm462_vm0, %v1035_v45  ;;  %1397 = vrot.lane.b32.xlu2 %v1395_v44, %s2985_s22 }
0x1230   : > { %v1577_v41 = vld [vmem:[#allocation3 + $0x10] sm:$0xff] }
0x1231   : > { %v1578_v46 = vpack.c.bf16 %v1577_v41, %v1577_v41 }
0x1233   : > { %2683 = vmatmul.msk.bf16.vlgmr.msra.gmra.mxu2 %vm462_vm0, %v1578_v46 }
0x1234   : > { %1981 = vmatpush.bf16.msra.mxu2 %v3314_v7 }
0x1238   : > { %1982 = vmatpush.bf16.msra.mxu2 %v3320_v8 }
0x1283   : > { %v1398_v47 = vpop.permute.xlu2 %1397 }
0x1284   : > { %v3428_v48 = vadd.f32 %v2913_v37, %v1398_v47 }
0x1286   : > { %1402 = vrot.lane.b32.xlu2 %v3428_v48, %s2983_s28  ;;  %v1407_v49 = vpack.c.bf16 %v3428_v48, %v3428_v48 }
0x1288   : > { %1413 = vrot.lane.b32.xlu0 %v1407_v49, %s2983_s28 }
0x128e   : > { %1467 = vrot.lane.b32.xlu2 %v2856_v0, %s2983_s28  ;;  %v2793_v0 = vld [vmem:[%s3626_s6 + $0x8] sm:$0xff] }
0x128f   : > { %1647 = vmatpush.bf16.msra.mxu3 %v2793_v0 }
0x1295   : > { %v1958_v50 = vpop.permute.xlu0 %1957 }
0x1296   : > { %v3435_v51 = vadd.f32 %v2911_v35, %v1958_v50 }
0x1298   : > { %v1968_v52 = vpack.c.bf16 %v3435_v51, %v3435_v51 }
0x129a   : > { %1970 = vrot.lane.b32.xlu1 %v1968_v52, %s2983_s28 }
0x12b6   : > { %v1611_v55 = vpop.f32.mrf.mxu2 }
0x12b7   : > { %v1612_v2 = vadd.f32 %v2855_v54, %v1611_v55 }
0x12b9   : > { %1615 = vst.msk [vmem:[#allocation2 + $0x10] sm:$0xff] %vm479_vm1, %v1612_v2 }
0x12be   : > { %v1613_v56 = vpop.f32.mrf.mxu2 }
0x12c0   : > { %v1988_v26 = vld [vmem:[#allocation2 + $0x10] sm:$0xff] }
0x12e0   : > { %v1403_v61 = vpop.permute.xlu2 %1402 }
0x12e1   : > { %1406 = vst.msk [vmem:[#allocation3 + $0x30] sm:$0xff] %vm462_vm0, %v1403_v61 }
0x12e8   : > { %v1733_v62 = vld [vmem:[#allocation3 + $0x30] sm:$0xff]  ;;  %v1468_v12 = vpop.permute.xlu2 %1467 }
0x12e9   : > { %v1734_v63 = vpack.c.bf16 %v1733_v62, %v1733_v62 }
0x12eb   : > { %2719 = vmatmul.msk.bf16.vlgmr.msrb.gmra.mxu2 %vm462_vm0, %v1734_v63 }
0x12ec   : > { %2265 = vmatpush.bf16.msrb.mxu2 %v3314_v7 }
0x12f0   : > { %2266 = vmatpush.bf16.msrb.mxu2 %v3320_v8 }
0x12fa   : > { %v1414_v1 = vpop.permute.xlu0 %1413 }
0x12fb   : > { %2655 = vmatmul.msk.bf16.vlgmr.msrb.gmra.mxu3 %vm462_vm0, %v1414_v1 }
0x130c   : > { %v1971_v4 = vpop.permute.xlu1 %1970 }
0x130d   : > { %2740 = vmatmul.msk.bf16.vlgmr.msra.gmra.mxu2 %vm462_vm0, %v1971_v4 }
0x136e   : > { %v1767_v6 = vpop.f32.mrf.mxu2 }
0x136f   : > { %v1768_v10 = vadd.f32 %v2857_v5, %v1767_v6 }
0x1371   : > { %1771 = vst.msk [vmem:[#allocation2 + $0x30] sm:$0xff] %vm479_vm1, %v1768_v10 }
0x1376   : > { %v1769_v11 = vpop.f32.mrf.mxu2 }
0x137e   : > { %v1439_v13 = vpop.f32.mrf.mxu3 }
0x137f   : > { %v1470_v14 = vadd.f32 %v1468_v12, %v1439_v13  ;;  %v1444_v53 = vadd.f32 %v1443_v18, %v1439_v13 }
0x1381   : > { %1472 = vrot.lane.b32.xlu0 %v1470_v14, %s2983_s28  ;;  %v2656_v19 = vmul.f32 -1.442695, %v1444_v53 }
0x1383   : > { %2914 = vpow2.f32 %v2656_v19 }
0x1386   : > { %v1441_v15 = vpop.f32.mrf.mxu3 }
0x1389   : > { %v2915_v20 = vpop.eup %2914 }
0x138a   : > { %v1448_v21 = vadd.f32 1.0, %v2915_v20  ;;  %v2800_v20 = vld [vmem:[%s3626_s6] sm:$0xff] }
0x138c   : > { %2916 = vrcp.f32 %v1448_v21  ;;  %v1460_v36 = vand.u32 2147483648, %v1448_v21  ;;  %vm1454_vm11 = vweird.f32 %v1448_v21  ;;  %v1458_v37 = vand.u32 2147483647, %v1448_v21 }
0x138e   : > { %v1461_v40 = vor.u32 1.1754944e-38, %v1460_v36  ;;  %vm1459_vm13 = vcmp.eq.f32.partialorder %v1458_v37, 8.507059e+37 }
0x1390   : > { %v1984_v16 = vpop.f32.mrf.mxu2 }
0x1391   : > { %v2009_v3 = vadd.f32 %v1984_v16, %v3342_v25  ;;  %v1989_v27 = vadd.f32 %v1988_v26, %v1984_v16 }
0x1392   : > { %v2917_v29 = vpop.eup %2916 }
0x1393   : > { %2011 = vrot.lane.b32.xlu1 %v2009_v3, %s2983_s28  ;;  %v2741_v28 = vmul.f32 -1.442695, %v1989_v27  ;;  %v1450_v30 = vmul.f32 %v2917_v29, %v1448_v21  ;;  %vm1455_vm10 = vweird.f32 %v2917_v29  ;;  %v2801_v3 = vld [vmem:[%s3626_s6 + $0x8] sm:$0xff] }
0x1394   : > { %vm1456_vm12 = vmor %vm1454_vm11, %vm1455_vm10 }
0x1395   : > { %2918 = vpow2.f32 %v2741_v28  ;;  %v1451_v32 = vsub.f32 1.0, %v1450_v30 }
0x1397   : > { %v1452_v34 = vmul.f32 %v2917_v29, %v1451_v32 }
0x1398   : > { %v1986_v17 = vpop.f32.mrf.mxu2 }
0x1399   : > { %v1453_v35 = vadd.f32 %v2917_v29, %v1452_v34  ;;  %v2858_v17 = vld [vmem:[%s3628_s8] ss:$0 sm:$0xff] }
0x139b   : > { %v2919_v31 = vpop.eup %2918  ;;  %v1457_v39 = vsel %vm1456_vm12, %v2917_v29, %v1453_v35  ;;  %v2859_v29 = vld [vmem:[%s3628_s8] ss:$0 sm:$0xff] }
0x139c   : > { %v1993_v33 = vadd.f32 1.0, %v2919_v31  ;;  %v1462_v24 = vsel %vm1459_vm13, %v1461_v40, %v1457_v39 }
0x139e   : > { %2920 = vrcp.f32 %v1993_v33  ;;  %v2005_v47 = vand.u32 2147483648, %v1993_v33  ;;  %vm1999_vm15 = vweird.f32 %v1993_v33  ;;  %v2003_v49 = vand.u32 2147483647, %v1993_v33 }
0x13a0   : > { %v2006_v52 = vor.u32 1.1754944e-38, %v2005_v47  ;;  %vm2004_vm3 = vcmp.eq.f32.partialorder %v2003_v49, 8.507059e+37 }
0x13a4   : > { %v2921_v38 = vpop.eup %2920 }
0x13a5   : > { %v1995_v42 = vmul.f32 %v2921_v38, %v1993_v33  ;;  %vm2000_vm14 = vweird.f32 %v2921_v38 }
0x13a6   : > { %vm2001_vm2 = vmor %vm1999_vm15, %vm2000_vm14 }
0x13a7   : > { %v1996_v45 = vsub.f32 1.0, %v1995_v42 }
0x13a9   : > { %v1997_v41 = vmul.f32 %v2921_v38, %v1996_v45 }
0x13ab   : > { %v1998_v46 = vadd.f32 %v2921_v38, %v1997_v41 }
0x13ad   : > { %v2002_v50 = vsel %vm2001_vm2, %v2921_v38, %v1998_v46 }
0x13ae   : > { %v2007_v55 = vsel %vm2004_vm3, %v2006_v52, %v2002_v50 }
0x13f3   : > { %v1473_v43 = vpop.permute.xlu0 %1472 }
0x13f4   : > { %v1475_v44 = vmul.f32 %v1473_v43, %v1462_v24 }
0x13f6   : > { %1477 = vrot.lane.b32.xlu2 %v1475_v44, %s2983_s28 }
0x1405   : > { %v2012_v54 = vpop.permute.xlu1 %2011 }
0x1406   : > { %v2014_v2 = vmul.f32 %v2012_v54, %v2007_v55 }
0x1408   : > { %2016 = vrot.lane.b32.xlu0 %v2014_v2, %s2983_s28 }
0x1450   : > { %v1478_v56 = vpop.permute.xlu2 %1477 }
0x1451   : > { %v1480_v57 = vadd.f32 %v1478_v56, %v1443_v18 }
0x1453   : > { %2922 = vtanh.f32 %v1480_v57 }
0x1459   : > { %v2923_v58 = vpop.eup %2922 }
0x145a   : > { %v1482_v59 = vsub.f32 %v3428_v48, %v2923_v58  ;;  %v2792_v48 = vld [vmem:[%s3626_s6] sm:$0xff] }
0x145b   : > { %1648 = vmatpush.bf16.msra.mxu3 %v2792_v48  ;;  %v2130_v48 = vld [vmem:[#allocation2 + $0x20] sm:$0xff] }
0x145c   : > { %1484 = vrot.lane.b32.xlu1 %v1482_v59, %s2984_s21 }
0x145f   : > { %1803 = vmatpush.bf16.msrb.mxu3 %v2801_v3 }
0x1463   : > { %1804 = vmatpush.bf16.msrb.mxu3 %v2800_v20 }
0x147a   : > { %v2017_v60 = vpop.permute.xlu0 %2016 }
0x147b   : > { %v2019_v61 = vadd.f32 %v2017_v60, %v1988_v26 }
0x147d   : > { %2924 = vtanh.f32 %v2019_v61 }
0x1483   : > { %v2925_v62 = vpop.eup %2924 }
0x1484   : > { %v2021_v63 = vsub.f32 %v3435_v51, %v2925_v62 }
0x1486   : > { %2023 = vrot.lane.b32.xlu2 %v2021_v63, %s2984_s21 }
0x148e   : > { %1126 = vrot.lane.b32.xlu2 %v3263_v22, %s2983_s28 }
0x14ce   : > { %v1485_v1 = vpop.permute.xlu1 %1484 }
0x14cf   : > { %v1487_v4 = vmul.f32 %v1485_v1, %v1462_v24 }
0x14d1   : > { %1489 = vrot.lane.b32.xlu0 %v1487_v4, %s2985_s22 }
0x14e0   : > { %v2024_v5 = vpop.permute.xlu2 %2023 }
0x14e1   : > { %v2026_v6 = vmul.f32 %v2024_v5, %v2007_v55 }
0x14e3   : > { %2028 = vrot.lane.b32.xlu1 %v2026_v6, %s2985_s22 }
0x14e8   : > { %v1127_v10 = vpop.permute.xlu2 %1126 }
0x14e9   : > { %1130 = vst.msk [vmem:[#allocation3 + $0x18] sm:$0xff] %vm462_vm0, %v1127_v10 }
0x14f0   : > { %v1616_v22 = vld [vmem:[#allocation3 + $0x18] sm:$0xff] }
0x14f1   : > { %v1617_v11 = vpack.c.bf16 %v1616_v22, %v1616_v22 }
0x14f3   : > { %2692 = vmatmul.msk.bf16.vlgmr.msra.gmra.mxu3 %vm462_vm0, %v1617_v11 }
0x14f4   : > { %2052 = vmatpush.bf16.msra.mxu3 %v3314_v7 }
0x14f8   : > { %2053 = vmatpush.bf16.msra.mxu3 %v3320_v8 }
0x1543   : > { %v1490_v12 = vpop.permute.xlu0 %1489 }
0x1544   : > { %v1492_v13 = vadd.f32 %v2923_v58, %v1490_v12 }
0x1546   : > { %1494 = vrot.lane.b32.xlu0 %v1492_v13, %s2983_s28 }
0x1555   : > { %v2029_v14 = vpop.permute.xlu1 %2028 }
0x1556   : > { %v3494_v15 = vadd.f32 %v2925_v62, %v2029_v14 }
0x1558   : > { %v2039_v16 = vpack.c.bf16 %v3494_v15, %v3494_v15 }
0x155a   : > { %2041 = vrot.lane.b32.xlu1 %v2039_v16, %s2983_s28 }
0x1576   : > { %v1650_v18 = vpop.f32.mrf.mxu3 }
0x1577   : > { %v1651_v53 = vadd.f32 %v2858_v17, %v1650_v18 }
0x1579   : > { %1654 = vst.msk [vmem:[#allocation2 + $0x18] sm:$0xff] %vm479_vm1, %v1651_v53 }
0x157e   : > { %v1652_v19 = vpop.f32.mrf.mxu3 }
0x1580   : > { %v2059_v35 = vld [vmem:[#allocation2 + $0x18] sm:$0xff] }
0x15b8   : > { %v1495_v21 = vpop.permute.xlu0 %1494 }
0x15b9   : > { %1498 = vst.msk [vmem:[#allocation3 + $0x38] sm:$0xff] %vm462_vm0, %v1495_v21 }
0x15c0   : > { %v1772_v26 = vld [vmem:[#allocation3 + $0x38] sm:$0xff] }
0x15c1   : > { %v1773_v27 = vpack.c.bf16 %v1772_v26, %v1772_v26 }
0x15c3   : > { %2728 = vmatmul.msk.bf16.vlgmr.msrb.gmra.mxu3 %vm462_vm0, %v1773_v27 }
0x15c4   : > { %2336 = vmatpush.bf16.msrb.mxu3 %v3314_v7 }
0x15c8   : > { %2337 = vmatpush.bf16.msrb.mxu3 %v3320_v8 }
0x15cc   : > { %v2042_v28 = vpop.permute.xlu1 %2041 }
0x15d3   : > { %2742 = vmatmul.msk.bf16.vlgmr.msra.gmra.mxu3 %vm462_vm0, %v2042_v28 }
0x1646   : > { %v1806_v30 = vpop.f32.mrf.mxu3 }
0x1647   : > { %v1807_v31 = vadd.f32 %v2859_v29, %v1806_v30 }
0x1649   : > { %1810 = vst.msk [vmem:[#allocation2 + $0x38] sm:$0xff] %vm479_vm1, %v1807_v31 }
0x164e   : > { %v1808_v32 = vpop.f32.mrf.mxu3 }
0x1656   : > { %v2055_v33 = vpop.f32.mrf.mxu3 }
0x1657   : > { %v2080_v34 = vadd.f32 %v2055_v33, %v3342_v25  ;;  %v2060_v8 = vadd.f32 %v2059_v35, %v2055_v33 }
0x1659   : > { %2082 = vrot.lane.b32.xlu2 %v2080_v34, %s2983_s28  ;;  %v2743_v36 = vmul.f32 -1.442695, %v2060_v8  ;;  %v2201_v8 = vld [vmem:[#allocation2 + $0x28] sm:$0xff] }
0x165b   : > { %2926 = vpow2.f32 %v2743_v36 }
0x165e   : > { %v2057_v7 = vpop.f32.mrf.mxu3 }
0x1661   : > { %v2927_v37 = vpop.eup %2926 }
0x1662   : > { %v2064_v38 = vadd.f32 1.0, %v2927_v37 }
0x1664   : > { %2928 = vrcp.f32 %v2064_v38  ;;  %v2076_v44 = vand.u32 2147483648, %v2064_v38  ;;  %vm2070_vm4 = vweird.f32 %v2064_v38  ;;  %v2074_v45 = vand.u32 2147483647, %v2064_v38 }
0x1666   : > { %v2077_v46 = vor.u32 1.1754944e-38, %v2076_v44  ;;  %vm2075_vm6 = vcmp.eq.f32.partialorder %v2074_v45, 8.507059e+37 }
0x166a   : > { %v2929_v39 = vpop.eup %2928 }
0x166b   : > { %v2066_v40 = vmul.f32 %v2929_v39, %v2064_v38  ;;  %vm2071_vm1 = vweird.f32 %v2929_v39 }
0x166c   : > { %vm2072_vm5 = vmor %vm2070_vm4, %vm2071_vm1 }
0x166d   : > { %v2067_v42 = vsub.f32 1.0, %v2066_v40 }
0x166f   : > { %v2068_v43 = vmul.f32 %v2929_v39, %v2067_v42 }
0x1671   : > { %v2069_v24 = vadd.f32 %v2929_v39, %v2068_v43 }
0x1673   : > { %v2073_v41 = vsel %vm2072_vm5, %v2929_v39, %v2069_v24 }
0x1674   : > { %v2078_v49 = vsel %vm2075_vm6, %v2077_v46, %v2073_v41 }
0x16b3   : > { %v2083_v47 = vpop.permute.xlu2 %2082 }
0x16b4   : > { %v2085_v50 = vmul.f32 %v2083_v47, %v2078_v49 }
0x16b6   : > { %2087 = vrot.lane.b32.xlu0 %v2085_v50, %s2983_s28 }
0x1728   : > { %v2088_v52 = vpop.permute.xlu0 %2087 }
0x1729   : > { %v2090_v54 = vadd.f32 %v2088_v52, %v2059_v35 }
0x172b   : > { %2930 = vtanh.f32 %v2090_v54 }
0x1731   : > { %v2931_v55 = vpop.eup %2930 }
0x1732   : > { %v2092_v2 = vsub.f32 %v3494_v15, %v2931_v55 }
0x1734   : > { %2094 = vrot.lane.b32.xlu1 %v2092_v2, %s2984_s21 }
0x17a6   : > { %v2095_v56 = vpop.permute.xlu1 %2094 }
0x17a7   : > { %v2097_v57 = vmul.f32 %v2095_v56, %v2078_v49 }
0x17a9   : > { %2099 = vrot.lane.b32.xlu2 %v2097_v57, %s2985_s22 }
0x1803   : > { %v2100_v58 = vpop.permute.xlu2 %2099 }
0x1804   : > { %v3526_v59 = vadd.f32 %v2931_v55, %v2100_v58 }
0x1806   : > { %v2110_v60 = vpack.c.bf16 %v3526_v59, %v3526_v59 }
0x1808   : > { %2112 = vrot.lane.b32.xlu0 %v2110_v60, %s2983_s28 }
0x187a   : > { %v2113_v61 = vpop.permute.xlu0 %2112 }
0x187b   : > { %2744 = vmatmul.msk.bf16.vlgmr.msrb.gmra.mxu0 %vm462_vm0, %v2113_v61 }
0x18f8   : > { %v2126_v62 = vpop.f32.mrf.mxu0 }
0x18f9   : > { %v2151_v63 = vadd.f32 %v2126_v62, %v3342_v25  ;;  %v2131_v1 = vadd.f32 %v2130_v48, %v2126_v62 }
0x18fb   : > { %2153 = vrot.lane.b32.xlu1 %v2151_v63, %s2983_s28  ;;  %v2745_v4 = vmul.f32 -1.442695, %v2131_v1 }
0x18fd   : > { %2932 = vpow2.f32 %v2745_v4  ;;  %v2272_v4 = vld [vmem:[#allocation2 + $0x30] sm:$0xff] }
0x1900   : > { %v2128_v0 = vpop.f32.mrf.mxu0 }
0x1903   : > { %v2933_v5 = vpop.eup %2932 }
0x1904   : > { %v2135_v6 = vadd.f32 1.0, %v2933_v5 }
0x1906   : > { %2934 = vrcp.f32 %v2135_v6  ;;  %v2147_v14 = vand.u32 2147483648, %v2135_v6  ;;  %vm2141_vm8 = vweird.f32 %v2135_v6  ;;  %v2145_v16 = vand.u32 2147483647, %v2135_v6 }
0x1908   : > { %v2148_v17 = vor.u32 1.1754944e-38, %v2147_v14  ;;  %vm2146_vm10 = vcmp.eq.f32.partialorder %v2145_v16, 8.507059e+37 }
0x190c   : > { %v2935_v10 = vpop.eup %2934 }
0x190d   : > { %v2137_v22 = vmul.f32 %v2935_v10, %v2135_v6  ;;  %vm2142_vm7 = vweird.f32 %v2935_v10 }
0x190e   : > { %vm2143_vm9 = vmor %vm2141_vm8, %vm2142_vm7 }
0x190f   : > { %v2138_v11 = vsub.f32 1.0, %v2137_v22 }
0x1911   : > { %v2139_v12 = vmul.f32 %v2935_v10, %v2138_v11 }
0x1913   : > { %v2140_v13 = vadd.f32 %v2935_v10, %v2139_v12 }
0x1915   : > { %v2144_v3 = vsel %vm2143_vm9, %v2935_v10, %v2140_v13 }
0x1916   : > { %v2149_v53 = vsel %vm2146_vm10, %v2148_v17, %v2144_v3 }
0x196d   : > { %v2154_v18 = vpop.permute.xlu1 %2153 }
0x196e   : > { %v2156_v19 = vmul.f32 %v2154_v18, %v2149_v53 }
0x1970   : > { %2158 = vrot.lane.b32.xlu2 %v2156_v19, %s2983_s28 }
0x19ca   : > { %v2159_v20 = vpop.permute.xlu2 %2158 }
0x19cb   : > { %v2161_v21 = vadd.f32 %v2159_v20, %v2130_v48 }
0x19cd   : > { %2936 = vtanh.f32 %v2161_v21 }
0x19d3   : > { %v2937_v26 = vpop.eup %2936 }
0x19d4   : > { %v2163_v27 = vsub.f32 %v3526_v59, %v2937_v26 }
0x19d6   : > { %2165 = vrot.lane.b32.xlu0 %v2163_v27, %s2984_s21 }
0x1a48   : > { %v2166_v28 = vpop.permute.xlu0 %2165 }
0x1a49   : > { %v2168_v29 = vmul.f32 %v2166_v28, %v2149_v53 }
0x1a4b   : > { %2170 = vrot.lane.b32.xlu1 %v2168_v29, %s2985_s22 }
0x1abd   : > { %v2171_v30 = vpop.permute.xlu1 %2170 }
0x1abe   : > { %v3538_v31 = vadd.f32 %v2937_v26, %v2171_v30 }
0x1ac0   : > { %v2181_v32 = vpack.c.bf16 %v3538_v31, %v3538_v31 }
0x1ac2   : > { %2183 = vrot.lane.b32.xlu2 %v2181_v32, %s2983_s28 }
0x1b1c   : > { %v2184_v33 = vpop.permute.xlu2 %2183 }
0x1b1d   : > { %2746 = vmatmul.msk.bf16.vlgmr.msrb.gmra.mxu1 %vm462_vm0, %v2184_v33 }
0x1b9a   : > { %v2197_v34 = vpop.f32.mrf.mxu1 }
0x1b9b   : > { %v2222_v7 = vadd.f32 %v2197_v34, %v3342_v25  ;;  %v2202_v36 = vadd.f32 %v2201_v8, %v2197_v34 }
0x1b9d   : > { %2224 = vrot.lane.b32.xlu0 %v2222_v7, %s2983_s28  ;;  %v2747_v37 = vmul.f32 -1.442695, %v2202_v36 }
0x1b9f   : > { %2938 = vpow2.f32 %v2747_v37  ;;  %v439_v37 = vld [vmem:[%s433_s30] sm:$0xff] }
0x1ba0   : > { %vm1890_vm4 = vcmp.eq.s32.totalorder %v439_v37, 1  ;;  %vm1961_vm9 = vcmp.eq.s32.totalorder %v439_v37, 2  ;;  %vm2103_vm10 = vcmp.eq.s32.totalorder %v439_v37, 4 }
0x1ba2   : > { %v2199_v35 = vpop.f32.mrf.mxu1 }
0x1ba5   : > { %v2939_v38 = vpop.eup %2938 }
0x1ba6   : > { %v2206_v39 = vadd.f32 1.0, %v2939_v38 }
0x1ba8   : > { %2940 = vrcp.f32 %v2206_v39  ;;  %v2218_v45 = vand.u32 2147483648, %v2206_v39  ;;  %vm2212_vm12 = vweird.f32 %v2206_v39  ;;  %v2216_v41 = vand.u32 2147483647, %v2206_v39 }
0x1baa   : > { %v2219_v47 = vor.u32 1.1754944e-38, %v2218_v45  ;;  %vm2217_vm14 = vcmp.eq.f32.partialorder %v2216_v41, 8.507059e+37 }
0x1bae   : > { %v2941_v40 = vpop.eup %2940 }
0x1baf   : > { %v2208_v42 = vmul.f32 %v2941_v40, %v2206_v39  ;;  %vm2213_vm11 = vweird.f32 %v2941_v40  ;;  %v1891_v39 = vsel %vm1890_vm4, 1, %v2982_v9 }
0x1bb0   : > { %vm2214_vm13 = vmor %vm2212_vm12, %vm2213_vm11  ;;  %vm2245_vm11 = vcmp.eq.s32.totalorder %v439_v37, 6  ;;  %vm2174_vm12 = vcmp.eq.s32.totalorder %v439_v37, 5 }
0x1bb1   : > { %v2209_v43 = vsub.f32 1.0, %v2208_v42 }
0x1bb3   : > { %v2210_v24 = vmul.f32 %v2941_v40, %v2209_v43 }
0x1bb5   : > { %v2211_v44 = vadd.f32 %v2941_v40, %v2210_v24 }
0x1bb7   : > { %v2215_v46 = vsel %vm2214_vm13, %v2941_v40, %v2211_v44  ;;  %v2343_v40 = vld [vmem:[#allocation2 + $0x38] sm:$0xff]  ;;  %vm2316_vm13 = vcmp.eq.s32.totalorder %v439_v37, 7 }
0x1bb8   : > { %v2220_v50 = vsel %vm2217_vm14, %v2219_v47, %v2215_v46  ;;  %vm2387_vm14 = vcmp.eq.s32.totalorder %v439_v37, 8 }
0x1c0f   : > { %v2225_v49 = vpop.permute.xlu0 %2224 }
0x1c10   : > { %v2227_v52 = vmul.f32 %v2225_v49, %v2220_v50 }
0x1c12   : > { %2229 = vrot.lane.b32.xlu1 %v2227_v52, %s2983_s28 }
0x1c84   : > { %v2230_v54 = vpop.permute.xlu1 %2229 }
0x1c85   : > { %v2232_v55 = vadd.f32 %v2230_v54, %v2201_v8 }
0x1c87   : > { %2942 = vtanh.f32 %v2232_v55 }
0x1c8d   : > { %v2943_v2 = vpop.eup %2942 }
0x1c8e   : > { %v2234_v56 = vsub.f32 %v3538_v31, %v2943_v2 }
0x1c90   : > { %2236 = vrot.lane.b32.xlu2 %v2234_v56, %s2984_s21 }
0x1cea   : > { %v2237_v57 = vpop.permute.xlu2 %2236 }
0x1ceb   : > { %v2239_v58 = vmul.f32 %v2237_v57, %v2220_v50  ;;  %v1962_v57 = vsel %vm1961_vm9, 1, %v2982_v9 }
0x1ced   : > { %2241 = vrot.lane.b32.xlu0 %v2239_v58, %s2985_s22  ;;  %v2104_v58 = vsel %vm2103_vm10, 1, %v2982_v9 }
0x1d5f   : > { %v2242_v60 = vpop.permute.xlu0 %2241 }
0x1d60   : > { %v3550_v61 = vadd.f32 %v2943_v2, %v2242_v60  ;;  %v2246_v60 = vsel %vm2245_vm11, 1, %v2982_v9 }
0x1d62   : > { %v2252_v62 = vpack.c.bf16 %v3550_v61, %v3550_v61 }
0x1d64   : > { %2254 = vrot.lane.b32.xlu1 %v2252_v62, %s2983_s28  ;;  %v2175_v62 = vsel %vm2174_vm12, 1, %v2982_v9 }
0x1dd6   : > { %v2255_v63 = vpop.permute.xlu1 %2254 }
0x1dd7   : > { %2748 = vmatmul.msk.bf16.vlgmr.msrb.gmra.mxu2 %vm462_vm0, %v2255_v63  ;;  %v2317_v63 = vsel %vm2316_vm13, 1, %v2982_v9 }
0x1e5a   : > { %v2268_v0 = vpop.f32.mrf.mxu2 }
0x1e5b   : > { %v2293_v48 = vadd.f32 %v2268_v0, %v3342_v25  ;;  %v2273_v5 = vadd.f32 %v2272_v4, %v2268_v0  ;;  %v2388_v0 = vsel %vm2387_vm14, 1, %v2982_v9 }
0x1e5d   : > { %2295 = vrot.lane.b32.xlu2 %v2293_v48, %s2983_s28  ;;  %v2749_v6 = vmul.f32 -1.442695, %v2273_v5 }
0x1e5f   : > { %2944 = vpow2.f32 %v2749_v6 }
0x1e62   : > { %v2270_v1 = vpop.f32.mrf.mxu2 }
0x1e65   : > { %v2945_v10 = vpop.eup %2944 }
0x1e66   : > { %v2277_v22 = vadd.f32 1.0, %v2945_v10 }
0x1e68   : > { %2946 = vrcp.f32 %v2277_v22  ;;  %v2289_v3 = vand.u32 2147483648, %v2277_v22  ;;  %vm2283_vm2 = vweird.f32 %v2277_v22  ;;  %v2287_v17 = vand.u32 2147483647, %v2277_v22 }
0x1e6a   : > { %v2290_v53 = vor.u32 1.1754944e-38, %v2289_v3  ;;  %vm2288_vm1 = vcmp.eq.f32.partialorder %v2287_v17, 8.507059e+37 }
0x1e6e   : > { %v2947_v11 = vpop.eup %2946 }
0x1e6f   : > { %v2279_v12 = vmul.f32 %v2947_v11, %v2277_v22  ;;  %vm2284_vm15 = vweird.f32 %v2947_v11 }
0x1e70   : > { %vm2285_vm3 = vmor %vm2283_vm2, %vm2284_vm15  ;;  %vm2032_vm15 = vcmp.eq.s32.totalorder %v439_v37, 3 }
0x1e71   : > { %v2280_v13 = vsub.f32 1.0, %v2279_v12  ;;  %v2033_v6 = vsel %vm2032_vm15, 1, %v2982_v9 }
0x1e73   : > { %v2281_v14 = vmul.f32 %v2947_v11, %v2280_v13 }
0x1e75   : > { %v2282_v16 = vadd.f32 %v2947_v11, %v2281_v14 }
0x1e77   : > { %v2286_v18 = vsel %vm2285_vm3, %v2947_v11, %v2282_v16 }
0x1e78   : > { %v2291_v20 = vsel %vm2288_vm1, %v2290_v53, %v2286_v18 }
0x1eb7   : > { %v2296_v19 = vpop.permute.xlu2 %2295 }
0x1eb8   : > { %v2298_v21 = vmul.f32 %v2296_v19, %v2291_v20 }
0x1eba   : > { %2300 = vrot.lane.b32.xlu0 %v2298_v21, %s2983_s28 }
0x1f2c   : > { %v2301_v26 = vpop.permute.xlu0 %2300 }
0x1f2d   : > { %v2303_v27 = vadd.f32 %v2301_v26, %v2272_v4 }
0x1f2f   : > { %2948 = vtanh.f32 %v2303_v27 }
0x1f35   : > { %v2949_v28 = vpop.eup %2948 }
0x1f36   : > { %v2305_v29 = vsub.f32 %v3550_v61, %v2949_v28 }
0x1f38   : > { %2307 = vrot.lane.b32.xlu1 %v2305_v29, %s2984_s21 }
0x1faa   : > { %v2308_v30 = vpop.permute.xlu1 %2307 }
0x1fab   : > { %v2310_v32 = vmul.f32 %v2308_v30, %v2291_v20 }
0x1fad   : > { %2312 = vrot.lane.b32.xlu2 %v2310_v32, %s2985_s22 }
0x2007   : > { %v2313_v33 = vpop.permute.xlu2 %2312 }
0x2008   : > { %v3562_v34 = vadd.f32 %v2949_v28, %v2313_v33 }
0x200a   : > { %v2323_v7 = vpack.c.bf16 %v3562_v34, %v3562_v34 }
0x200c   : > { %2325 = vrot.lane.b32.xlu0 %v2323_v7, %s2983_s28 }
0x207e   : > { %v2326_v35 = vpop.permute.xlu0 %2325 }
0x207f   : > { %2750 = vmatmul.msk.bf16.vlgmr.msrb.gmra.mxu3 %vm462_vm0, %v2326_v35 }
0x2102   : > { %v2339_v8 = vpop.f32.mrf.mxu3 }
0x2103   : > { %v2364_v36 = vadd.f32 %v2339_v8, %v3342_v25  ;;  %v2344_v42 = vadd.f32 %v2343_v40, %v2339_v8 }
0x2105   : > { %2366 = vrot.lane.b32.xlu1 %v2364_v36, %s2983_s28  ;;  %v2751_v43 = vmul.f32 -1.442695, %v2344_v42 }
0x2107   : > { %2950 = vpow2.f32 %v2751_v43 }
0x210a   : > { %v2341_v38 = vpop.f32.mrf.mxu3 }
0x210d   : > { %1893 = vperm.xlu1 %2832, %v1891_v39   ;;  %v2951_v24 = vpop.eup %2950 }
0x210e   : > { %v2348_v44 = vadd.f32 1.0, %v2951_v24 }
0x2110   : > { %2952 = vrcp.f32 %v2348_v44  ;;  %v2360_v49 = vand.u32 2147483648, %v2348_v44  ;;  %vm2354_vm6 = vweird.f32 %v2348_v44  ;;  %v2358_v50 = vand.u32 2147483647, %v2348_v44 }
0x2112   : > { %v2361_v54 = vor.u32 1.1754944e-38, %v2360_v49  ;;  %vm2359_vm8 = vcmp.eq.f32.partialorder %v2358_v50, 8.507059e+37 }
0x2115   : > { %2106 = vperm.xlu1 %2832, %v2104_v58  }
0x2116   : > { %v2953_v45 = vpop.eup %2952 }
0x2117   : > { %v2350_v41 = vmul.f32 %v2953_v45, %v2348_v44  ;;  %vm2355_vm5 = vweird.f32 %v2953_v45 }
0x2118   : > { %vm2356_vm7 = vmor %vm2354_vm6, %vm2355_vm5 }
0x2119   : > { %v2351_v46 = vsub.f32 1.0, %v2350_v41 }
0x211b   : > { %v2352_v47 = vmul.f32 %v2953_v45, %v2351_v46 }
0x211d   : > { %v2353_v25 = vadd.f32 %v2953_v45, %v2352_v47  ;;  %2248 = vperm.xlu1 %2832, %v2246_v60  }
0x211f   : > { %v2357_v52 = vsel %vm2356_vm7, %v2953_v45, %v2353_v25 }
0x2120   : > { %v2362_v2 = vsel %vm2359_vm8, %v2361_v54, %v2357_v52 }
0x2125   : > { %2390 = vperm.xlu1 %2832, %v2388_v0  }
0x2177   : > { %v2367_v55 = vpop.permute.xlu1 %2366 }
0x2178   : > { %v2369_v56 = vmul.f32 %v2367_v55, %v2362_v2 }
0x217a   : > { %2371 = vrot.lane.b32.xlu2 %v2369_v56, %s2983_s28 }
0x217f   : > { %v1894_v11 = vpop.permute.xlu1 %1893 }
0x2180   : > { %vm1895_vm2 = vcmp.eq.s32.totalorder %v1894_v11, 1 }
0x2181   : > { %v1896_v3 = vsel %vm1895_vm2, %v3363_v23, 0.0 }
0x2182   : > { %1964 = vperm.xlu2 %2833, %v1962_v57  }
0x2187   : > { %v2107_v13 = vpop.permute.xlu1 %2106 }
0x2188   : > { %vm2108_vm4 = vcmp.eq.s32.totalorder %v2107_v13, 1 }
0x218a   : > { %2177 = vperm.xlu2 %2833, %v2175_v62  }
0x218f   : > { %v2249_v18 = vpop.permute.xlu1 %2248 }
0x2190   : > { %vm2250_vm6 = vcmp.eq.s32.totalorder %v2249_v18, 1 }
0x2192   : > { %2319 = vperm.xlu2 %2833, %v2317_v63  }
0x2197   : > { %v2391_v26 = vpop.permute.xlu1 %2390 }
0x2198   : > { %vm2392_vm8 = vcmp.eq.s32.totalorder %v2391_v26, 1 }
0x21d4   : > { %v2372_v48 = vpop.permute.xlu2 %2371 }
0x21d5   : > { %v2374_v1 = vadd.f32 %v2372_v48, %v2343_v40 }
0x21d7   : > { %2954 = vtanh.f32 %v2374_v1 }
0x21dc   : > { %v1965_v12 = vpop.permute.xlu2 %1964 }
0x21dd   : > { %v2955_v4 = vpop.eup %2954  ;;  %vm1966_vm3 = vcmp.eq.s32.totalorder %v1965_v12, 1 }
0x21de   : > { %v2376_v5 = vsub.f32 %v3562_v34, %v2955_v4  ;;  %v1967_v17 = vsel %vm1966_vm3, %v3435_v51, %v1896_v3 }
0x21e0   : > { %2378 = vrot.lane.b32.xlu0 %v2376_v5, %s2984_s21 }
0x21e4   : > { %v2178_v16 = vpop.permute.xlu2 %2177 }
0x21e5   : > { %vm2179_vm5 = vcmp.eq.s32.totalorder %v2178_v16, 1 }
0x21e8   : > { %2035 = vperm.xlu0 %2834, %v2033_v6  }
0x21ec   : > { %v2320_v20 = vpop.permute.xlu2 %2319 }
0x21ed   : > { %vm2321_vm7 = vcmp.eq.s32.totalorder %v2320_v20, 1 }
0x2252   : > { %v2379_v10 = vpop.permute.xlu0 %2378 }
0x2253   : > { %v2381_v22 = vmul.f32 %v2379_v10, %v2362_v2 }
0x2255   : > { %2383 = vrot.lane.b32.xlu0 %v2381_v22, %s2985_s22  ;;  %s437_s22 = scalar_lea.vmem %s3630_s10, %s2497_s27 }
0x225a   : > { %v2036_v14 = vpop.permute.xlu0 %2035 }
0x225b   : > { %vm2037_vm1 = vcmp.eq.s32.totalorder %v2036_v14, 1 }
0x225c   : > { %v2038_v9 = vsel %vm2037_vm1, %v3494_v15, %v1967_v17 }
0x225d   : > { %v2109_v53 = vsel %vm2108_vm4, %v3526_v59, %v2038_v9 }
0x225e   : > { %v2180_v19 = vsel %vm2179_vm5, %v3538_v31, %v2109_v53 }
0x225f   : > { %v2251_v21 = vsel %vm2250_vm6, %v3550_v61, %v2180_v19 }
0x2260   : > { %v2322_v23 = vsel %vm2321_vm7, %v3562_v34, %v2251_v21 }
0x22c7   : > { %v2384_v27 = vpop.permute.xlu0 %2383 }
0x22c8   : > { %v2386_v28 = vadd.f32 %v2955_v4, %v2384_v27 }
0x22ca   : > { %v2393_v51 = vsel %vm2392_vm8, %v2386_v28, %v2322_v23 }
0x22cb   : > { %v2394_v29 = vmul.f32 %v2393_v51, %v2393_v51 }
0x22cd   : > { %2396 = vrot.lane.b32.xlu2 %v2394_v29, %s2983_s28 }
0x2327   : > { %v2397_v15 = vpop.permute.xlu2 %2396 }
0x2328   : > { %v2399_v59 = vsel %vm462_vm0, %v2397_v15, 0.0 }
0x2329   : > { %2400 = vadd.xlane.f32.xlu0 %v2399_v59 }
0x239c   : > { %v2401_v31 = vpop.xlane.xlu0 %2400 }
0x239d   : > { %2956 = vrsqrt.f32 %v2401_v31  ;;  %vm2408_vm10 = vweird.f32 %v2401_v31 }
0x23a3   : > { %v2957_v30 = vpop.eup %2956 }
0x23a4   : > { %v2403_v61 = vmul.f32 %v2957_v30, %v2401_v31  ;;  %vm2409_vm9 = vweird.f32 %v2957_v30 }
0x23a5   : > { %vm2410_vm11 = vmor %vm2408_vm10, %vm2409_vm9 }
0x23a6   : > { %v2404_v32 = vmul.f32 %v2957_v30, %v2403_v61 }
0x23a8   : > { %v2405_v33 = vmul.f32 0.5, %v2404_v32 }
0x23aa   : > { %v2406_v7 = vsub.f32 1.5, %v2405_v33 }
0x23ac   : > { %v2407_v35 = vmul.f32 %v2957_v30, %v2406_v7 }
0x23ae   : > { %v2411_v34 = vsel %vm2410_vm11, %v2957_v30, %v2407_v35 }
0x23af   : > { %v2412_v8 = vmul.f32 %v2411_v34, %v2393_v51 }
0x23b1   : > { %2414 = vrot.lane.b32.xlu1 %v2412_v8, %s2983_s28 }
0x2423   : > { %v2415_v36 = vpop.permute.xlu1 %2414 }
0x2424   : > { %2417 = vst.msk [vmem:[%s437_s22] sm:$0xff] %vm462_vm0, %v2415_v36 }
0x2425 PF: > { %p17_p9 = scmp.ge.s32.totalorder %s3058_s17, 4   ;;  %s3631_s13 = smov %s2976_s14 }
0x2426   : > { %s3632_s14 = smov %s3067_s20  ;;  %s3633_s15 = smov %s3058_s17 }
0x2427   :  { %19 = sbr.rel (!%p17_p9) target bundleno = 2 (0x2), region = 157 }

</bundles_post_ra>
